<compile_context>
chip_gen: v5e
topology: v5e:2x2
jax: 0.10.0
libtpu: 0.0.40
codegen_flags: <defaults>
</compile_context>

<pallas_src>
import functools
import math

import jax
import jax.numpy as jnp
from jax.experimental import pallas as pl
from jax.experimental.pallas import tpu as pltpu

# ---- model dimensions (small, consistent with the module's forward) ----
EMBED_DIM = 32            # d_model
NUM_HEADS = 4             # heads (embed_dim % num_heads == 0)
HEAD_DIM = EMBED_DIM // NUM_HEADS
HIDDEN_DIM = 32           # transformer dim_feedforward
INPUT_DIM = 4 * EMBED_DIM # predictor input dim = cat of 4 pooled embeddings
MID_DIM = 64
OUTPUT_DIM = 5
SEQ = 8
BATCH = 2
LN_EPS = 1e-5
LEAKY_SLOPE = 0.01        # nn.LeakyReLU default


def _layer_norm(x, gamma, beta):
    mu = jnp.mean(x, axis=-1, keepdims=True)
    var = jnp.mean((x - mu) * (x - mu), axis=-1, keepdims=True)
    return (x - mu) * jax.lax.rsqrt(var + LN_EPS) * gamma + beta


# ---------------------------------------------------------------------------
# Fused kernel: one batch row per grid step.
#   x_ref: (4, S, D) -- the 4 input streams [h, wt_h, l, wt_l] for this batch row.
#   Encoder weights stacked over encoder index e in {0:H, 1:L}.
#   Predictor first-layer weight pre-split into 4 blocks of (D, MID).
# ---------------------------------------------------------------------------
def _fused_forward_kernel(x_ref,
                          wq_ref, wk_ref, wv_ref, bq_ref, bk_ref, bv_ref,
                          wo_ref, bo_ref, ln1_g_ref, ln1_b_ref,
                          wf1_ref, bf1_ref, wf2_ref, bf2_ref,
                          ln2_g_ref, ln2_b_ref,
                          pw1_ref, pb1_ref, pw2_ref, pb2_ref,
                          out_ref, *, num_heads):
    scale = 1.0 / math.sqrt(HEAD_DIM)
    pooled = []                                       # 4 x (1, D)
    for stream in range(4):                           # h, wt_h, l, wt_l
        e = stream // 2                               # 0 -> encoder_H, 1 -> encoder_L
        x = x_ref[stream].astype(jnp.float32)         # (S, D)

        # --- multi-head self-attention; heads live on a pre-split weight axis, so
        #     no lane slicing of activations and no head concat (sum through W_out) ---
        attn = None
        for hh in range(num_heads):
            qh = jnp.dot(x, wq_ref[e, hh],
                         preferred_element_type=jnp.float32) + bq_ref[e, hh]   # (S, Hd)
            kh = jnp.dot(x, wk_ref[e, hh],
                         preferred_element_type=jnp.float32) + bk_ref[e, hh]
            vh = jnp.dot(x, wv_ref[e, hh],
                         preferred_element_type=jnp.float32) + bv_ref[e, hh]
            s = jax.lax.dot_general(qh, kh, (((1,), (1,)), ((), ())),
                                    preferred_element_type=jnp.float32) * scale  # (S, S)
            s = s - jnp.max(s, axis=-1, keepdims=True)
            p = jnp.exp(s)
            p = p * pl.reciprocal(jnp.sum(p, axis=-1, keepdims=True), approx=True)
            ctx = jnp.dot(p, vh, preferred_element_type=jnp.float32)             # (S, Hd)
            term = jnp.dot(ctx, wo_ref[e, hh],
                           preferred_element_type=jnp.float32)                   # (S, D)
            attn = term if attn is None else attn + term
        attn = attn + bo_ref[e]

        # --- residual + LayerNorm 1 (post-norm, PyTorch norm_first=False) ---
        y = _layer_norm(x + attn, ln1_g_ref[e], ln1_b_ref[e])

        # --- feed-forward (relu, PyTorch default) + residual + LayerNorm 2 ---
        ff = jnp.dot(y, wf1_ref[e], preferred_element_type=jnp.float32) + bf1_ref[e]
        ff = jnp.maximum(ff, 0.0)
        ff = jnp.dot(ff, wf2_ref[e], preferred_element_type=jnp.float32) + bf2_ref[e]
        z = _layer_norm(y + ff, ln2_g_ref[e], ln2_b_ref[e])

        # --- mean pool over the sequence axis (torch.mean(output, dim=1)) ---
        pooled.append(jnp.mean(z, axis=0, keepdims=True))                        # (1, D)

    # --- predictor MLP on cat([h, h-wt_h, l, l-wt_l], -1); the concat is folded
    #     into four block matmuls against the pre-split first-layer weight ---
    h_p, wth_p, l_p, wtl_p = pooled
    hid = (jnp.dot(h_p, pw1_ref[0], preferred_element_type=jnp.float32)
           + jnp.dot(h_p - wth_p, pw1_ref[1], preferred_element_type=jnp.float32)
           + jnp.dot(l_p, pw1_ref[2], preferred_element_type=jnp.float32)
           + jnp.dot(l_p - wtl_p, pw1_ref[3], preferred_element_type=jnp.float32)
           + pb1_ref[...])                                                       # (1, MID)
    hid = jnp.where(hid > 0, hid, LEAKY_SLOPE * hid)       # LeakyReLU; Dropout = identity
    y_out = jnp.dot(hid, pw2_ref[...], preferred_element_type=jnp.float32) + pb2_ref[...]
    out_ref[...] = y_out.astype(out_ref.dtype)             # (1, OUTPUT_DIM)


def _const_map(ndim):
    return lambda b: (0,) * ndim


def desautels_forward_impl(params, h, wt_h, l, wt_l):
    B, S, D = h.shape
    seqs = jnp.stack([h, wt_h, l, wt_l], axis=1)            # (B, 4, S, D)
    enc, pred = params['enc'], params['pred']
    weights = (enc['wq'], enc['wk'], enc['wv'], enc['bq'], enc['bk'], enc['bv'],
               enc['wo'], enc['bo'], enc['ln1_g'], enc['ln1_b'],
               enc['wf1'], enc['bf1'], enc['wf2'], enc['bf2'],
               enc['ln2_g'], enc['ln2_b'],
               pred['w1'], pred['b1'], pred['w2'], pred['b2'])

    kernel = functools.partial(_fused_forward_kernel, num_heads=NUM_HEADS)
    out = pl.pallas_call(
        kernel,
        out_shape=jax.ShapeDtypeStruct((B, 1, OUTPUT_DIM), jnp.float32),
        grid=(B,),
        in_specs=[pl.BlockSpec((None, 4, S, D), lambda b: (b, 0, 0, 0))]
                 + [pl.BlockSpec(w.shape, _const_map(w.ndim)) for w in weights],
        out_specs=pl.BlockSpec((None, 1, OUTPUT_DIM), lambda b: (b, 0, 0)),
        compiler_params=pltpu.CompilerParams(
            dimension_semantics=("parallel",)),
    )(seqs, *weights)
    return out[:, 0, :]                                     # (B, OUTPUT_DIM)


desautels_forward = jax.jit(desautels_forward_impl)


# ---------------------------------------------------------------------------
# Parameter construction (deterministic, synthetic), kernel-friendly layouts:
#   all linear weights stored as (in, out); attention weights pre-split per head.
# ---------------------------------------------------------------------------
def _uniform(key, shape, fan_in):
    bound = 1.0 / math.sqrt(fan_in)
    return jax.random.uniform(key, shape, jnp.float32, -bound, bound)


def _encoder_params(key):
    D, H, Hd, Hf = EMBED_DIM, NUM_HEADS, HEAD_DIM, HIDDEN_DIM
    ks = jax.random.split(key, 6)
    return dict(
        wq=_uniform(ks[0], (H, D, Hd), D),
        wk=_uniform(ks[1], (H, D, Hd), D),
        wv=_uniform(ks[2], (H, D, Hd), D),
        bq=jnp.zeros((H, 1, Hd), jnp.float32),
        bk=jnp.zeros((H, 1, Hd), jnp.float32),
        bv=jnp.zeros((H, 1, Hd), jnp.float32),
        wo=_uniform(ks[3], (H, Hd, D), D),
        bo=jnp.zeros((1, D), jnp.float32),
        ln1_g=jnp.ones((1, D), jnp.float32),
        ln1_b=jnp.zeros((1, D), jnp.float32),
        wf1=_uniform(ks[4], (D, Hf), D),
        bf1=jnp.zeros((1, Hf), jnp.float32),
        wf2=_uniform(ks[5], (Hf, D), Hf),
        bf2=jnp.zeros((1, D), jnp.float32),
        ln2_g=jnp.ones((1, D), jnp.float32),
        ln2_b=jnp.zeros((1, D), jnp.float32),
    )


def init_params(key):
    k_h, k_l, k_p1, k_p2 = jax.random.split(key, 4)
    enc_h = _encoder_params(k_h)
    enc_l = _encoder_params(k_l)
    # Stack encoder_H / encoder_L parameters along a leading axis (indexed in-kernel).
    enc = {k: jnp.stack([enc_h[k], enc_l[k]], axis=0) for k in enc_h}
    pred = dict(
        # first layer weight pre-split into the 4 concat blocks: (4, D, MID)
        w1=_uniform(k_p1, (4, EMBED_DIM, MID_DIM), INPUT_DIM),
        b1=jnp.zeros((1, MID_DIM), jnp.float32),
        w2=_uniform(k_p2, (MID_DIM, OUTPUT_DIM), MID_DIM),
        b2=jnp.zeros((1, OUTPUT_DIM), jnp.float32),
    )
    return dict(enc=enc, pred=pred)


if __name__ == "__main__":
    key = jax.random.PRNGKey(0)
    k_params, k_h, k_wh, k_l, k_wl = jax.random.split(key, 5)

    params = init_params(k_params)

    h    = jax.random.normal(k_h,  (BATCH, SEQ, EMBED_DIM), jnp.float32)
    wt_h = jax.random.normal(k_wh, (BATCH, SEQ, EMBED_DIM), jnp.float32)
    l    = jax.random.normal(k_l,  (BATCH, SEQ, EMBED_DIM), jnp.float32)
    wt_l = jax.random.normal(k_wl, (BATCH, SEQ, EMBED_DIM), jnp.float32)

    out = desautels_forward(params, h, wt_h, l, wt_l)
    out = jax.block_until_ready(out)
    assert out.shape == (BATCH, OUTPUT_DIM)
    print("KERNEL_OK")
</pallas_src>

<mosaic_0001>
module attributes {stable_mosaic.version = 11 : i64} {
  func.func @_fused_forward_kernel(%arg0: i32, %arg1: memref<1x4x8x32xf32, #tpu.memory_space<vmem>>, %arg2: memref<2x4x32x8xf32, #tpu.memory_space<vmem>>, %arg3: memref<2x4x32x8xf32, #tpu.memory_space<vmem>>, %arg4: memref<2x4x32x8xf32, #tpu.memory_space<vmem>>, %arg5: memref<2x4x1x8xf32, #tpu.memory_space<vmem>>, %arg6: memref<2x4x1x8xf32, #tpu.memory_space<vmem>>, %arg7: memref<2x4x1x8xf32, #tpu.memory_space<vmem>>, %arg8: memref<2x4x8x32xf32, #tpu.memory_space<vmem>>, %arg9: memref<2x1x32xf32, #tpu.memory_space<vmem>>, %arg10: memref<2x1x32xf32, #tpu.memory_space<vmem>>, %arg11: memref<2x1x32xf32, #tpu.memory_space<vmem>>, %arg12: memref<2x32x32xf32, #tpu.memory_space<vmem>>, %arg13: memref<2x1x32xf32, #tpu.memory_space<vmem>>, %arg14: memref<2x32x32xf32, #tpu.memory_space<vmem>>, %arg15: memref<2x1x32xf32, #tpu.memory_space<vmem>>, %arg16: memref<2x1x32xf32, #tpu.memory_space<vmem>>, %arg17: memref<2x1x32xf32, #tpu.memory_space<vmem>>, %arg18: memref<4x32x64xf32, #tpu.memory_space<vmem>>, %arg19: memref<1x64xf32, #tpu.memory_space<vmem>>, %arg20: memref<64x5xf32, #tpu.memory_space<vmem>>, %arg21: memref<1x5xf32, #tpu.memory_space<vmem>>, %arg22: memref<1x1x5xf32, #tpu.memory_space<vmem>>) attributes {dimension_semantics = [#tpu.dimension_semantics<parallel>], iteration_bounds = array<i64: 2>, scalar_prefetch = 0 : i64, scratch_operands = 0 : i64, tpu.core_type = #tpu.core_type<tc>, window_params = [{transform_indices = @transform_0, window_bounds = array<i64: 1, 4, 8, 32>}, {pipeline_mode = #tpu.pipeline_mode<synchronous>, transform_indices = @transform_1, window_bounds = array<i64: 2, 4, 32, 8>}, {pipeline_mode = #tpu.pipeline_mode<synchronous>, transform_indices = @transform_2, window_bounds = array<i64: 2, 4, 32, 8>}, {pipeline_mode = #tpu.pipeline_mode<synchronous>, transform_indices = @transform_3, window_bounds = array<i64: 2, 4, 32, 8>}, {pipeline_mode = #tpu.pipeline_mode<synchronous>, transform_indices = @transform_4, window_bounds = array<i64: 2, 4, 1, 8>}, {pipeline_mode = #tpu.pipeline_mode<synchronous>, transform_indices = @transform_5, window_bounds = array<i64: 2, 4, 1, 8>}, {pipeline_mode = #tpu.pipeline_mode<synchronous>, transform_indices = @transform_6, window_bounds = array<i64: 2, 4, 1, 8>}, {pipeline_mode = #tpu.pipeline_mode<synchronous>, transform_indices = @transform_7, window_bounds = array<i64: 2, 4, 8, 32>}, {pipeline_mode = #tpu.pipeline_mode<synchronous>, transform_indices = @transform_8, window_bounds = array<i64: 2, 1, 32>}, {pipeline_mode = #tpu.pipeline_mode<synchronous>, transform_indices = @transform_9, window_bounds = array<i64: 2, 1, 32>}, {pipeline_mode = #tpu.pipeline_mode<synchronous>, transform_indices = @transform_10, window_bounds = array<i64: 2, 1, 32>}, {pipeline_mode = #tpu.pipeline_mode<synchronous>, transform_indices = @transform_11, window_bounds = array<i64: 2, 32, 32>}, {pipeline_mode = #tpu.pipeline_mode<synchronous>, transform_indices = @transform_12, window_bounds = array<i64: 2, 1, 32>}, {pipeline_mode = #tpu.pipeline_mode<synchronous>, transform_indices = @transform_13, window_bounds = array<i64: 2, 32, 32>}, {pipeline_mode = #tpu.pipeline_mode<synchronous>, transform_indices = @transform_14, window_bounds = array<i64: 2, 1, 32>}, {pipeline_mode = #tpu.pipeline_mode<synchronous>, transform_indices = @transform_15, window_bounds = array<i64: 2, 1, 32>}, {pipeline_mode = #tpu.pipeline_mode<synchronous>, transform_indices = @transform_16, window_bounds = array<i64: 2, 1, 32>}, {pipeline_mode = #tpu.pipeline_mode<synchronous>, transform_indices = @transform_17, window_bounds = array<i64: 4, 32, 64>}, {pipeline_mode = #tpu.pipeline_mode<synchronous>, transform_indices = @transform_18, window_bounds = array<i64: 1, 64>}, {pipeline_mode = #tpu.pipeline_mode<synchronous>, transform_indices = @transform_19, window_bounds = array<i64: 64, 5>}, {pipeline_mode = #tpu.pipeline_mode<synchronous>, transform_indices = @transform_20, window_bounds = array<i64: 1, 5>}, {transform_indices = @transform_21, window_bounds = array<i64: 1, 1, 5>}]} {
    %c0 = arith.constant 0 : index
    %c0_0 = arith.constant 0 : index
    %c0_1 = arith.constant 0 : index
    %c0_2 = arith.constant 0 : index
    %0 = vector.load %arg1[%c0, %c0_0, %c0_1, %c0_2] : memref<1x4x8x32xf32, #tpu.memory_space<vmem>>, vector<1x1x8x32xf32>
    %1 = vector.shape_cast %0 : vector<1x1x8x32xf32> to vector<8x32xf32>
    %c0_3 = arith.constant 0 : index
    %c0_4 = arith.constant 0 : index
    %c0_5 = arith.constant 0 : index
    %c0_6 = arith.constant 0 : index
    %2 = vector.load %arg2[%c0_3, %c0_4, %c0_5, %c0_6] : memref<2x4x32x8xf32, #tpu.memory_space<vmem>>, vector<1x1x32x8xf32>
    %3 = vector.shape_cast %2 : vector<1x1x32x8xf32> to vector<32x8xf32>
    %cst = arith.constant dense<0.000000e+00> : vector<8x8xf32>
    %4 = tpu.matmul %1, %3, %cst {dimension_numbers = #tpu.dot_dimension_numbers<[1], [0], [0], [1], [0, 0, 1, 1], [], []>} : vector<8x32xf32>, vector<32x8xf32>, vector<8x8xf32> -> vector<8x8xf32>
    %c0_7 = arith.constant 0 : index
    %c0_8 = arith.constant 0 : index
    %c0_9 = arith.constant 0 : index
    %c0_10 = arith.constant 0 : index
    %5 = vector.load %arg5[%c0_7, %c0_8, %c0_9, %c0_10] : memref<2x4x1x8xf32, #tpu.memory_space<vmem>>, vector<1x1x1x8xf32>
    %6 = vector.shape_cast %5 : vector<1x1x1x8xf32> to vector<1x8xf32>
    %7 = vector.broadcast %6 : vector<1x8xf32> to vector<8x8xf32>
    %8 = arith.addf %4, %7 : vector<8x8xf32>
    %c0_11 = arith.constant 0 : index
    %c0_12 = arith.constant 0 : index
    %c0_13 = arith.constant 0 : index
    %c0_14 = arith.constant 0 : index
    %9 = vector.load %arg3[%c0_11, %c0_12, %c0_13, %c0_14] : memref<2x4x32x8xf32, #tpu.memory_space<vmem>>, vector<1x1x32x8xf32>
    %10 = vector.shape_cast %9 : vector<1x1x32x8xf32> to vector<32x8xf32>
    %cst_15 = arith.constant dense<0.000000e+00> : vector<8x8xf32>
    %11 = tpu.matmul %1, %10, %cst_15 {dimension_numbers = #tpu.dot_dimension_numbers<[1], [0], [0], [1], [0, 0, 1, 1], [], []>} : vector<8x32xf32>, vector<32x8xf32>, vector<8x8xf32> -> vector<8x8xf32>
    %c0_16 = arith.constant 0 : index
    %c0_17 = arith.constant 0 : index
    %c0_18 = arith.constant 0 : index
    %c0_19 = arith.constant 0 : index
    %12 = vector.load %arg6[%c0_16, %c0_17, %c0_18, %c0_19] : memref<2x4x1x8xf32, #tpu.memory_space<vmem>>, vector<1x1x1x8xf32>
    %13 = vector.shape_cast %12 : vector<1x1x1x8xf32> to vector<1x8xf32>
    %14 = vector.broadcast %13 : vector<1x8xf32> to vector<8x8xf32>
    %15 = arith.addf %11, %14 : vector<8x8xf32>
    %c0_20 = arith.constant 0 : index
    %c0_21 = arith.constant 0 : index
    %c0_22 = arith.constant 0 : index
    %c0_23 = arith.constant 0 : index
    %16 = vector.load %arg4[%c0_20, %c0_21, %c0_22, %c0_23] : memref<2x4x32x8xf32, #tpu.memory_space<vmem>>, vector<1x1x32x8xf32>
    %17 = vector.shape_cast %16 : vector<1x1x32x8xf32> to vector<32x8xf32>
    %cst_24 = arith.constant dense<0.000000e+00> : vector<8x8xf32>
    %18 = tpu.matmul %1, %17, %cst_24 {dimension_numbers = #tpu.dot_dimension_numbers<[1], [0], [0], [1], [0, 0, 1, 1], [], []>} : vector<8x32xf32>, vector<32x8xf32>, vector<8x8xf32> -> vector<8x8xf32>
    %c0_25 = arith.constant 0 : index
    %c0_26 = arith.constant 0 : index
    %c0_27 = arith.constant 0 : index
    %c0_28 = arith.constant 0 : index
    %19 = vector.load %arg7[%c0_25, %c0_26, %c0_27, %c0_28] : memref<2x4x1x8xf32, #tpu.memory_space<vmem>>, vector<1x1x1x8xf32>
    %20 = vector.shape_cast %19 : vector<1x1x1x8xf32> to vector<1x8xf32>
    %21 = vector.broadcast %20 : vector<1x8xf32> to vector<8x8xf32>
    %22 = arith.addf %18, %21 : vector<8x8xf32>
    %cst_29 = arith.constant dense<0.000000e+00> : vector<8x8xf32>
    %23 = tpu.matmul %8, %15, %cst_29 {dimension_numbers = #tpu.dot_dimension_numbers<[1], [1], [0], [0], [0, 0, 1, 0], [], []>} : vector<8x8xf32>, vector<8x8xf32>, vector<8x8xf32> -> vector<8x8xf32>
    %cst_30 = arith.constant 0.353553385 : f32
    %24 = vector.broadcast %cst_30 : f32 to vector<8x8xf32>
    %25 = arith.mulf %23, %24 : vector<8x8xf32>
    %cst_31 = arith.constant dense<0xFF800000> : vector<8xf32>
    %26 = vector.multi_reduction <maximumf>, %25, %cst_31 [1] : vector<8x8xf32> to vector<8xf32>
    %27 = vector.shape_cast %26 : vector<8xf32> to vector<8x1xf32>
    %28 = vector.broadcast %27 : vector<8x1xf32> to vector<8x8xf32>
    %29 = arith.subf %25, %28 : vector<8x8xf32>
    %30 = math.exp %29 : vector<8x8xf32>
    %cst_32 = arith.constant dense<0.000000e+00> : vector<8xf32>
    %31 = vector.multi_reduction <add>, %30, %cst_32 [1] : vector<8x8xf32> to vector<8xf32>
    %32 = vector.shape_cast %31 : vector<8xf32> to vector<8x1xf32>
    %33 = tpu.reciprocal %32 {approx = true} : vector<8x1xf32> -> vector<8x1xf32>
    %34 = vector.broadcast %33 : vector<8x1xf32> to vector<8x8xf32>
    %35 = arith.mulf %30, %34 : vector<8x8xf32>
    %cst_33 = arith.constant dense<0.000000e+00> : vector<8x8xf32>
    %36 = tpu.matmul %35, %22, %cst_33 {dimension_numbers = #tpu.dot_dimension_numbers<[1], [0], [0], [1], [0, 0, 1, 1], [], []>} : vector<8x8xf32>, vector<8x8xf32>, vector<8x8xf32> -> vector<8x8xf32>
    %c0_34 = arith.constant 0 : index
    %c0_35 = arith.constant 0 : index
    %c0_36 = arith.constant 0 : index
    %c0_37 = arith.constant 0 : index
    %37 = vector.load %arg8[%c0_34, %c0_35, %c0_36, %c0_37] : memref<2x4x8x32xf32, #tpu.memory_space<vmem>>, vector<1x1x8x32xf32>
    %38 = vector.shape_cast %37 : vector<1x1x8x32xf32> to vector<8x32xf32>
    %cst_38 = arith.constant dense<0.000000e+00> : vector<8x32xf32>
    %39 = tpu.matmul %36, %38, %cst_38 {dimension_numbers = #tpu.dot_dimension_numbers<[1], [0], [0], [1], [0, 0, 1, 1], [], []>} : vector<8x8xf32>, vector<8x32xf32>, vector<8x32xf32> -> vector<8x32xf32>
    %c0_39 = arith.constant 0 : index
    %c1 = arith.constant 1 : index
    %c0_40 = arith.constant 0 : index
    %c0_41 = arith.constant 0 : index
    %40 = vector.load %arg2[%c0_39, %c1, %c0_40, %c0_41] : memref<2x4x32x8xf32, #tpu.memory_space<vmem>>, vector<1x1x32x8xf32>
    %41 = vector.shape_cast %40 : vector<1x1x32x8xf32> to vector<32x8xf32>
    %cst_42 = arith.constant dense<0.000000e+00> : vector<8x8xf32>
    %42 = tpu.matmul %1, %41, %cst_42 {dimension_numbers = #tpu.dot_dimension_numbers<[1], [0], [0], [1], [0, 0, 1, 1], [], []>} : vector<8x32xf32>, vector<32x8xf32>, vector<8x8xf32> -> vector<8x8xf32>
    %c0_43 = arith.constant 0 : index
    %c1_44 = arith.constant 1 : index
    %c0_45 = arith.constant 0 : index
    %c0_46 = arith.constant 0 : index
    %43 = vector.load %arg5[%c0_43, %c1_44, %c0_45, %c0_46] : memref<2x4x1x8xf32, #tpu.memory_space<vmem>>, vector<1x1x1x8xf32>
    %44 = vector.shape_cast %43 : vector<1x1x1x8xf32> to vector<1x8xf32>
    %45 = vector.broadcast %44 : vector<1x8xf32> to vector<8x8xf32>
    %46 = arith.addf %42, %45 : vector<8x8xf32>
    %c0_47 = arith.constant 0 : index
    %c1_48 = arith.constant 1 : index
    %c0_49 = arith.constant 0 : index
    %c0_50 = arith.constant 0 : index
    %47 = vector.load %arg3[%c0_47, %c1_48, %c0_49, %c0_50] : memref<2x4x32x8xf32, #tpu.memory_space<vmem>>, vector<1x1x32x8xf32>
    %48 = vector.shape_cast %47 : vector<1x1x32x8xf32> to vector<32x8xf32>
    %cst_51 = arith.constant dense<0.000000e+00> : vector<8x8xf32>
    %49 = tpu.matmul %1, %48, %cst_51 {dimension_numbers = #tpu.dot_dimension_numbers<[1], [0], [0], [1], [0, 0, 1, 1], [], []>} : vector<8x32xf32>, vector<32x8xf32>, vector<8x8xf32> -> vector<8x8xf32>
    %c0_52 = arith.constant 0 : index
    %c1_53 = arith.constant 1 : index
    %c0_54 = arith.constant 0 : index
    %c0_55 = arith.constant 0 : index
    %50 = vector.load %arg6[%c0_52, %c1_53, %c0_54, %c0_55] : memref<2x4x1x8xf32, #tpu.memory_space<vmem>>, vector<1x1x1x8xf32>
    %51 = vector.shape_cast %50 : vector<1x1x1x8xf32> to vector<1x8xf32>
    %52 = vector.broadcast %51 : vector<1x8xf32> to vector<8x8xf32>
    %53 = arith.addf %49, %52 : vector<8x8xf32>
    %c0_56 = arith.constant 0 : index
    %c1_57 = arith.constant 1 : index
    %c0_58 = arith.constant 0 : index
    %c0_59 = arith.constant 0 : index
    %54 = vector.load %arg4[%c0_56, %c1_57, %c0_58, %c0_59] : memref<2x4x32x8xf32, #tpu.memory_space<vmem>>, vector<1x1x32x8xf32>
    %55 = vector.shape_cast %54 : vector<1x1x32x8xf32> to vector<32x8xf32>
    %cst_60 = arith.constant dense<0.000000e+00> : vector<8x8xf32>
    %56 = tpu.matmul %1, %55, %cst_60 {dimension_numbers = #tpu.dot_dimension_numbers<[1], [0], [0], [1], [0, 0, 1, 1], [], []>} : vector<8x32xf32>, vector<32x8xf32>, vector<8x8xf32> -> vector<8x8xf32>
    %c0_61 = arith.constant 0 : index
    %c1_62 = arith.constant 1 : index
    %c0_63 = arith.constant 0 : index
    %c0_64 = arith.constant 0 : index
    %57 = vector.load %arg7[%c0_61, %c1_62, %c0_63, %c0_64] : memref<2x4x1x8xf32, #tpu.memory_space<vmem>>, vector<1x1x1x8xf32>
    %58 = vector.shape_cast %57 : vector<1x1x1x8xf32> to vector<1x8xf32>
    %59 = vector.broadcast %58 : vector<1x8xf32> to vector<8x8xf32>
    %60 = arith.addf %56, %59 : vector<8x8xf32>
    %cst_65 = arith.constant dense<0.000000e+00> : vector<8x8xf32>
    %61 = tpu.matmul %46, %53, %cst_65 {dimension_numbers = #tpu.dot_dimension_numbers<[1], [1], [0], [0], [0, 0, 1, 0], [], []>} : vector<8x8xf32>, vector<8x8xf32>, vector<8x8xf32> -> vector<8x8xf32>
    %cst_66 = arith.constant 0.353553385 : f32
    %62 = vector.broadcast %cst_66 : f32 to vector<8x8xf32>
    %63 = arith.mulf %61, %62 : vector<8x8xf32>
    %cst_67 = arith.constant dense<0xFF800000> : vector<8xf32>
    %64 = vector.multi_reduction <maximumf>, %63, %cst_67 [1] : vector<8x8xf32> to vector<8xf32>
    %65 = vector.shape_cast %64 : vector<8xf32> to vector<8x1xf32>
    %66 = vector.broadcast %65 : vector<8x1xf32> to vector<8x8xf32>
    %67 = arith.subf %63, %66 : vector<8x8xf32>
    %68 = math.exp %67 : vector<8x8xf32>
    %cst_68 = arith.constant dense<0.000000e+00> : vector<8xf32>
    %69 = vector.multi_reduction <add>, %68, %cst_68 [1] : vector<8x8xf32> to vector<8xf32>
    %70 = vector.shape_cast %69 : vector<8xf32> to vector<8x1xf32>
    %71 = tpu.reciprocal %70 {approx = true} : vector<8x1xf32> -> vector<8x1xf32>
    %72 = vector.broadcast %71 : vector<8x1xf32> to vector<8x8xf32>
    %73 = arith.mulf %68, %72 : vector<8x8xf32>
    %cst_69 = arith.constant dense<0.000000e+00> : vector<8x8xf32>
    %74 = tpu.matmul %73, %60, %cst_69 {dimension_numbers = #tpu.dot_dimension_numbers<[1], [0], [0], [1], [0, 0, 1, 1], [], []>} : vector<8x8xf32>, vector<8x8xf32>, vector<8x8xf32> -> vector<8x8xf32>
    %c0_70 = arith.constant 0 : index
    %c1_71 = arith.constant 1 : index
    %c0_72 = arith.constant 0 : index
    %c0_73 = arith.constant 0 : index
    %75 = vector.load %arg8[%c0_70, %c1_71, %c0_72, %c0_73] : memref<2x4x8x32xf32, #tpu.memory_space<vmem>>, vector<1x1x8x32xf32>
    %76 = vector.shape_cast %75 : vector<1x1x8x32xf32> to vector<8x32xf32>
    %cst_74 = arith.constant dense<0.000000e+00> : vector<8x32xf32>
    %77 = tpu.matmul %74, %76, %cst_74 {dimension_numbers = #tpu.dot_dimension_numbers<[1], [0], [0], [1], [0, 0, 1, 1], [], []>} : vector<8x8xf32>, vector<8x32xf32>, vector<8x32xf32> -> vector<8x32xf32>
    %78 = arith.addf %39, %77 : vector<8x32xf32>
    %c0_75 = arith.constant 0 : index
    %c2 = arith.constant 2 : index
    %c0_76 = arith.constant 0 : index
    %c0_77 = arith.constant 0 : index
    %79 = vector.load %arg2[%c0_75, %c2, %c0_76, %c0_77] : memref<2x4x32x8xf32, #tpu.memory_space<vmem>>, vector<1x1x32x8xf32>
    %80 = vector.shape_cast %79 : vector<1x1x32x8xf32> to vector<32x8xf32>
    %cst_78 = arith.constant dense<0.000000e+00> : vector<8x8xf32>
    %81 = tpu.matmul %1, %80, %cst_78 {dimension_numbers = #tpu.dot_dimension_numbers<[1], [0], [0], [1], [0, 0, 1, 1], [], []>} : vector<8x32xf32>, vector<32x8xf32>, vector<8x8xf32> -> vector<8x8xf32>
    %c0_79 = arith.constant 0 : index
    %c2_80 = arith.constant 2 : index
    %c0_81 = arith.constant 0 : index
    %c0_82 = arith.constant 0 : index
    %82 = vector.load %arg5[%c0_79, %c2_80, %c0_81, %c0_82] : memref<2x4x1x8xf32, #tpu.memory_space<vmem>>, vector<1x1x1x8xf32>
    %83 = vector.shape_cast %82 : vector<1x1x1x8xf32> to vector<1x8xf32>
    %84 = vector.broadcast %83 : vector<1x8xf32> to vector<8x8xf32>
    %85 = arith.addf %81, %84 : vector<8x8xf32>
    %c0_83 = arith.constant 0 : index
    %c2_84 = arith.constant 2 : index
    %c0_85 = arith.constant 0 : index
    %c0_86 = arith.constant 0 : index
    %86 = vector.load %arg3[%c0_83, %c2_84, %c0_85, %c0_86] : memref<2x4x32x8xf32, #tpu.memory_space<vmem>>, vector<1x1x32x8xf32>
    %87 = vector.shape_cast %86 : vector<1x1x32x8xf32> to vector<32x8xf32>
    %cst_87 = arith.constant dense<0.000000e+00> : vector<8x8xf32>
    %88 = tpu.matmul %1, %87, %cst_87 {dimension_numbers = #tpu.dot_dimension_numbers<[1], [0], [0], [1], [0, 0, 1, 1], [], []>} : vector<8x32xf32>, vector<32x8xf32>, vector<8x8xf32> -> vector<8x8xf32>
    %c0_88 = arith.constant 0 : index
    %c2_89 = arith.constant 2 : index
    %c0_90 = arith.constant 0 : index
    %c0_91 = arith.constant 0 : index
    %89 = vector.load %arg6[%c0_88, %c2_89, %c0_90, %c0_91] : memref<2x4x1x8xf32, #tpu.memory_space<vmem>>, vector<1x1x1x8xf32>
    %90 = vector.shape_cast %89 : vector<1x1x1x8xf32> to vector<1x8xf32>
    %91 = vector.broadcast %90 : vector<1x8xf32> to vector<8x8xf32>
    %92 = arith.addf %88, %91 : vector<8x8xf32>
    %c0_92 = arith.constant 0 : index
    %c2_93 = arith.constant 2 : index
    %c0_94 = arith.constant 0 : index
    %c0_95 = arith.constant 0 : index
    %93 = vector.load %arg4[%c0_92, %c2_93, %c0_94, %c0_95] : memref<2x4x32x8xf32, #tpu.memory_space<vmem>>, vector<1x1x32x8xf32>
    %94 = vector.shape_cast %93 : vector<1x1x32x8xf32> to vector<32x8xf32>
    %cst_96 = arith.constant dense<0.000000e+00> : vector<8x8xf32>
    %95 = tpu.matmul %1, %94, %cst_96 {dimension_numbers = #tpu.dot_dimension_numbers<[1], [0], [0], [1], [0, 0, 1, 1], [], []>} : vector<8x32xf32>, vector<32x8xf32>, vector<8x8xf32> -> vector<8x8xf32>
    %c0_97 = arith.constant 0 : index
    %c2_98 = arith.constant 2 : index
    %c0_99 = arith.constant 0 : index
    %c0_100 = arith.constant 0 : index
    %96 = vector.load %arg7[%c0_97, %c2_98, %c0_99, %c0_100] : memref<2x4x1x8xf32, #tpu.memory_space<vmem>>, vector<1x1x1x8xf32>
    %97 = vector.shape_cast %96 : vector<1x1x1x8xf32> to vector<1x8xf32>
    %98 = vector.broadcast %97 : vector<1x8xf32> to vector<8x8xf32>
    %99 = arith.addf %95, %98 : vector<8x8xf32>
    %cst_101 = arith.constant dense<0.000000e+00> : vector<8x8xf32>
    %100 = tpu.matmul %85, %92, %cst_101 {dimension_numbers = #tpu.dot_dimension_numbers<[1], [1], [0], [0], [0, 0, 1, 0], [], []>} : vector<8x8xf32>, vector<8x8xf32>, vector<8x8xf32> -> vector<8x8xf32>
    %cst_102 = arith.constant 0.353553385 : f32
    %101 = vector.broadcast %cst_102 : f32 to vector<8x8xf32>
    %102 = arith.mulf %100, %101 : vector<8x8xf32>
    %cst_103 = arith.constant dense<0xFF800000> : vector<8xf32>
    %103 = vector.multi_reduction <maximumf>, %102, %cst_103 [1] : vector<8x8xf32> to vector<8xf32>
    %104 = vector.shape_cast %103 : vector<8xf32> to vector<8x1xf32>
    %105 = vector.broadcast %104 : vector<8x1xf32> to vector<8x8xf32>
    %106 = arith.subf %102, %105 : vector<8x8xf32>
    %107 = math.exp %106 : vector<8x8xf32>
    %cst_104 = arith.constant dense<0.000000e+00> : vector<8xf32>
    %108 = vector.multi_reduction <add>, %107, %cst_104 [1] : vector<8x8xf32> to vector<8xf32>
    %109 = vector.shape_cast %108 : vector<8xf32> to vector<8x1xf32>
    %110 = tpu.reciprocal %109 {approx = true} : vector<8x1xf32> -> vector<8x1xf32>
    %111 = vector.broadcast %110 : vector<8x1xf32> to vector<8x8xf32>
    %112 = arith.mulf %107, %111 : vector<8x8xf32>
    %cst_105 = arith.constant dense<0.000000e+00> : vector<8x8xf32>
    %113 = tpu.matmul %112, %99, %cst_105 {dimension_numbers = #tpu.dot_dimension_numbers<[1], [0], [0], [1], [0, 0, 1, 1], [], []>} : vector<8x8xf32>, vector<8x8xf32>, vector<8x8xf32> -> vector<8x8xf32>
    %c0_106 = arith.constant 0 : index
    %c2_107 = arith.constant 2 : index
    %c0_108 = arith.constant 0 : index
    %c0_109 = arith.constant 0 : index
    %114 = vector.load %arg8[%c0_106, %c2_107, %c0_108, %c0_109] : memref<2x4x8x32xf32, #tpu.memory_space<vmem>>, vector<1x1x8x32xf32>
    %115 = vector.shape_cast %114 : vector<1x1x8x32xf32> to vector<8x32xf32>
    %cst_110 = arith.constant dense<0.000000e+00> : vector<8x32xf32>
    %116 = tpu.matmul %113, %115, %cst_110 {dimension_numbers = #tpu.dot_dimension_numbers<[1], [0], [0], [1], [0, 0, 1, 1], [], []>} : vector<8x8xf32>, vector<8x32xf32>, vector<8x32xf32> -> vector<8x32xf32>
    %117 = arith.addf %78, %116 : vector<8x32xf32>
    %c0_111 = arith.constant 0 : index
    %c3 = arith.constant 3 : index
    %c0_112 = arith.constant 0 : index
    %c0_113 = arith.constant 0 : index
    %118 = vector.load %arg2[%c0_111, %c3, %c0_112, %c0_113] : memref<2x4x32x8xf32, #tpu.memory_space<vmem>>, vector<1x1x32x8xf32>
    %119 = vector.shape_cast %118 : vector<1x1x32x8xf32> to vector<32x8xf32>
    %cst_114 = arith.constant dense<0.000000e+00> : vector<8x8xf32>
    %120 = tpu.matmul %1, %119, %cst_114 {dimension_numbers = #tpu.dot_dimension_numbers<[1], [0], [0], [1], [0, 0, 1, 1], [], []>} : vector<8x32xf32>, vector<32x8xf32>, vector<8x8xf32> -> vector<8x8xf32>
    %c0_115 = arith.constant 0 : index
    %c3_116 = arith.constant 3 : index
    %c0_117 = arith.constant 0 : index
    %c0_118 = arith.constant 0 : index
    %121 = vector.load %arg5[%c0_115, %c3_116, %c0_117, %c0_118] : memref<2x4x1x8xf32, #tpu.memory_space<vmem>>, vector<1x1x1x8xf32>
    %122 = vector.shape_cast %121 : vector<1x1x1x8xf32> to vector<1x8xf32>
    %123 = vector.broadcast %122 : vector<1x8xf32> to vector<8x8xf32>
    %124 = arith.addf %120, %123 : vector<8x8xf32>
    %c0_119 = arith.constant 0 : index
    %c3_120 = arith.constant 3 : index
    %c0_121 = arith.constant 0 : index
    %c0_122 = arith.constant 0 : index
    %125 = vector.load %arg3[%c0_119, %c3_120, %c0_121, %c0_122] : memref<2x4x32x8xf32, #tpu.memory_space<vmem>>, vector<1x1x32x8xf32>
    %126 = vector.shape_cast %125 : vector<1x1x32x8xf32> to vector<32x8xf32>
    %cst_123 = arith.constant dense<0.000000e+00> : vector<8x8xf32>
    %127 = tpu.matmul %1, %126, %cst_123 {dimension_numbers = #tpu.dot_dimension_numbers<[1], [0], [0], [1], [0, 0, 1, 1], [], []>} : vector<8x32xf32>, vector<32x8xf32>, vector<8x8xf32> -> vector<8x8xf32>
    %c0_124 = arith.constant 0 : index
    %c3_125 = arith.constant 3 : index
    %c0_126 = arith.constant 0 : index
    %c0_127 = arith.constant 0 : index
    %128 = vector.load %arg6[%c0_124, %c3_125, %c0_126, %c0_127] : memref<2x4x1x8xf32, #tpu.memory_space<vmem>>, vector<1x1x1x8xf32>
    %129 = vector.shape_cast %128 : vector<1x1x1x8xf32> to vector<1x8xf32>
    %130 = vector.broadcast %129 : vector<1x8xf32> to vector<8x8xf32>
    %131 = arith.addf %127, %130 : vector<8x8xf32>
    %c0_128 = arith.constant 0 : index
    %c3_129 = arith.constant 3 : index
    %c0_130 = arith.constant 0 : index
    %c0_131 = arith.constant 0 : index
    %132 = vector.load %arg4[%c0_128, %c3_129, %c0_130, %c0_131] : memref<2x4x32x8xf32, #tpu.memory_space<vmem>>, vector<1x1x32x8xf32>
    %133 = vector.shape_cast %132 : vector<1x1x32x8xf32> to vector<32x8xf32>
    %cst_132 = arith.constant dense<0.000000e+00> : vector<8x8xf32>
    %134 = tpu.matmul %1, %133, %cst_132 {dimension_numbers = #tpu.dot_dimension_numbers<[1], [0], [0], [1], [0, 0, 1, 1], [], []>} : vector<8x32xf32>, vector<32x8xf32>, vector<8x8xf32> -> vector<8x8xf32>
    %c0_133 = arith.constant 0 : index
    %c3_134 = arith.constant 3 : index
    %c0_135 = arith.constant 0 : index
    %c0_136 = arith.constant 0 : index
    %135 = vector.load %arg7[%c0_133, %c3_134, %c0_135, %c0_136] : memref<2x4x1x8xf32, #tpu.memory_space<vmem>>, vector<1x1x1x8xf32>
    %136 = vector.shape_cast %135 : vector<1x1x1x8xf32> to vector<1x8xf32>
    %137 = vector.broadcast %136 : vector<1x8xf32> to vector<8x8xf32>
    %138 = arith.addf %134, %137 : vector<8x8xf32>
    %cst_137 = arith.constant dense<0.000000e+00> : vector<8x8xf32>
    %139 = tpu.matmul %124, %131, %cst_137 {dimension_numbers = #tpu.dot_dimension_numbers<[1], [1], [0], [0], [0, 0, 1, 0], [], []>} : vector<8x8xf32>, vector<8x8xf32>, vector<8x8xf32> -> vector<8x8xf32>
    %cst_138 = arith.constant 0.353553385 : f32
    %140 = vector.broadcast %cst_138 : f32 to vector<8x8xf32>
    %141 = arith.mulf %139, %140 : vector<8x8xf32>
    %cst_139 = arith.constant dense<0xFF800000> : vector<8xf32>
    %142 = vector.multi_reduction <maximumf>, %141, %cst_139 [1] : vector<8x8xf32> to vector<8xf32>
    %143 = vector.shape_cast %142 : vector<8xf32> to vector<8x1xf32>
    %144 = vector.broadcast %143 : vector<8x1xf32> to vector<8x8xf32>
    %145 = arith.subf %141, %144 : vector<8x8xf32>
    %146 = math.exp %145 : vector<8x8xf32>
    %cst_140 = arith.constant dense<0.000000e+00> : vector<8xf32>
    %147 = vector.multi_reduction <add>, %146, %cst_140 [1] : vector<8x8xf32> to vector<8xf32>
    %148 = vector.shape_cast %147 : vector<8xf32> to vector<8x1xf32>
    %149 = tpu.reciprocal %148 {approx = true} : vector<8x1xf32> -> vector<8x1xf32>
    %150 = vector.broadcast %149 : vector<8x1xf32> to vector<8x8xf32>
    %151 = arith.mulf %146, %150 : vector<8x8xf32>
    %cst_141 = arith.constant dense<0.000000e+00> : vector<8x8xf32>
    %152 = tpu.matmul %151, %138, %cst_141 {dimension_numbers = #tpu.dot_dimension_numbers<[1], [0], [0], [1], [0, 0, 1, 1], [], []>} : vector<8x8xf32>, vector<8x8xf32>, vector<8x8xf32> -> vector<8x8xf32>
    %c0_142 = arith.constant 0 : index
    %c3_143 = arith.constant 3 : index
    %c0_144 = arith.constant 0 : index
    %c0_145 = arith.constant 0 : index
    %153 = vector.load %arg8[%c0_142, %c3_143, %c0_144, %c0_145] : memref<2x4x8x32xf32, #tpu.memory_space<vmem>>, vector<1x1x8x32xf32>
    %154 = vector.shape_cast %153 : vector<1x1x8x32xf32> to vector<8x32xf32>
    %cst_146 = arith.constant dense<0.000000e+00> : vector<8x32xf32>
    %155 = tpu.matmul %152, %154, %cst_146 {dimension_numbers = #tpu.dot_dimension_numbers<[1], [0], [0], [1], [0, 0, 1, 1], [], []>} : vector<8x8xf32>, vector<8x32xf32>, vector<8x32xf32> -> vector<8x32xf32>
    %156 = arith.addf %117, %155 : vector<8x32xf32>
    %c0_147 = arith.constant 0 : index
    %c0_148 = arith.constant 0 : index
    %c0_149 = arith.constant 0 : index
    %157 = vector.load %arg9[%c0_147, %c0_148, %c0_149] : memref<2x1x32xf32, #tpu.memory_space<vmem>>, vector<1x1x32xf32>
    %158 = vector.shape_cast %157 : vector<1x1x32xf32> to vector<1x32xf32>
    %159 = vector.broadcast %158 : vector<1x32xf32> to vector<8x32xf32>
    %160 = arith.addf %156, %159 : vector<8x32xf32>
    %161 = arith.addf %1, %160 : vector<8x32xf32>
    %c0_150 = arith.constant 0 : index
    %c0_151 = arith.constant 0 : index
    %c0_152 = arith.constant 0 : index
    %162 = vector.load %arg10[%c0_150, %c0_151, %c0_152] : memref<2x1x32xf32, #tpu.memory_space<vmem>>, vector<1x1x32xf32>
    %163 = vector.shape_cast %162 : vector<1x1x32xf32> to vector<1x32xf32>
    %c0_153 = arith.constant 0 : index
    %c0_154 = arith.constant 0 : index
    %c0_155 = arith.constant 0 : index
    %164 = vector.load %arg11[%c0_153, %c0_154, %c0_155] : memref<2x1x32xf32, #tpu.memory_space<vmem>>, vector<1x1x32xf32>
    %165 = vector.shape_cast %164 : vector<1x1x32xf32> to vector<1x32xf32>
    %cst_156 = arith.constant dense<0.000000e+00> : vector<8xf32>
    %166 = vector.multi_reduction <add>, %161, %cst_156 [1] : vector<8x32xf32> to vector<8xf32>
    %167 = vector.shape_cast %166 : vector<8xf32> to vector<8x1xf32>
    %cst_157 = arith.constant 3.200000e+01 : f32
    %168 = vector.broadcast %cst_157 : f32 to vector<8x1xf32>
    %169 = arith.divf %167, %168 : vector<8x1xf32>
    %170 = vector.broadcast %169 : vector<8x1xf32> to vector<8x32xf32>
    %171 = arith.subf %161, %170 : vector<8x32xf32>
    %172 = vector.broadcast %169 : vector<8x1xf32> to vector<8x32xf32>
    %173 = arith.subf %161, %172 : vector<8x32xf32>
    %174 = arith.mulf %171, %173 : vector<8x32xf32>
    %cst_158 = arith.constant dense<0.000000e+00> : vector<8xf32>
    %175 = vector.multi_reduction <add>, %174, %cst_158 [1] : vector<8x32xf32> to vector<8xf32>
    %176 = vector.shape_cast %175 : vector<8xf32> to vector<8x1xf32>
    %cst_159 = arith.constant 3.200000e+01 : f32
    %177 = vector.broadcast %cst_159 : f32 to vector<8x1xf32>
    %178 = arith.divf %176, %177 : vector<8x1xf32>
    %179 = vector.broadcast %169 : vector<8x1xf32> to vector<8x32xf32>
    %180 = arith.subf %161, %179 : vector<8x32xf32>
    %cst_160 = arith.constant 9.99999974E-6 : f32
    %181 = vector.broadcast %cst_160 : f32 to vector<8x1xf32>
    %182 = arith.addf %178, %181 : vector<8x1xf32>
    %183 = math.rsqrt %182 : vector<8x1xf32>
    %184 = vector.broadcast %183 : vector<8x1xf32> to vector<8x32xf32>
    %185 = arith.mulf %180, %184 : vector<8x32xf32>
    %186 = vector.broadcast %163 : vector<1x32xf32> to vector<8x32xf32>
    %187 = arith.mulf %185, %186 : vector<8x32xf32>
    %188 = vector.broadcast %165 : vector<1x32xf32> to vector<8x32xf32>
    %189 = arith.addf %187, %188 : vector<8x32xf32>
    %c0_161 = arith.constant 0 : index
    %c0_162 = arith.constant 0 : index
    %c0_163 = arith.constant 0 : index
    %190 = vector.load %arg12[%c0_161, %c0_162, %c0_163] : memref<2x32x32xf32, #tpu.memory_space<vmem>>, vector<1x32x32xf32>
    %191 = vector.shape_cast %190 : vector<1x32x32xf32> to vector<32x32xf32>
    %cst_164 = arith.constant dense<0.000000e+00> : vector<8x32xf32>
    %192 = tpu.matmul %189, %191, %cst_164 {dimension_numbers = #tpu.dot_dimension_numbers<[1], [0], [0], [1], [0, 0, 1, 1], [], []>} : vector<8x32xf32>, vector<32x32xf32>, vector<8x32xf32> -> vector<8x32xf32>
    %c0_165 = arith.constant 0 : index
    %c0_166 = arith.constant 0 : index
    %c0_167 = arith.constant 0 : index
    %193 = vector.load %arg13[%c0_165, %c0_166, %c0_167] : memref<2x1x32xf32, #tpu.memory_space<vmem>>, vector<1x1x32xf32>
    %194 = vector.shape_cast %193 : vector<1x1x32xf32> to vector<1x32xf32>
    %195 = vector.broadcast %194 : vector<1x32xf32> to vector<8x32xf32>
    %196 = arith.addf %192, %195 : vector<8x32xf32>
    %cst_168 = arith.constant 0.000000e+00 : f32
    %197 = vector.broadcast %cst_168 : f32 to vector<8x32xf32>
    %198 = arith.maximumf %196, %197 : vector<8x32xf32>
    %c0_169 = arith.constant 0 : index
    %c0_170 = arith.constant 0 : index
    %c0_171 = arith.constant 0 : index
    %199 = vector.load %arg14[%c0_169, %c0_170, %c0_171] : memref<2x32x32xf32, #tpu.memory_space<vmem>>, vector<1x32x32xf32>
    %200 = vector.shape_cast %199 : vector<1x32x32xf32> to vector<32x32xf32>
    %cst_172 = arith.constant dense<0.000000e+00> : vector<8x32xf32>
    %201 = tpu.matmul %198, %200, %cst_172 {dimension_numbers = #tpu.dot_dimension_numbers<[1], [0], [0], [1], [0, 0, 1, 1], [], []>} : vector<8x32xf32>, vector<32x32xf32>, vector<8x32xf32> -> vector<8x32xf32>
    %c0_173 = arith.constant 0 : index
    %c0_174 = arith.constant 0 : index
    %c0_175 = arith.constant 0 : index
    %202 = vector.load %arg15[%c0_173, %c0_174, %c0_175] : memref<2x1x32xf32, #tpu.memory_space<vmem>>, vector<1x1x32xf32>
    %203 = vector.shape_cast %202 : vector<1x1x32xf32> to vector<1x32xf32>
    %204 = vector.broadcast %203 : vector<1x32xf32> to vector<8x32xf32>
    %205 = arith.addf %201, %204 : vector<8x32xf32>
    %206 = arith.addf %189, %205 : vector<8x32xf32>
    %c0_176 = arith.constant 0 : index
    %c0_177 = arith.constant 0 : index
    %c0_178 = arith.constant 0 : index
    %207 = vector.load %arg16[%c0_176, %c0_177, %c0_178] : memref<2x1x32xf32, #tpu.memory_space<vmem>>, vector<1x1x32xf32>
    %208 = vector.shape_cast %207 : vector<1x1x32xf32> to vector<1x32xf32>
    %c0_179 = arith.constant 0 : index
    %c0_180 = arith.constant 0 : index
    %c0_181 = arith.constant 0 : index
    %209 = vector.load %arg17[%c0_179, %c0_180, %c0_181] : memref<2x1x32xf32, #tpu.memory_space<vmem>>, vector<1x1x32xf32>
    %210 = vector.shape_cast %209 : vector<1x1x32xf32> to vector<1x32xf32>
    %cst_182 = arith.constant dense<0.000000e+00> : vector<8xf32>
    %211 = vector.multi_reduction <add>, %206, %cst_182 [1] : vector<8x32xf32> to vector<8xf32>
    %212 = vector.shape_cast %211 : vector<8xf32> to vector<8x1xf32>
    %cst_183 = arith.constant 3.200000e+01 : f32
    %213 = vector.broadcast %cst_183 : f32 to vector<8x1xf32>
    %214 = arith.divf %212, %213 : vector<8x1xf32>
    %215 = vector.broadcast %214 : vector<8x1xf32> to vector<8x32xf32>
    %216 = arith.subf %206, %215 : vector<8x32xf32>
    %217 = vector.broadcast %214 : vector<8x1xf32> to vector<8x32xf32>
    %218 = arith.subf %206, %217 : vector<8x32xf32>
    %219 = arith.mulf %216, %218 : vector<8x32xf32>
    %cst_184 = arith.constant dense<0.000000e+00> : vector<8xf32>
    %220 = vector.multi_reduction <add>, %219, %cst_184 [1] : vector<8x32xf32> to vector<8xf32>
    %221 = vector.shape_cast %220 : vector<8xf32> to vector<8x1xf32>
    %cst_185 = arith.constant 3.200000e+01 : f32
    %222 = vector.broadcast %cst_185 : f32 to vector<8x1xf32>
    %223 = arith.divf %221, %222 : vector<8x1xf32>
    %224 = vector.broadcast %214 : vector<8x1xf32> to vector<8x32xf32>
    %225 = arith.subf %206, %224 : vector<8x32xf32>
    %cst_186 = arith.constant 9.99999974E-6 : f32
    %226 = vector.broadcast %cst_186 : f32 to vector<8x1xf32>
    %227 = arith.addf %223, %226 : vector<8x1xf32>
    %228 = math.rsqrt %227 : vector<8x1xf32>
    %229 = vector.broadcast %228 : vector<8x1xf32> to vector<8x32xf32>
    %230 = arith.mulf %225, %229 : vector<8x32xf32>
    %231 = vector.broadcast %208 : vector<1x32xf32> to vector<8x32xf32>
    %232 = arith.mulf %230, %231 : vector<8x32xf32>
    %233 = vector.broadcast %210 : vector<1x32xf32> to vector<8x32xf32>
    %234 = arith.addf %232, %233 : vector<8x32xf32>
    %cst_187 = arith.constant dense<0.000000e+00> : vector<32xf32>
    %235 = vector.multi_reduction <add>, %234, %cst_187 [0] : vector<8x32xf32> to vector<32xf32>
    %236 = vector.shape_cast %235 : vector<32xf32> to vector<1x32xf32>
    %cst_188 = arith.constant 8.000000e+00 : f32
    %237 = vector.broadcast %cst_188 : f32 to vector<1x32xf32>
    %238 = arith.divf %236, %237 : vector<1x32xf32>
    %c0_189 = arith.constant 0 : index
    %c1_190 = arith.constant 1 : index
    %c0_191 = arith.constant 0 : index
    %c0_192 = arith.constant 0 : index
    %239 = vector.load %arg1[%c0_189, %c1_190, %c0_191, %c0_192] : memref<1x4x8x32xf32, #tpu.memory_space<vmem>>, vector<1x1x8x32xf32>
    %240 = vector.shape_cast %239 : vector<1x1x8x32xf32> to vector<8x32xf32>
    %c0_193 = arith.constant 0 : index
    %c0_194 = arith.constant 0 : index
    %c0_195 = arith.constant 0 : index
    %c0_196 = arith.constant 0 : index
    %241 = vector.load %arg2[%c0_193, %c0_194, %c0_195, %c0_196] : memref<2x4x32x8xf32, #tpu.memory_space<vmem>>, vector<1x1x32x8xf32>
    %242 = vector.shape_cast %241 : vector<1x1x32x8xf32> to vector<32x8xf32>
    %cst_197 = arith.constant dense<0.000000e+00> : vector<8x8xf32>
    %243 = tpu.matmul %240, %242, %cst_197 {dimension_numbers = #tpu.dot_dimension_numbers<[1], [0], [0], [1], [0, 0, 1, 1], [], []>} : vector<8x32xf32>, vector<32x8xf32>, vector<8x8xf32> -> vector<8x8xf32>
    %c0_198 = arith.constant 0 : index
    %c0_199 = arith.constant 0 : index
    %c0_200 = arith.constant 0 : index
    %c0_201 = arith.constant 0 : index
    %244 = vector.load %arg5[%c0_198, %c0_199, %c0_200, %c0_201] : memref<2x4x1x8xf32, #tpu.memory_space<vmem>>, vector<1x1x1x8xf32>
    %245 = vector.shape_cast %244 : vector<1x1x1x8xf32> to vector<1x8xf32>
    %246 = vector.broadcast %245 : vector<1x8xf32> to vector<8x8xf32>
    %247 = arith.addf %243, %246 : vector<8x8xf32>
    %c0_202 = arith.constant 0 : index
    %c0_203 = arith.constant 0 : index
    %c0_204 = arith.constant 0 : index
    %c0_205 = arith.constant 0 : index
    %248 = vector.load %arg3[%c0_202, %c0_203, %c0_204, %c0_205] : memref<2x4x32x8xf32, #tpu.memory_space<vmem>>, vector<1x1x32x8xf32>
    %249 = vector.shape_cast %248 : vector<1x1x32x8xf32> to vector<32x8xf32>
    %cst_206 = arith.constant dense<0.000000e+00> : vector<8x8xf32>
    %250 = tpu.matmul %240, %249, %cst_206 {dimension_numbers = #tpu.dot_dimension_numbers<[1], [0], [0], [1], [0, 0, 1, 1], [], []>} : vector<8x32xf32>, vector<32x8xf32>, vector<8x8xf32> -> vector<8x8xf32>
    %c0_207 = arith.constant 0 : index
    %c0_208 = arith.constant 0 : index
    %c0_209 = arith.constant 0 : index
    %c0_210 = arith.constant 0 : index
    %251 = vector.load %arg6[%c0_207, %c0_208, %c0_209, %c0_210] : memref<2x4x1x8xf32, #tpu.memory_space<vmem>>, vector<1x1x1x8xf32>
    %252 = vector.shape_cast %251 : vector<1x1x1x8xf32> to vector<1x8xf32>
    %253 = vector.broadcast %252 : vector<1x8xf32> to vector<8x8xf32>
    %254 = arith.addf %250, %253 : vector<8x8xf32>
    %c0_211 = arith.constant 0 : index
    %c0_212 = arith.constant 0 : index
    %c0_213 = arith.constant 0 : index
    %c0_214 = arith.constant 0 : index
    %255 = vector.load %arg4[%c0_211, %c0_212, %c0_213, %c0_214] : memref<2x4x32x8xf32, #tpu.memory_space<vmem>>, vector<1x1x32x8xf32>
    %256 = vector.shape_cast %255 : vector<1x1x32x8xf32> to vector<32x8xf32>
    %cst_215 = arith.constant dense<0.000000e+00> : vector<8x8xf32>
    %257 = tpu.matmul %240, %256, %cst_215 {dimension_numbers = #tpu.dot_dimension_numbers<[1], [0], [0], [1], [0, 0, 1, 1], [], []>} : vector<8x32xf32>, vector<32x8xf32>, vector<8x8xf32> -> vector<8x8xf32>
    %c0_216 = arith.constant 0 : index
    %c0_217 = arith.constant 0 : index
    %c0_218 = arith.constant 0 : index
    %c0_219 = arith.constant 0 : index
    %258 = vector.load %arg7[%c0_216, %c0_217, %c0_218, %c0_219] : memref<2x4x1x8xf32, #tpu.memory_space<vmem>>, vector<1x1x1x8xf32>
    %259 = vector.shape_cast %258 : vector<1x1x1x8xf32> to vector<1x8xf32>
    %260 = vector.broadcast %259 : vector<1x8xf32> to vector<8x8xf32>
    %261 = arith.addf %257, %260 : vector<8x8xf32>
    %cst_220 = arith.constant dense<0.000000e+00> : vector<8x8xf32>
    %262 = tpu.matmul %247, %254, %cst_220 {dimension_numbers = #tpu.dot_dimension_numbers<[1], [1], [0], [0], [0, 0, 1, 0], [], []>} : vector<8x8xf32>, vector<8x8xf32>, vector<8x8xf32> -> vector<8x8xf32>
    %cst_221 = arith.constant 0.353553385 : f32
    %263 = vector.broadcast %cst_221 : f32 to vector<8x8xf32>
    %264 = arith.mulf %262, %263 : vector<8x8xf32>
    %cst_222 = arith.constant dense<0xFF800000> : vector<8xf32>
    %265 = vector.multi_reduction <maximumf>, %264, %cst_222 [1] : vector<8x8xf32> to vector<8xf32>
    %266 = vector.shape_cast %265 : vector<8xf32> to vector<8x1xf32>
    %267 = vector.broadcast %266 : vector<8x1xf32> to vector<8x8xf32>
    %268 = arith.subf %264, %267 : vector<8x8xf32>
    %269 = math.exp %268 : vector<8x8xf32>
    %cst_223 = arith.constant dense<0.000000e+00> : vector<8xf32>
    %270 = vector.multi_reduction <add>, %269, %cst_223 [1] : vector<8x8xf32> to vector<8xf32>
    %271 = vector.shape_cast %270 : vector<8xf32> to vector<8x1xf32>
    %272 = tpu.reciprocal %271 {approx = true} : vector<8x1xf32> -> vector<8x1xf32>
    %273 = vector.broadcast %272 : vector<8x1xf32> to vector<8x8xf32>
    %274 = arith.mulf %269, %273 : vector<8x8xf32>
    %cst_224 = arith.constant dense<0.000000e+00> : vector<8x8xf32>
    %275 = tpu.matmul %274, %261, %cst_224 {dimension_numbers = #tpu.dot_dimension_numbers<[1], [0], [0], [1], [0, 0, 1, 1], [], []>} : vector<8x8xf32>, vector<8x8xf32>, vector<8x8xf32> -> vector<8x8xf32>
    %c0_225 = arith.constant 0 : index
    %c0_226 = arith.constant 0 : index
    %c0_227 = arith.constant 0 : index
    %c0_228 = arith.constant 0 : index
    %276 = vector.load %arg8[%c0_225, %c0_226, %c0_227, %c0_228] : memref<2x4x8x32xf32, #tpu.memory_space<vmem>>, vector<1x1x8x32xf32>
    %277 = vector.shape_cast %276 : vector<1x1x8x32xf32> to vector<8x32xf32>
    %cst_229 = arith.constant dense<0.000000e+00> : vector<8x32xf32>
    %278 = tpu.matmul %275, %277, %cst_229 {dimension_numbers = #tpu.dot_dimension_numbers<[1], [0], [0], [1], [0, 0, 1, 1], [], []>} : vector<8x8xf32>, vector<8x32xf32>, vector<8x32xf32> -> vector<8x32xf32>
    %c0_230 = arith.constant 0 : index
    %c1_231 = arith.constant 1 : index
    %c0_232 = arith.constant 0 : index
    %c0_233 = arith.constant 0 : index
    %279 = vector.load %arg2[%c0_230, %c1_231, %c0_232, %c0_233] : memref<2x4x32x8xf32, #tpu.memory_space<vmem>>, vector<1x1x32x8xf32>
    %280 = vector.shape_cast %279 : vector<1x1x32x8xf32> to vector<32x8xf32>
    %cst_234 = arith.constant dense<0.000000e+00> : vector<8x8xf32>
    %281 = tpu.matmul %240, %280, %cst_234 {dimension_numbers = #tpu.dot_dimension_numbers<[1], [0], [0], [1], [0, 0, 1, 1], [], []>} : vector<8x32xf32>, vector<32x8xf32>, vector<8x8xf32> -> vector<8x8xf32>
    %c0_235 = arith.constant 0 : index
    %c1_236 = arith.constant 1 : index
    %c0_237 = arith.constant 0 : index
    %c0_238 = arith.constant 0 : index
    %282 = vector.load %arg5[%c0_235, %c1_236, %c0_237, %c0_238] : memref<2x4x1x8xf32, #tpu.memory_space<vmem>>, vector<1x1x1x8xf32>
    %283 = vector.shape_cast %282 : vector<1x1x1x8xf32> to vector<1x8xf32>
    %284 = vector.broadcast %283 : vector<1x8xf32> to vector<8x8xf32>
    %285 = arith.addf %281, %284 : vector<8x8xf32>
    %c0_239 = arith.constant 0 : index
    %c1_240 = arith.constant 1 : index
    %c0_241 = arith.constant 0 : index
    %c0_242 = arith.constant 0 : index
    %286 = vector.load %arg3[%c0_239, %c1_240, %c0_241, %c0_242] : memref<2x4x32x8xf32, #tpu.memory_space<vmem>>, vector<1x1x32x8xf32>
    %287 = vector.shape_cast %286 : vector<1x1x32x8xf32> to vector<32x8xf32>
    %cst_243 = arith.constant dense<0.000000e+00> : vector<8x8xf32>
    %288 = tpu.matmul %240, %287, %cst_243 {dimension_numbers = #tpu.dot_dimension_numbers<[1], [0], [0], [1], [0, 0, 1, 1], [], []>} : vector<8x32xf32>, vector<32x8xf32>, vector<8x8xf32> -> vector<8x8xf32>
    %c0_244 = arith.constant 0 : index
    %c1_245 = arith.constant 1 : index
    %c0_246 = arith.constant 0 : index
    %c0_247 = arith.constant 0 : index
    %289 = vector.load %arg6[%c0_244, %c1_245, %c0_246, %c0_247] : memref<2x4x1x8xf32, #tpu.memory_space<vmem>>, vector<1x1x1x8xf32>
    %290 = vector.shape_cast %289 : vector<1x1x1x8xf32> to vector<1x8xf32>
    %291 = vector.broadcast %290 : vector<1x8xf32> to vector<8x8xf32>
    %292 = arith.addf %288, %291 : vector<8x8xf32>
    %c0_248 = arith.constant 0 : index
    %c1_249 = arith.constant 1 : index
    %c0_250 = arith.constant 0 : index
    %c0_251 = arith.constant 0 : index
    %293 = vector.load %arg4[%c0_248, %c1_249, %c0_250, %c0_251] : memref<2x4x32x8xf32, #tpu.memory_space<vmem>>, vector<1x1x32x8xf32>
    %294 = vector.shape_cast %293 : vector<1x1x32x8xf32> to vector<32x8xf32>
    %cst_252 = arith.constant dense<0.000000e+00> : vector<8x8xf32>
    %295 = tpu.matmul %240, %294, %cst_252 {dimension_numbers = #tpu.dot_dimension_numbers<[1], [0], [0], [1], [0, 0, 1, 1], [], []>} : vector<8x32xf32>, vector<32x8xf32>, vector<8x8xf32> -> vector<8x8xf32>
    %c0_253 = arith.constant 0 : index
    %c1_254 = arith.constant 1 : index
    %c0_255 = arith.constant 0 : index
    %c0_256 = arith.constant 0 : index
    %296 = vector.load %arg7[%c0_253, %c1_254, %c0_255, %c0_256] : memref<2x4x1x8xf32, #tpu.memory_space<vmem>>, vector<1x1x1x8xf32>
    %297 = vector.shape_cast %296 : vector<1x1x1x8xf32> to vector<1x8xf32>
    %298 = vector.broadcast %297 : vector<1x8xf32> to vector<8x8xf32>
    %299 = arith.addf %295, %298 : vector<8x8xf32>
    %cst_257 = arith.constant dense<0.000000e+00> : vector<8x8xf32>
    %300 = tpu.matmul %285, %292, %cst_257 {dimension_numbers = #tpu.dot_dimension_numbers<[1], [1], [0], [0], [0, 0, 1, 0], [], []>} : vector<8x8xf32>, vector<8x8xf32>, vector<8x8xf32> -> vector<8x8xf32>
    %cst_258 = arith.constant 0.353553385 : f32
    %301 = vector.broadcast %cst_258 : f32 to vector<8x8xf32>
    %302 = arith.mulf %300, %301 : vector<8x8xf32>
    %cst_259 = arith.constant dense<0xFF800000> : vector<8xf32>
    %303 = vector.multi_reduction <maximumf>, %302, %cst_259 [1] : vector<8x8xf32> to vector<8xf32>
    %304 = vector.shape_cast %303 : vector<8xf32> to vector<8x1xf32>
    %305 = vector.broadcast %304 : vector<8x1xf32> to vector<8x8xf32>
    %306 = arith.subf %302, %305 : vector<8x8xf32>
    %307 = math.exp %306 : vector<8x8xf32>
    %cst_260 = arith.constant dense<0.000000e+00> : vector<8xf32>
    %308 = vector.multi_reduction <add>, %307, %cst_260 [1] : vector<8x8xf32> to vector<8xf32>
    %309 = vector.shape_cast %308 : vector<8xf32> to vector<8x1xf32>
    %310 = tpu.reciprocal %309 {approx = true} : vector<8x1xf32> -> vector<8x1xf32>
    %311 = vector.broadcast %310 : vector<8x1xf32> to vector<8x8xf32>
    %312 = arith.mulf %307, %311 : vector<8x8xf32>
    %cst_261 = arith.constant dense<0.000000e+00> : vector<8x8xf32>
    %313 = tpu.matmul %312, %299, %cst_261 {dimension_numbers = #tpu.dot_dimension_numbers<[1], [0], [0], [1], [0, 0, 1, 1], [], []>} : vector<8x8xf32>, vector<8x8xf32>, vector<8x8xf32> -> vector<8x8xf32>
    %c0_262 = arith.constant 0 : index
    %c1_263 = arith.constant 1 : index
    %c0_264 = arith.constant 0 : index
    %c0_265 = arith.constant 0 : index
    %314 = vector.load %arg8[%c0_262, %c1_263, %c0_264, %c0_265] : memref<2x4x8x32xf32, #tpu.memory_space<vmem>>, vector<1x1x8x32xf32>
    %315 = vector.shape_cast %314 : vector<1x1x8x32xf32> to vector<8x32xf32>
    %cst_266 = arith.constant dense<0.000000e+00> : vector<8x32xf32>
    %316 = tpu.matmul %313, %315, %cst_266 {dimension_numbers = #tpu.dot_dimension_numbers<[1], [0], [0], [1], [0, 0, 1, 1], [], []>} : vector<8x8xf32>, vector<8x32xf32>, vector<8x32xf32> -> vector<8x32xf32>
    %317 = arith.addf %278, %316 : vector<8x32xf32>
    %c0_267 = arith.constant 0 : index
    %c2_268 = arith.constant 2 : index
    %c0_269 = arith.constant 0 : index
    %c0_270 = arith.constant 0 : index
    %318 = vector.load %arg2[%c0_267, %c2_268, %c0_269, %c0_270] : memref<2x4x32x8xf32, #tpu.memory_space<vmem>>, vector<1x1x32x8xf32>
    %319 = vector.shape_cast %318 : vector<1x1x32x8xf32> to vector<32x8xf32>
    %cst_271 = arith.constant dense<0.000000e+00> : vector<8x8xf32>
    %320 = tpu.matmul %240, %319, %cst_271 {dimension_numbers = #tpu.dot_dimension_numbers<[1], [0], [0], [1], [0, 0, 1, 1], [], []>} : vector<8x32xf32>, vector<32x8xf32>, vector<8x8xf32> -> vector<8x8xf32>
    %c0_272 = arith.constant 0 : index
    %c2_273 = arith.constant 2 : index
    %c0_274 = arith.constant 0 : index
    %c0_275 = arith.constant 0 : index
    %321 = vector.load %arg5[%c0_272, %c2_273, %c0_274, %c0_275] : memref<2x4x1x8xf32, #tpu.memory_space<vmem>>, vector<1x1x1x8xf32>
    %322 = vector.shape_cast %321 : vector<1x1x1x8xf32> to vector<1x8xf32>
    %323 = vector.broadcast %322 : vector<1x8xf32> to vector<8x8xf32>
    %324 = arith.addf %320, %323 : vector<8x8xf32>
    %c0_276 = arith.constant 0 : index
    %c2_277 = arith.constant 2 : index
    %c0_278 = arith.constant 0 : index
    %c0_279 = arith.constant 0 : index
    %325 = vector.load %arg3[%c0_276, %c2_277, %c0_278, %c0_279] : memref<2x4x32x8xf32, #tpu.memory_space<vmem>>, vector<1x1x32x8xf32>
    %326 = vector.shape_cast %325 : vector<1x1x32x8xf32> to vector<32x8xf32>
    %cst_280 = arith.constant dense<0.000000e+00> : vector<8x8xf32>
    %327 = tpu.matmul %240, %326, %cst_280 {dimension_numbers = #tpu.dot_dimension_numbers<[1], [0], [0], [1], [0, 0, 1, 1], [], []>} : vector<8x32xf32>, vector<32x8xf32>, vector<8x8xf32> -> vector<8x8xf32>
    %c0_281 = arith.constant 0 : index
    %c2_282 = arith.constant 2 : index
    %c0_283 = arith.constant 0 : index
    %c0_284 = arith.constant 0 : index
    %328 = vector.load %arg6[%c0_281, %c2_282, %c0_283, %c0_284] : memref<2x4x1x8xf32, #tpu.memory_space<vmem>>, vector<1x1x1x8xf32>
    %329 = vector.shape_cast %328 : vector<1x1x1x8xf32> to vector<1x8xf32>
    %330 = vector.broadcast %329 : vector<1x8xf32> to vector<8x8xf32>
    %331 = arith.addf %327, %330 : vector<8x8xf32>
    %c0_285 = arith.constant 0 : index
    %c2_286 = arith.constant 2 : index
    %c0_287 = arith.constant 0 : index
    %c0_288 = arith.constant 0 : index
    %332 = vector.load %arg4[%c0_285, %c2_286, %c0_287, %c0_288] : memref<2x4x32x8xf32, #tpu.memory_space<vmem>>, vector<1x1x32x8xf32>
    %333 = vector.shape_cast %332 : vector<1x1x32x8xf32> to vector<32x8xf32>
    %cst_289 = arith.constant dense<0.000000e+00> : vector<8x8xf32>
    %334 = tpu.matmul %240, %333, %cst_289 {dimension_numbers = #tpu.dot_dimension_numbers<[1], [0], [0], [1], [0, 0, 1, 1], [], []>} : vector<8x32xf32>, vector<32x8xf32>, vector<8x8xf32> -> vector<8x8xf32>
    %c0_290 = arith.constant 0 : index
    %c2_291 = arith.constant 2 : index
    %c0_292 = arith.constant 0 : index
    %c0_293 = arith.constant 0 : index
    %335 = vector.load %arg7[%c0_290, %c2_291, %c0_292, %c0_293] : memref<2x4x1x8xf32, #tpu.memory_space<vmem>>, vector<1x1x1x8xf32>
    %336 = vector.shape_cast %335 : vector<1x1x1x8xf32> to vector<1x8xf32>
    %337 = vector.broadcast %336 : vector<1x8xf32> to vector<8x8xf32>
    %338 = arith.addf %334, %337 : vector<8x8xf32>
    %cst_294 = arith.constant dense<0.000000e+00> : vector<8x8xf32>
    %339 = tpu.matmul %324, %331, %cst_294 {dimension_numbers = #tpu.dot_dimension_numbers<[1], [1], [0], [0], [0, 0, 1, 0], [], []>} : vector<8x8xf32>, vector<8x8xf32>, vector<8x8xf32> -> vector<8x8xf32>
    %cst_295 = arith.constant 0.353553385 : f32
    %340 = vector.broadcast %cst_295 : f32 to vector<8x8xf32>
    %341 = arith.mulf %339, %340 : vector<8x8xf32>
    %cst_296 = arith.constant dense<0xFF800000> : vector<8xf32>
    %342 = vector.multi_reduction <maximumf>, %341, %cst_296 [1] : vector<8x8xf32> to vector<8xf32>
    %343 = vector.shape_cast %342 : vector<8xf32> to vector<8x1xf32>
    %344 = vector.broadcast %343 : vector<8x1xf32> to vector<8x8xf32>
    %345 = arith.subf %341, %344 : vector<8x8xf32>
    %346 = math.exp %345 : vector<8x8xf32>
    %cst_297 = arith.constant dense<0.000000e+00> : vector<8xf32>
    %347 = vector.multi_reduction <add>, %346, %cst_297 [1] : vector<8x8xf32> to vector<8xf32>
    %348 = vector.shape_cast %347 : vector<8xf32> to vector<8x1xf32>
    %349 = tpu.reciprocal %348 {approx = true} : vector<8x1xf32> -> vector<8x1xf32>
    %350 = vector.broadcast %349 : vector<8x1xf32> to vector<8x8xf32>
    %351 = arith.mulf %346, %350 : vector<8x8xf32>
    %cst_298 = arith.constant dense<0.000000e+00> : vector<8x8xf32>
    %352 = tpu.matmul %351, %338, %cst_298 {dimension_numbers = #tpu.dot_dimension_numbers<[1], [0], [0], [1], [0, 0, 1, 1], [], []>} : vector<8x8xf32>, vector<8x8xf32>, vector<8x8xf32> -> vector<8x8xf32>
    %c0_299 = arith.constant 0 : index
    %c2_300 = arith.constant 2 : index
    %c0_301 = arith.constant 0 : index
    %c0_302 = arith.constant 0 : index
    %353 = vector.load %arg8[%c0_299, %c2_300, %c0_301, %c0_302] : memref<2x4x8x32xf32, #tpu.memory_space<vmem>>, vector<1x1x8x32xf32>
    %354 = vector.shape_cast %353 : vector<1x1x8x32xf32> to vector<8x32xf32>
    %cst_303 = arith.constant dense<0.000000e+00> : vector<8x32xf32>
    %355 = tpu.matmul %352, %354, %cst_303 {dimension_numbers = #tpu.dot_dimension_numbers<[1], [0], [0], [1], [0, 0, 1, 1], [], []>} : vector<8x8xf32>, vector<8x32xf32>, vector<8x32xf32> -> vector<8x32xf32>
    %356 = arith.addf %317, %355 : vector<8x32xf32>
    %c0_304 = arith.constant 0 : index
    %c3_305 = arith.constant 3 : index
    %c0_306 = arith.constant 0 : index
    %c0_307 = arith.constant 0 : index
    %357 = vector.load %arg2[%c0_304, %c3_305, %c0_306, %c0_307] : memref<2x4x32x8xf32, #tpu.memory_space<vmem>>, vector<1x1x32x8xf32>
    %358 = vector.shape_cast %357 : vector<1x1x32x8xf32> to vector<32x8xf32>
    %cst_308 = arith.constant dense<0.000000e+00> : vector<8x8xf32>
    %359 = tpu.matmul %240, %358, %cst_308 {dimension_numbers = #tpu.dot_dimension_numbers<[1], [0], [0], [1], [0, 0, 1, 1], [], []>} : vector<8x32xf32>, vector<32x8xf32>, vector<8x8xf32> -> vector<8x8xf32>
    %c0_309 = arith.constant 0 : index
    %c3_310 = arith.constant 3 : index
    %c0_311 = arith.constant 0 : index
    %c0_312 = arith.constant 0 : index
    %360 = vector.load %arg5[%c0_309, %c3_310, %c0_311, %c0_312] : memref<2x4x1x8xf32, #tpu.memory_space<vmem>>, vector<1x1x1x8xf32>
    %361 = vector.shape_cast %360 : vector<1x1x1x8xf32> to vector<1x8xf32>
    %362 = vector.broadcast %361 : vector<1x8xf32> to vector<8x8xf32>
    %363 = arith.addf %359, %362 : vector<8x8xf32>
    %c0_313 = arith.constant 0 : index
    %c3_314 = arith.constant 3 : index
    %c0_315 = arith.constant 0 : index
    %c0_316 = arith.constant 0 : index
    %364 = vector.load %arg3[%c0_313, %c3_314, %c0_315, %c0_316] : memref<2x4x32x8xf32, #tpu.memory_space<vmem>>, vector<1x1x32x8xf32>
    %365 = vector.shape_cast %364 : vector<1x1x32x8xf32> to vector<32x8xf32>
    %cst_317 = arith.constant dense<0.000000e+00> : vector<8x8xf32>
    %366 = tpu.matmul %240, %365, %cst_317 {dimension_numbers = #tpu.dot_dimension_numbers<[1], [0], [0], [1], [0, 0, 1, 1], [], []>} : vector<8x32xf32>, vector<32x8xf32>, vector<8x8xf32> -> vector<8x8xf32>
    %c0_318 = arith.constant 0 : index
    %c3_319 = arith.constant 3 : index
    %c0_320 = arith.constant 0 : index
    %c0_321 = arith.constant 0 : index
    %367 = vector.load %arg6[%c0_318, %c3_319, %c0_320, %c0_321] : memref<2x4x1x8xf32, #tpu.memory_space<vmem>>, vector<1x1x1x8xf32>
    %368 = vector.shape_cast %367 : vector<1x1x1x8xf32> to vector<1x8xf32>
    %369 = vector.broadcast %368 : vector<1x8xf32> to vector<8x8xf32>
    %370 = arith.addf %366, %369 : vector<8x8xf32>
    %c0_322 = arith.constant 0 : index
    %c3_323 = arith.constant 3 : index
    %c0_324 = arith.constant 0 : index
    %c0_325 = arith.constant 0 : index
    %371 = vector.load %arg4[%c0_322, %c3_323, %c0_324, %c0_325] : memref<2x4x32x8xf32, #tpu.memory_space<vmem>>, vector<1x1x32x8xf32>
    %372 = vector.shape_cast %371 : vector<1x1x32x8xf32> to vector<32x8xf32>
    %cst_326 = arith.constant dense<0.000000e+00> : vector<8x8xf32>
    %373 = tpu.matmul %240, %372, %cst_326 {dimension_numbers = #tpu.dot_dimension_numbers<[1], [0], [0], [1], [0, 0, 1, 1], [], []>} : vector<8x32xf32>, vector<32x8xf32>, vector<8x8xf32> -> vector<8x8xf32>
    %c0_327 = arith.constant 0 : index
    %c3_328 = arith.constant 3 : index
    %c0_329 = arith.constant 0 : index
    %c0_330 = arith.constant 0 : index
    %374 = vector.load %arg7[%c0_327, %c3_328, %c0_329, %c0_330] : memref<2x4x1x8xf32, #tpu.memory_space<vmem>>, vector<1x1x1x8xf32>
    %375 = vector.shape_cast %374 : vector<1x1x1x8xf32> to vector<1x8xf32>
    %376 = vector.broadcast %375 : vector<1x8xf32> to vector<8x8xf32>
    %377 = arith.addf %373, %376 : vector<8x8xf32>
    %cst_331 = arith.constant dense<0.000000e+00> : vector<8x8xf32>
    %378 = tpu.matmul %363, %370, %cst_331 {dimension_numbers = #tpu.dot_dimension_numbers<[1], [1], [0], [0], [0, 0, 1, 0], [], []>} : vector<8x8xf32>, vector<8x8xf32>, vector<8x8xf32> -> vector<8x8xf32>
    %cst_332 = arith.constant 0.353553385 : f32
    %379 = vector.broadcast %cst_332 : f32 to vector<8x8xf32>
    %380 = arith.mulf %378, %379 : vector<8x8xf32>
    %cst_333 = arith.constant dense<0xFF800000> : vector<8xf32>
    %381 = vector.multi_reduction <maximumf>, %380, %cst_333 [1] : vector<8x8xf32> to vector<8xf32>
    %382 = vector.shape_cast %381 : vector<8xf32> to vector<8x1xf32>
    %383 = vector.broadcast %382 : vector<8x1xf32> to vector<8x8xf32>
    %384 = arith.subf %380, %383 : vector<8x8xf32>
    %385 = math.exp %384 : vector<8x8xf32>
    %cst_334 = arith.constant dense<0.000000e+00> : vector<8xf32>
    %386 = vector.multi_reduction <add>, %385, %cst_334 [1] : vector<8x8xf32> to vector<8xf32>
    %387 = vector.shape_cast %386 : vector<8xf32> to vector<8x1xf32>
    %388 = tpu.reciprocal %387 {approx = true} : vector<8x1xf32> -> vector<8x1xf32>
    %389 = vector.broadcast %388 : vector<8x1xf32> to vector<8x8xf32>
    %390 = arith.mulf %385, %389 : vector<8x8xf32>
    %cst_335 = arith.constant dense<0.000000e+00> : vector<8x8xf32>
    %391 = tpu.matmul %390, %377, %cst_335 {dimension_numbers = #tpu.dot_dimension_numbers<[1], [0], [0], [1], [0, 0, 1, 1], [], []>} : vector<8x8xf32>, vector<8x8xf32>, vector<8x8xf32> -> vector<8x8xf32>
    %c0_336 = arith.constant 0 : index
    %c3_337 = arith.constant 3 : index
    %c0_338 = arith.constant 0 : index
    %c0_339 = arith.constant 0 : index
    %392 = vector.load %arg8[%c0_336, %c3_337, %c0_338, %c0_339] : memref<2x4x8x32xf32, #tpu.memory_space<vmem>>, vector<1x1x8x32xf32>
    %393 = vector.shape_cast %392 : vector<1x1x8x32xf32> to vector<8x32xf32>
    %cst_340 = arith.constant dense<0.000000e+00> : vector<8x32xf32>
    %394 = tpu.matmul %391, %393, %cst_340 {dimension_numbers = #tpu.dot_dimension_numbers<[1], [0], [0], [1], [0, 0, 1, 1], [], []>} : vector<8x8xf32>, vector<8x32xf32>, vector<8x32xf32> -> vector<8x32xf32>
    %395 = arith.addf %356, %394 : vector<8x32xf32>
    %c0_341 = arith.constant 0 : index
    %c0_342 = arith.constant 0 : index
    %c0_343 = arith.constant 0 : index
    %396 = vector.load %arg9[%c0_341, %c0_342, %c0_343] : memref<2x1x32xf32, #tpu.memory_space<vmem>>, vector<1x1x32xf32>
    %397 = vector.shape_cast %396 : vector<1x1x32xf32> to vector<1x32xf32>
    %398 = vector.broadcast %397 : vector<1x32xf32> to vector<8x32xf32>
    %399 = arith.addf %395, %398 : vector<8x32xf32>
    %400 = arith.addf %240, %399 : vector<8x32xf32>
    %c0_344 = arith.constant 0 : index
    %c0_345 = arith.constant 0 : index
    %c0_346 = arith.constant 0 : index
    %401 = vector.load %arg10[%c0_344, %c0_345, %c0_346] : memref<2x1x32xf32, #tpu.memory_space<vmem>>, vector<1x1x32xf32>
    %402 = vector.shape_cast %401 : vector<1x1x32xf32> to vector<1x32xf32>
    %c0_347 = arith.constant 0 : index
    %c0_348 = arith.constant 0 : index
    %c0_349 = arith.constant 0 : index
    %403 = vector.load %arg11[%c0_347, %c0_348, %c0_349] : memref<2x1x32xf32, #tpu.memory_space<vmem>>, vector<1x1x32xf32>
    %404 = vector.shape_cast %403 : vector<1x1x32xf32> to vector<1x32xf32>
    %cst_350 = arith.constant dense<0.000000e+00> : vector<8xf32>
    %405 = vector.multi_reduction <add>, %400, %cst_350 [1] : vector<8x32xf32> to vector<8xf32>
    %406 = vector.shape_cast %405 : vector<8xf32> to vector<8x1xf32>
    %cst_351 = arith.constant 3.200000e+01 : f32
    %407 = vector.broadcast %cst_351 : f32 to vector<8x1xf32>
    %408 = arith.divf %406, %407 : vector<8x1xf32>
    %409 = vector.broadcast %408 : vector<8x1xf32> to vector<8x32xf32>
    %410 = arith.subf %400, %409 : vector<8x32xf32>
    %411 = vector.broadcast %408 : vector<8x1xf32> to vector<8x32xf32>
    %412 = arith.subf %400, %411 : vector<8x32xf32>
    %413 = arith.mulf %410, %412 : vector<8x32xf32>
    %cst_352 = arith.constant dense<0.000000e+00> : vector<8xf32>
    %414 = vector.multi_reduction <add>, %413, %cst_352 [1] : vector<8x32xf32> to vector<8xf32>
    %415 = vector.shape_cast %414 : vector<8xf32> to vector<8x1xf32>
    %cst_353 = arith.constant 3.200000e+01 : f32
    %416 = vector.broadcast %cst_353 : f32 to vector<8x1xf32>
    %417 = arith.divf %415, %416 : vector<8x1xf32>
    %418 = vector.broadcast %408 : vector<8x1xf32> to vector<8x32xf32>
    %419 = arith.subf %400, %418 : vector<8x32xf32>
    %cst_354 = arith.constant 9.99999974E-6 : f32
    %420 = vector.broadcast %cst_354 : f32 to vector<8x1xf32>
    %421 = arith.addf %417, %420 : vector<8x1xf32>
    %422 = math.rsqrt %421 : vector<8x1xf32>
    %423 = vector.broadcast %422 : vector<8x1xf32> to vector<8x32xf32>
    %424 = arith.mulf %419, %423 : vector<8x32xf32>
    %425 = vector.broadcast %402 : vector<1x32xf32> to vector<8x32xf32>
    %426 = arith.mulf %424, %425 : vector<8x32xf32>
    %427 = vector.broadcast %404 : vector<1x32xf32> to vector<8x32xf32>
    %428 = arith.addf %426, %427 : vector<8x32xf32>
    %c0_355 = arith.constant 0 : index
    %c0_356 = arith.constant 0 : index
    %c0_357 = arith.constant 0 : index
    %429 = vector.load %arg12[%c0_355, %c0_356, %c0_357] : memref<2x32x32xf32, #tpu.memory_space<vmem>>, vector<1x32x32xf32>
    %430 = vector.shape_cast %429 : vector<1x32x32xf32> to vector<32x32xf32>
    %cst_358 = arith.constant dense<0.000000e+00> : vector<8x32xf32>
    %431 = tpu.matmul %428, %430, %cst_358 {dimension_numbers = #tpu.dot_dimension_numbers<[1], [0], [0], [1], [0, 0, 1, 1], [], []>} : vector<8x32xf32>, vector<32x32xf32>, vector<8x32xf32> -> vector<8x32xf32>
    %c0_359 = arith.constant 0 : index
    %c0_360 = arith.constant 0 : index
    %c0_361 = arith.constant 0 : index
    %432 = vector.load %arg13[%c0_359, %c0_360, %c0_361] : memref<2x1x32xf32, #tpu.memory_space<vmem>>, vector<1x1x32xf32>
    %433 = vector.shape_cast %432 : vector<1x1x32xf32> to vector<1x32xf32>
    %434 = vector.broadcast %433 : vector<1x32xf32> to vector<8x32xf32>
    %435 = arith.addf %431, %434 : vector<8x32xf32>
    %cst_362 = arith.constant 0.000000e+00 : f32
    %436 = vector.broadcast %cst_362 : f32 to vector<8x32xf32>
    %437 = arith.maximumf %435, %436 : vector<8x32xf32>
    %c0_363 = arith.constant 0 : index
    %c0_364 = arith.constant 0 : index
    %c0_365 = arith.constant 0 : index
    %438 = vector.load %arg14[%c0_363, %c0_364, %c0_365] : memref<2x32x32xf32, #tpu.memory_space<vmem>>, vector<1x32x32xf32>
    %439 = vector.shape_cast %438 : vector<1x32x32xf32> to vector<32x32xf32>
    %cst_366 = arith.constant dense<0.000000e+00> : vector<8x32xf32>
    %440 = tpu.matmul %437, %439, %cst_366 {dimension_numbers = #tpu.dot_dimension_numbers<[1], [0], [0], [1], [0, 0, 1, 1], [], []>} : vector<8x32xf32>, vector<32x32xf32>, vector<8x32xf32> -> vector<8x32xf32>
    %c0_367 = arith.constant 0 : index
    %c0_368 = arith.constant 0 : index
    %c0_369 = arith.constant 0 : index
    %441 = vector.load %arg15[%c0_367, %c0_368, %c0_369] : memref<2x1x32xf32, #tpu.memory_space<vmem>>, vector<1x1x32xf32>
    %442 = vector.shape_cast %441 : vector<1x1x32xf32> to vector<1x32xf32>
    %443 = vector.broadcast %442 : vector<1x32xf32> to vector<8x32xf32>
    %444 = arith.addf %440, %443 : vector<8x32xf32>
    %445 = arith.addf %428, %444 : vector<8x32xf32>
    %c0_370 = arith.constant 0 : index
    %c0_371 = arith.constant 0 : index
    %c0_372 = arith.constant 0 : index
    %446 = vector.load %arg16[%c0_370, %c0_371, %c0_372] : memref<2x1x32xf32, #tpu.memory_space<vmem>>, vector<1x1x32xf32>
    %447 = vector.shape_cast %446 : vector<1x1x32xf32> to vector<1x32xf32>
    %c0_373 = arith.constant 0 : index
    %c0_374 = arith.constant 0 : index
    %c0_375 = arith.constant 0 : index
    %448 = vector.load %arg17[%c0_373, %c0_374, %c0_375] : memref<2x1x32xf32, #tpu.memory_space<vmem>>, vector<1x1x32xf32>
    %449 = vector.shape_cast %448 : vector<1x1x32xf32> to vector<1x32xf32>
    %cst_376 = arith.constant dense<0.000000e+00> : vector<8xf32>
    %450 = vector.multi_reduction <add>, %445, %cst_376 [1] : vector<8x32xf32> to vector<8xf32>
    %451 = vector.shape_cast %450 : vector<8xf32> to vector<8x1xf32>
    %cst_377 = arith.constant 3.200000e+01 : f32
    %452 = vector.broadcast %cst_377 : f32 to vector<8x1xf32>
    %453 = arith.divf %451, %452 : vector<8x1xf32>
    %454 = vector.broadcast %453 : vector<8x1xf32> to vector<8x32xf32>
    %455 = arith.subf %445, %454 : vector<8x32xf32>
    %456 = vector.broadcast %453 : vector<8x1xf32> to vector<8x32xf32>
    %457 = arith.subf %445, %456 : vector<8x32xf32>
    %458 = arith.mulf %455, %457 : vector<8x32xf32>
    %cst_378 = arith.constant dense<0.000000e+00> : vector<8xf32>
    %459 = vector.multi_reduction <add>, %458, %cst_378 [1] : vector<8x32xf32> to vector<8xf32>
    %460 = vector.shape_cast %459 : vector<8xf32> to vector<8x1xf32>
    %cst_379 = arith.constant 3.200000e+01 : f32
    %461 = vector.broadcast %cst_379 : f32 to vector<8x1xf32>
    %462 = arith.divf %460, %461 : vector<8x1xf32>
    %463 = vector.broadcast %453 : vector<8x1xf32> to vector<8x32xf32>
    %464 = arith.subf %445, %463 : vector<8x32xf32>
    %cst_380 = arith.constant 9.99999974E-6 : f32
    %465 = vector.broadcast %cst_380 : f32 to vector<8x1xf32>
    %466 = arith.addf %462, %465 : vector<8x1xf32>
    %467 = math.rsqrt %466 : vector<8x1xf32>
    %468 = vector.broadcast %467 : vector<8x1xf32> to vector<8x32xf32>
    %469 = arith.mulf %464, %468 : vector<8x32xf32>
    %470 = vector.broadcast %447 : vector<1x32xf32> to vector<8x32xf32>
    %471 = arith.mulf %469, %470 : vector<8x32xf32>
    %472 = vector.broadcast %449 : vector<1x32xf32> to vector<8x32xf32>
    %473 = arith.addf %471, %472 : vector<8x32xf32>
    %cst_381 = arith.constant dense<0.000000e+00> : vector<32xf32>
    %474 = vector.multi_reduction <add>, %473, %cst_381 [0] : vector<8x32xf32> to vector<32xf32>
    %475 = vector.shape_cast %474 : vector<32xf32> to vector<1x32xf32>
    %cst_382 = arith.constant 8.000000e+00 : f32
    %476 = vector.broadcast %cst_382 : f32 to vector<1x32xf32>
    %477 = arith.divf %475, %476 : vector<1x32xf32>
    %c0_383 = arith.constant 0 : index
    %c2_384 = arith.constant 2 : index
    %c0_385 = arith.constant 0 : index
    %c0_386 = arith.constant 0 : index
    %478 = vector.load %arg1[%c0_383, %c2_384, %c0_385, %c0_386] : memref<1x4x8x32xf32, #tpu.memory_space<vmem>>, vector<1x1x8x32xf32>
    %479 = vector.shape_cast %478 : vector<1x1x8x32xf32> to vector<8x32xf32>
    %c1_387 = arith.constant 1 : index
    %c0_388 = arith.constant 0 : index
    %c0_389 = arith.constant 0 : index
    %c0_390 = arith.constant 0 : index
    %480 = vector.load %arg2[%c1_387, %c0_388, %c0_389, %c0_390] : memref<2x4x32x8xf32, #tpu.memory_space<vmem>>, vector<1x1x32x8xf32>
    %481 = vector.shape_cast %480 : vector<1x1x32x8xf32> to vector<32x8xf32>
    %cst_391 = arith.constant dense<0.000000e+00> : vector<8x8xf32>
    %482 = tpu.matmul %479, %481, %cst_391 {dimension_numbers = #tpu.dot_dimension_numbers<[1], [0], [0], [1], [0, 0, 1, 1], [], []>} : vector<8x32xf32>, vector<32x8xf32>, vector<8x8xf32> -> vector<8x8xf32>
    %c1_392 = arith.constant 1 : index
    %c0_393 = arith.constant 0 : index
    %c0_394 = arith.constant 0 : index
    %c0_395 = arith.constant 0 : index
    %483 = vector.load %arg5[%c1_392, %c0_393, %c0_394, %c0_395] : memref<2x4x1x8xf32, #tpu.memory_space<vmem>>, vector<1x1x1x8xf32>
    %484 = vector.shape_cast %483 : vector<1x1x1x8xf32> to vector<1x8xf32>
    %485 = vector.broadcast %484 : vector<1x8xf32> to vector<8x8xf32>
    %486 = arith.addf %482, %485 : vector<8x8xf32>
    %c1_396 = arith.constant 1 : index
    %c0_397 = arith.constant 0 : index
    %c0_398 = arith.constant 0 : index
    %c0_399 = arith.constant 0 : index
    %487 = vector.load %arg3[%c1_396, %c0_397, %c0_398, %c0_399] : memref<2x4x32x8xf32, #tpu.memory_space<vmem>>, vector<1x1x32x8xf32>
    %488 = vector.shape_cast %487 : vector<1x1x32x8xf32> to vector<32x8xf32>
    %cst_400 = arith.constant dense<0.000000e+00> : vector<8x8xf32>
    %489 = tpu.matmul %479, %488, %cst_400 {dimension_numbers = #tpu.dot_dimension_numbers<[1], [0], [0], [1], [0, 0, 1, 1], [], []>} : vector<8x32xf32>, vector<32x8xf32>, vector<8x8xf32> -> vector<8x8xf32>
    %c1_401 = arith.constant 1 : index
    %c0_402 = arith.constant 0 : index
    %c0_403 = arith.constant 0 : index
    %c0_404 = arith.constant 0 : index
    %490 = vector.load %arg6[%c1_401, %c0_402, %c0_403, %c0_404] : memref<2x4x1x8xf32, #tpu.memory_space<vmem>>, vector<1x1x1x8xf32>
    %491 = vector.shape_cast %490 : vector<1x1x1x8xf32> to vector<1x8xf32>
    %492 = vector.broadcast %491 : vector<1x8xf32> to vector<8x8xf32>
    %493 = arith.addf %489, %492 : vector<8x8xf32>
    %c1_405 = arith.constant 1 : index
    %c0_406 = arith.constant 0 : index
    %c0_407 = arith.constant 0 : index
    %c0_408 = arith.constant 0 : index
    %494 = vector.load %arg4[%c1_405, %c0_406, %c0_407, %c0_408] : memref<2x4x32x8xf32, #tpu.memory_space<vmem>>, vector<1x1x32x8xf32>
    %495 = vector.shape_cast %494 : vector<1x1x32x8xf32> to vector<32x8xf32>
    %cst_409 = arith.constant dense<0.000000e+00> : vector<8x8xf32>
    %496 = tpu.matmul %479, %495, %cst_409 {dimension_numbers = #tpu.dot_dimension_numbers<[1], [0], [0], [1], [0, 0, 1, 1], [], []>} : vector<8x32xf32>, vector<32x8xf32>, vector<8x8xf32> -> vector<8x8xf32>
    %c1_410 = arith.constant 1 : index
    %c0_411 = arith.constant 0 : index
    %c0_412 = arith.constant 0 : index
    %c0_413 = arith.constant 0 : index
    %497 = vector.load %arg7[%c1_410, %c0_411, %c0_412, %c0_413] : memref<2x4x1x8xf32, #tpu.memory_space<vmem>>, vector<1x1x1x8xf32>
    %498 = vector.shape_cast %497 : vector<1x1x1x8xf32> to vector<1x8xf32>
    %499 = vector.broadcast %498 : vector<1x8xf32> to vector<8x8xf32>
    %500 = arith.addf %496, %499 : vector<8x8xf32>
    %cst_414 = arith.constant dense<0.000000e+00> : vector<8x8xf32>
    %501 = tpu.matmul %486, %493, %cst_414 {dimension_numbers = #tpu.dot_dimension_numbers<[1], [1], [0], [0], [0, 0, 1, 0], [], []>} : vector<8x8xf32>, vector<8x8xf32>, vector<8x8xf32> -> vector<8x8xf32>
    %cst_415 = arith.constant 0.353553385 : f32
    %502 = vector.broadcast %cst_415 : f32 to vector<8x8xf32>
    %503 = arith.mulf %501, %502 : vector<8x8xf32>
    %cst_416 = arith.constant dense<0xFF800000> : vector<8xf32>
    %504 = vector.multi_reduction <maximumf>, %503, %cst_416 [1] : vector<8x8xf32> to vector<8xf32>
    %505 = vector.shape_cast %504 : vector<8xf32> to vector<8x1xf32>
    %506 = vector.broadcast %505 : vector<8x1xf32> to vector<8x8xf32>
    %507 = arith.subf %503, %506 : vector<8x8xf32>
    %508 = math.exp %507 : vector<8x8xf32>
    %cst_417 = arith.constant dense<0.000000e+00> : vector<8xf32>
    %509 = vector.multi_reduction <add>, %508, %cst_417 [1] : vector<8x8xf32> to vector<8xf32>
    %510 = vector.shape_cast %509 : vector<8xf32> to vector<8x1xf32>
    %511 = tpu.reciprocal %510 {approx = true} : vector<8x1xf32> -> vector<8x1xf32>
    %512 = vector.broadcast %511 : vector<8x1xf32> to vector<8x8xf32>
    %513 = arith.mulf %508, %512 : vector<8x8xf32>
    %cst_418 = arith.constant dense<0.000000e+00> : vector<8x8xf32>
    %514 = tpu.matmul %513, %500, %cst_418 {dimension_numbers = #tpu.dot_dimension_numbers<[1], [0], [0], [1], [0, 0, 1, 1], [], []>} : vector<8x8xf32>, vector<8x8xf32>, vector<8x8xf32> -> vector<8x8xf32>
    %c1_419 = arith.constant 1 : index
    %c0_420 = arith.constant 0 : index
    %c0_421 = arith.constant 0 : index
    %c0_422 = arith.constant 0 : index
    %515 = vector.load %arg8[%c1_419, %c0_420, %c0_421, %c0_422] : memref<2x4x8x32xf32, #tpu.memory_space<vmem>>, vector<1x1x8x32xf32>
    %516 = vector.shape_cast %515 : vector<1x1x8x32xf32> to vector<8x32xf32>
    %cst_423 = arith.constant dense<0.000000e+00> : vector<8x32xf32>
    %517 = tpu.matmul %514, %516, %cst_423 {dimension_numbers = #tpu.dot_dimension_numbers<[1], [0], [0], [1], [0, 0, 1, 1], [], []>} : vector<8x8xf32>, vector<8x32xf32>, vector<8x32xf32> -> vector<8x32xf32>
    %c1_424 = arith.constant 1 : index
    %c1_425 = arith.constant 1 : index
    %c0_426 = arith.constant 0 : index
    %c0_427 = arith.constant 0 : index
    %518 = vector.load %arg2[%c1_424, %c1_425, %c0_426, %c0_427] : memref<2x4x32x8xf32, #tpu.memory_space<vmem>>, vector<1x1x32x8xf32>
    %519 = vector.shape_cast %518 : vector<1x1x32x8xf32> to vector<32x8xf32>
    %cst_428 = arith.constant dense<0.000000e+00> : vector<8x8xf32>
    %520 = tpu.matmul %479, %519, %cst_428 {dimension_numbers = #tpu.dot_dimension_numbers<[1], [0], [0], [1], [0, 0, 1, 1], [], []>} : vector<8x32xf32>, vector<32x8xf32>, vector<8x8xf32> -> vector<8x8xf32>
    %c1_429 = arith.constant 1 : index
    %c1_430 = arith.constant 1 : index
    %c0_431 = arith.constant 0 : index
    %c0_432 = arith.constant 0 : index
    %521 = vector.load %arg5[%c1_429, %c1_430, %c0_431, %c0_432] : memref<2x4x1x8xf32, #tpu.memory_space<vmem>>, vector<1x1x1x8xf32>
    %522 = vector.shape_cast %521 : vector<1x1x1x8xf32> to vector<1x8xf32>
    %523 = vector.broadcast %522 : vector<1x8xf32> to vector<8x8xf32>
    %524 = arith.addf %520, %523 : vector<8x8xf32>
    %c1_433 = arith.constant 1 : index
    %c1_434 = arith.constant 1 : index
    %c0_435 = arith.constant 0 : index
    %c0_436 = arith.constant 0 : index
    %525 = vector.load %arg3[%c1_433, %c1_434, %c0_435, %c0_436] : memref<2x4x32x8xf32, #tpu.memory_space<vmem>>, vector<1x1x32x8xf32>
    %526 = vector.shape_cast %525 : vector<1x1x32x8xf32> to vector<32x8xf32>
    %cst_437 = arith.constant dense<0.000000e+00> : vector<8x8xf32>
    %527 = tpu.matmul %479, %526, %cst_437 {dimension_numbers = #tpu.dot_dimension_numbers<[1], [0], [0], [1], [0, 0, 1, 1], [], []>} : vector<8x32xf32>, vector<32x8xf32>, vector<8x8xf32> -> vector<8x8xf32>
    %c1_438 = arith.constant 1 : index
    %c1_439 = arith.constant 1 : index
    %c0_440 = arith.constant 0 : index
    %c0_441 = arith.constant 0 : index
    %528 = vector.load %arg6[%c1_438, %c1_439, %c0_440, %c0_441] : memref<2x4x1x8xf32, #tpu.memory_space<vmem>>, vector<1x1x1x8xf32>
    %529 = vector.shape_cast %528 : vector<1x1x1x8xf32> to vector<1x8xf32>
    %530 = vector.broadcast %529 : vector<1x8xf32> to vector<8x8xf32>
    %531 = arith.addf %527, %530 : vector<8x8xf32>
    %c1_442 = arith.constant 1 : index
    %c1_443 = arith.constant 1 : index
    %c0_444 = arith.constant 0 : index
    %c0_445 = arith.constant 0 : index
    %532 = vector.load %arg4[%c1_442, %c1_443, %c0_444, %c0_445] : memref<2x4x32x8xf32, #tpu.memory_space<vmem>>, vector<1x1x32x8xf32>
    %533 = vector.shape_cast %532 : vector<1x1x32x8xf32> to vector<32x8xf32>
    %cst_446 = arith.constant dense<0.000000e+00> : vector<8x8xf32>
    %534 = tpu.matmul %479, %533, %cst_446 {dimension_numbers = #tpu.dot_dimension_numbers<[1], [0], [0], [1], [0, 0, 1, 1], [], []>} : vector<8x32xf32>, vector<32x8xf32>, vector<8x8xf32> -> vector<8x8xf32>
    %c1_447 = arith.constant 1 : index
    %c1_448 = arith.constant 1 : index
    %c0_449 = arith.constant 0 : index
    %c0_450 = arith.constant 0 : index
    %535 = vector.load %arg7[%c1_447, %c1_448, %c0_449, %c0_450] : memref<2x4x1x8xf32, #tpu.memory_space<vmem>>, vector<1x1x1x8xf32>
    %536 = vector.shape_cast %535 : vector<1x1x1x8xf32> to vector<1x8xf32>
    %537 = vector.broadcast %536 : vector<1x8xf32> to vector<8x8xf32>
    %538 = arith.addf %534, %537 : vector<8x8xf32>
    %cst_451 = arith.constant dense<0.000000e+00> : vector<8x8xf32>
    %539 = tpu.matmul %524, %531, %cst_451 {dimension_numbers = #tpu.dot_dimension_numbers<[1], [1], [0], [0], [0, 0, 1, 0], [], []>} : vector<8x8xf32>, vector<8x8xf32>, vector<8x8xf32> -> vector<8x8xf32>
    %cst_452 = arith.constant 0.353553385 : f32
    %540 = vector.broadcast %cst_452 : f32 to vector<8x8xf32>
    %541 = arith.mulf %539, %540 : vector<8x8xf32>
    %cst_453 = arith.constant dense<0xFF800000> : vector<8xf32>
    %542 = vector.multi_reduction <maximumf>, %541, %cst_453 [1] : vector<8x8xf32> to vector<8xf32>
    %543 = vector.shape_cast %542 : vector<8xf32> to vector<8x1xf32>
    %544 = vector.broadcast %543 : vector<8x1xf32> to vector<8x8xf32>
    %545 = arith.subf %541, %544 : vector<8x8xf32>
    %546 = math.exp %545 : vector<8x8xf32>
    %cst_454 = arith.constant dense<0.000000e+00> : vector<8xf32>
    %547 = vector.multi_reduction <add>, %546, %cst_454 [1] : vector<8x8xf32> to vector<8xf32>
    %548 = vector.shape_cast %547 : vector<8xf32> to vector<8x1xf32>
    %549 = tpu.reciprocal %548 {approx = true} : vector<8x1xf32> -> vector<8x1xf32>
    %550 = vector.broadcast %549 : vector<8x1xf32> to vector<8x8xf32>
    %551 = arith.mulf %546, %550 : vector<8x8xf32>
    %cst_455 = arith.constant dense<0.000000e+00> : vector<8x8xf32>
    %552 = tpu.matmul %551, %538, %cst_455 {dimension_numbers = #tpu.dot_dimension_numbers<[1], [0], [0], [1], [0, 0, 1, 1], [], []>} : vector<8x8xf32>, vector<8x8xf32>, vector<8x8xf32> -> vector<8x8xf32>
    %c1_456 = arith.constant 1 : index
    %c1_457 = arith.constant 1 : index
    %c0_458 = arith.constant 0 : index
    %c0_459 = arith.constant 0 : index
    %553 = vector.load %arg8[%c1_456, %c1_457, %c0_458, %c0_459] : memref<2x4x8x32xf32, #tpu.memory_space<vmem>>, vector<1x1x8x32xf32>
    %554 = vector.shape_cast %553 : vector<1x1x8x32xf32> to vector<8x32xf32>
    %cst_460 = arith.constant dense<0.000000e+00> : vector<8x32xf32>
    %555 = tpu.matmul %552, %554, %cst_460 {dimension_numbers = #tpu.dot_dimension_numbers<[1], [0], [0], [1], [0, 0, 1, 1], [], []>} : vector<8x8xf32>, vector<8x32xf32>, vector<8x32xf32> -> vector<8x32xf32>
    %556 = arith.addf %517, %555 : vector<8x32xf32>
    %c1_461 = arith.constant 1 : index
    %c2_462 = arith.constant 2 : index
    %c0_463 = arith.constant 0 : index
    %c0_464 = arith.constant 0 : index
    %557 = vector.load %arg2[%c1_461, %c2_462, %c0_463, %c0_464] : memref<2x4x32x8xf32, #tpu.memory_space<vmem>>, vector<1x1x32x8xf32>
    %558 = vector.shape_cast %557 : vector<1x1x32x8xf32> to vector<32x8xf32>
    %cst_465 = arith.constant dense<0.000000e+00> : vector<8x8xf32>
    %559 = tpu.matmul %479, %558, %cst_465 {dimension_numbers = #tpu.dot_dimension_numbers<[1], [0], [0], [1], [0, 0, 1, 1], [], []>} : vector<8x32xf32>, vector<32x8xf32>, vector<8x8xf32> -> vector<8x8xf32>
    %c1_466 = arith.constant 1 : index
    %c2_467 = arith.constant 2 : index
    %c0_468 = arith.constant 0 : index
    %c0_469 = arith.constant 0 : index
    %560 = vector.load %arg5[%c1_466, %c2_467, %c0_468, %c0_469] : memref<2x4x1x8xf32, #tpu.memory_space<vmem>>, vector<1x1x1x8xf32>
    %561 = vector.shape_cast %560 : vector<1x1x1x8xf32> to vector<1x8xf32>
    %562 = vector.broadcast %561 : vector<1x8xf32> to vector<8x8xf32>
    %563 = arith.addf %559, %562 : vector<8x8xf32>
    %c1_470 = arith.constant 1 : index
    %c2_471 = arith.constant 2 : index
    %c0_472 = arith.constant 0 : index
    %c0_473 = arith.constant 0 : index
    %564 = vector.load %arg3[%c1_470, %c2_471, %c0_472, %c0_473] : memref<2x4x32x8xf32, #tpu.memory_space<vmem>>, vector<1x1x32x8xf32>
    %565 = vector.shape_cast %564 : vector<1x1x32x8xf32> to vector<32x8xf32>
    %cst_474 = arith.constant dense<0.000000e+00> : vector<8x8xf32>
    %566 = tpu.matmul %479, %565, %cst_474 {dimension_numbers = #tpu.dot_dimension_numbers<[1], [0], [0], [1], [0, 0, 1, 1], [], []>} : vector<8x32xf32>, vector<32x8xf32>, vector<8x8xf32> -> vector<8x8xf32>
    %c1_475 = arith.constant 1 : index
    %c2_476 = arith.constant 2 : index
    %c0_477 = arith.constant 0 : index
    %c0_478 = arith.constant 0 : index
    %567 = vector.load %arg6[%c1_475, %c2_476, %c0_477, %c0_478] : memref<2x4x1x8xf32, #tpu.memory_space<vmem>>, vector<1x1x1x8xf32>
    %568 = vector.shape_cast %567 : vector<1x1x1x8xf32> to vector<1x8xf32>
    %569 = vector.broadcast %568 : vector<1x8xf32> to vector<8x8xf32>
    %570 = arith.addf %566, %569 : vector<8x8xf32>
    %c1_479 = arith.constant 1 : index
    %c2_480 = arith.constant 2 : index
    %c0_481 = arith.constant 0 : index
    %c0_482 = arith.constant 0 : index
    %571 = vector.load %arg4[%c1_479, %c2_480, %c0_481, %c0_482] : memref<2x4x32x8xf32, #tpu.memory_space<vmem>>, vector<1x1x32x8xf32>
    %572 = vector.shape_cast %571 : vector<1x1x32x8xf32> to vector<32x8xf32>
    %cst_483 = arith.constant dense<0.000000e+00> : vector<8x8xf32>
    %573 = tpu.matmul %479, %572, %cst_483 {dimension_numbers = #tpu.dot_dimension_numbers<[1], [0], [0], [1], [0, 0, 1, 1], [], []>} : vector<8x32xf32>, vector<32x8xf32>, vector<8x8xf32> -> vector<8x8xf32>
    %c1_484 = arith.constant 1 : index
    %c2_485 = arith.constant 2 : index
    %c0_486 = arith.constant 0 : index
    %c0_487 = arith.constant 0 : index
    %574 = vector.load %arg7[%c1_484, %c2_485, %c0_486, %c0_487] : memref<2x4x1x8xf32, #tpu.memory_space<vmem>>, vector<1x1x1x8xf32>
    %575 = vector.shape_cast %574 : vector<1x1x1x8xf32> to vector<1x8xf32>
    %576 = vector.broadcast %575 : vector<1x8xf32> to vector<8x8xf32>
    %577 = arith.addf %573, %576 : vector<8x8xf32>
    %cst_488 = arith.constant dense<0.000000e+00> : vector<8x8xf32>
    %578 = tpu.matmul %563, %570, %cst_488 {dimension_numbers = #tpu.dot_dimension_numbers<[1], [1], [0], [0], [0, 0, 1, 0], [], []>} : vector<8x8xf32>, vector<8x8xf32>, vector<8x8xf32> -> vector<8x8xf32>
    %cst_489 = arith.constant 0.353553385 : f32
    %579 = vector.broadcast %cst_489 : f32 to vector<8x8xf32>
    %580 = arith.mulf %578, %579 : vector<8x8xf32>
    %cst_490 = arith.constant dense<0xFF800000> : vector<8xf32>
    %581 = vector.multi_reduction <maximumf>, %580, %cst_490 [1] : vector<8x8xf32> to vector<8xf32>
    %582 = vector.shape_cast %581 : vector<8xf32> to vector<8x1xf32>
    %583 = vector.broadcast %582 : vector<8x1xf32> to vector<8x8xf32>
    %584 = arith.subf %580, %583 : vector<8x8xf32>
    %585 = math.exp %584 : vector<8x8xf32>
    %cst_491 = arith.constant dense<0.000000e+00> : vector<8xf32>
    %586 = vector.multi_reduction <add>, %585, %cst_491 [1] : vector<8x8xf32> to vector<8xf32>
    %587 = vector.shape_cast %586 : vector<8xf32> to vector<8x1xf32>
    %588 = tpu.reciprocal %587 {approx = true} : vector<8x1xf32> -> vector<8x1xf32>
    %589 = vector.broadcast %588 : vector<8x1xf32> to vector<8x8xf32>
    %590 = arith.mulf %585, %589 : vector<8x8xf32>
    %cst_492 = arith.constant dense<0.000000e+00> : vector<8x8xf32>
    %591 = tpu.matmul %590, %577, %cst_492 {dimension_numbers = #tpu.dot_dimension_numbers<[1], [0], [0], [1], [0, 0, 1, 1], [], []>} : vector<8x8xf32>, vector<8x8xf32>, vector<8x8xf32> -> vector<8x8xf32>
    %c1_493 = arith.constant 1 : index
    %c2_494 = arith.constant 2 : index
    %c0_495 = arith.constant 0 : index
    %c0_496 = arith.constant 0 : index
    %592 = vector.load %arg8[%c1_493, %c2_494, %c0_495, %c0_496] : memref<2x4x8x32xf32, #tpu.memory_space<vmem>>, vector<1x1x8x32xf32>
    %593 = vector.shape_cast %592 : vector<1x1x8x32xf32> to vector<8x32xf32>
    %cst_497 = arith.constant dense<0.000000e+00> : vector<8x32xf32>
    %594 = tpu.matmul %591, %593, %cst_497 {dimension_numbers = #tpu.dot_dimension_numbers<[1], [0], [0], [1], [0, 0, 1, 1], [], []>} : vector<8x8xf32>, vector<8x32xf32>, vector<8x32xf32> -> vector<8x32xf32>
    %595 = arith.addf %556, %594 : vector<8x32xf32>
    %c1_498 = arith.constant 1 : index
    %c3_499 = arith.constant 3 : index
    %c0_500 = arith.constant 0 : index
    %c0_501 = arith.constant 0 : index
    %596 = vector.load %arg2[%c1_498, %c3_499, %c0_500, %c0_501] : memref<2x4x32x8xf32, #tpu.memory_space<vmem>>, vector<1x1x32x8xf32>
    %597 = vector.shape_cast %596 : vector<1x1x32x8xf32> to vector<32x8xf32>
    %cst_502 = arith.constant dense<0.000000e+00> : vector<8x8xf32>
    %598 = tpu.matmul %479, %597, %cst_502 {dimension_numbers = #tpu.dot_dimension_numbers<[1], [0], [0], [1], [0, 0, 1, 1], [], []>} : vector<8x32xf32>, vector<32x8xf32>, vector<8x8xf32> -> vector<8x8xf32>
    %c1_503 = arith.constant 1 : index
    %c3_504 = arith.constant 3 : index
    %c0_505 = arith.constant 0 : index
    %c0_506 = arith.constant 0 : index
    %599 = vector.load %arg5[%c1_503, %c3_504, %c0_505, %c0_506] : memref<2x4x1x8xf32, #tpu.memory_space<vmem>>, vector<1x1x1x8xf32>
    %600 = vector.shape_cast %599 : vector<1x1x1x8xf32> to vector<1x8xf32>
    %601 = vector.broadcast %600 : vector<1x8xf32> to vector<8x8xf32>
    %602 = arith.addf %598, %601 : vector<8x8xf32>
    %c1_507 = arith.constant 1 : index
    %c3_508 = arith.constant 3 : index
    %c0_509 = arith.constant 0 : index
    %c0_510 = arith.constant 0 : index
    %603 = vector.load %arg3[%c1_507, %c3_508, %c0_509, %c0_510] : memref<2x4x32x8xf32, #tpu.memory_space<vmem>>, vector<1x1x32x8xf32>
    %604 = vector.shape_cast %603 : vector<1x1x32x8xf32> to vector<32x8xf32>
    %cst_511 = arith.constant dense<0.000000e+00> : vector<8x8xf32>
    %605 = tpu.matmul %479, %604, %cst_511 {dimension_numbers = #tpu.dot_dimension_numbers<[1], [0], [0], [1], [0, 0, 1, 1], [], []>} : vector<8x32xf32>, vector<32x8xf32>, vector<8x8xf32> -> vector<8x8xf32>
    %c1_512 = arith.constant 1 : index
    %c3_513 = arith.constant 3 : index
    %c0_514 = arith.constant 0 : index
    %c0_515 = arith.constant 0 : index
    %606 = vector.load %arg6[%c1_512, %c3_513, %c0_514, %c0_515] : memref<2x4x1x8xf32, #tpu.memory_space<vmem>>, vector<1x1x1x8xf32>
    %607 = vector.shape_cast %606 : vector<1x1x1x8xf32> to vector<1x8xf32>
    %608 = vector.broadcast %607 : vector<1x8xf32> to vector<8x8xf32>
    %609 = arith.addf %605, %608 : vector<8x8xf32>
    %c1_516 = arith.constant 1 : index
    %c3_517 = arith.constant 3 : index
    %c0_518 = arith.constant 0 : index
    %c0_519 = arith.constant 0 : index
    %610 = vector.load %arg4[%c1_516, %c3_517, %c0_518, %c0_519] : memref<2x4x32x8xf32, #tpu.memory_space<vmem>>, vector<1x1x32x8xf32>
    %611 = vector.shape_cast %610 : vector<1x1x32x8xf32> to vector<32x8xf32>
    %cst_520 = arith.constant dense<0.000000e+00> : vector<8x8xf32>
    %612 = tpu.matmul %479, %611, %cst_520 {dimension_numbers = #tpu.dot_dimension_numbers<[1], [0], [0], [1], [0, 0, 1, 1], [], []>} : vector<8x32xf32>, vector<32x8xf32>, vector<8x8xf32> -> vector<8x8xf32>
    %c1_521 = arith.constant 1 : index
    %c3_522 = arith.constant 3 : index
    %c0_523 = arith.constant 0 : index
    %c0_524 = arith.constant 0 : index
    %613 = vector.load %arg7[%c1_521, %c3_522, %c0_523, %c0_524] : memref<2x4x1x8xf32, #tpu.memory_space<vmem>>, vector<1x1x1x8xf32>
    %614 = vector.shape_cast %613 : vector<1x1x1x8xf32> to vector<1x8xf32>
    %615 = vector.broadcast %614 : vector<1x8xf32> to vector<8x8xf32>
    %616 = arith.addf %612, %615 : vector<8x8xf32>
    %cst_525 = arith.constant dense<0.000000e+00> : vector<8x8xf32>
    %617 = tpu.matmul %602, %609, %cst_525 {dimension_numbers = #tpu.dot_dimension_numbers<[1], [1], [0], [0], [0, 0, 1, 0], [], []>} : vector<8x8xf32>, vector<8x8xf32>, vector<8x8xf32> -> vector<8x8xf32>
    %cst_526 = arith.constant 0.353553385 : f32
    %618 = vector.broadcast %cst_526 : f32 to vector<8x8xf32>
    %619 = arith.mulf %617, %618 : vector<8x8xf32>
    %cst_527 = arith.constant dense<0xFF800000> : vector<8xf32>
    %620 = vector.multi_reduction <maximumf>, %619, %cst_527 [1] : vector<8x8xf32> to vector<8xf32>
    %621 = vector.shape_cast %620 : vector<8xf32> to vector<8x1xf32>
    %622 = vector.broadcast %621 : vector<8x1xf32> to vector<8x8xf32>
    %623 = arith.subf %619, %622 : vector<8x8xf32>
    %624 = math.exp %623 : vector<8x8xf32>
    %cst_528 = arith.constant dense<0.000000e+00> : vector<8xf32>
    %625 = vector.multi_reduction <add>, %624, %cst_528 [1] : vector<8x8xf32> to vector<8xf32>
    %626 = vector.shape_cast %625 : vector<8xf32> to vector<8x1xf32>
    %627 = tpu.reciprocal %626 {approx = true} : vector<8x1xf32> -> vector<8x1xf32>
    %628 = vector.broadcast %627 : vector<8x1xf32> to vector<8x8xf32>
    %629 = arith.mulf %624, %628 : vector<8x8xf32>
    %cst_529 = arith.constant dense<0.000000e+00> : vector<8x8xf32>
    %630 = tpu.matmul %629, %616, %cst_529 {dimension_numbers = #tpu.dot_dimension_numbers<[1], [0], [0], [1], [0, 0, 1, 1], [], []>} : vector<8x8xf32>, vector<8x8xf32>, vector<8x8xf32> -> vector<8x8xf32>
    %c1_530 = arith.constant 1 : index
    %c3_531 = arith.constant 3 : index
    %c0_532 = arith.constant 0 : index
    %c0_533 = arith.constant 0 : index
    %631 = vector.load %arg8[%c1_530, %c3_531, %c0_532, %c0_533] : memref<2x4x8x32xf32, #tpu.memory_space<vmem>>, vector<1x1x8x32xf32>
    %632 = vector.shape_cast %631 : vector<1x1x8x32xf32> to vector<8x32xf32>
    %cst_534 = arith.constant dense<0.000000e+00> : vector<8x32xf32>
    %633 = tpu.matmul %630, %632, %cst_534 {dimension_numbers = #tpu.dot_dimension_numbers<[1], [0], [0], [1], [0, 0, 1, 1], [], []>} : vector<8x8xf32>, vector<8x32xf32>, vector<8x32xf32> -> vector<8x32xf32>
    %634 = arith.addf %595, %633 : vector<8x32xf32>
    %c1_535 = arith.constant 1 : index
    %c0_536 = arith.constant 0 : index
    %c0_537 = arith.constant 0 : index
    %635 = vector.load %arg9[%c1_535, %c0_536, %c0_537] : memref<2x1x32xf32, #tpu.memory_space<vmem>>, vector<1x1x32xf32>
    %636 = vector.shape_cast %635 : vector<1x1x32xf32> to vector<1x32xf32>
    %637 = vector.broadcast %636 : vector<1x32xf32> to vector<8x32xf32>
    %638 = arith.addf %634, %637 : vector<8x32xf32>
    %639 = arith.addf %479, %638 : vector<8x32xf32>
    %c1_538 = arith.constant 1 : index
    %c0_539 = arith.constant 0 : index
    %c0_540 = arith.constant 0 : index
    %640 = vector.load %arg10[%c1_538, %c0_539, %c0_540] : memref<2x1x32xf32, #tpu.memory_space<vmem>>, vector<1x1x32xf32>
    %641 = vector.shape_cast %640 : vector<1x1x32xf32> to vector<1x32xf32>
    %c1_541 = arith.constant 1 : index
    %c0_542 = arith.constant 0 : index
    %c0_543 = arith.constant 0 : index
    %642 = vector.load %arg11[%c1_541, %c0_542, %c0_543] : memref<2x1x32xf32, #tpu.memory_space<vmem>>, vector<1x1x32xf32>
    %643 = vector.shape_cast %642 : vector<1x1x32xf32> to vector<1x32xf32>
    %cst_544 = arith.constant dense<0.000000e+00> : vector<8xf32>
    %644 = vector.multi_reduction <add>, %639, %cst_544 [1] : vector<8x32xf32> to vector<8xf32>
    %645 = vector.shape_cast %644 : vector<8xf32> to vector<8x1xf32>
    %cst_545 = arith.constant 3.200000e+01 : f32
    %646 = vector.broadcast %cst_545 : f32 to vector<8x1xf32>
    %647 = arith.divf %645, %646 : vector<8x1xf32>
    %648 = vector.broadcast %647 : vector<8x1xf32> to vector<8x32xf32>
    %649 = arith.subf %639, %648 : vector<8x32xf32>
    %650 = vector.broadcast %647 : vector<8x1xf32> to vector<8x32xf32>
    %651 = arith.subf %639, %650 : vector<8x32xf32>
    %652 = arith.mulf %649, %651 : vector<8x32xf32>
    %cst_546 = arith.constant dense<0.000000e+00> : vector<8xf32>
    %653 = vector.multi_reduction <add>, %652, %cst_546 [1] : vector<8x32xf32> to vector<8xf32>
    %654 = vector.shape_cast %653 : vector<8xf32> to vector<8x1xf32>
    %cst_547 = arith.constant 3.200000e+01 : f32
    %655 = vector.broadcast %cst_547 : f32 to vector<8x1xf32>
    %656 = arith.divf %654, %655 : vector<8x1xf32>
    %657 = vector.broadcast %647 : vector<8x1xf32> to vector<8x32xf32>
    %658 = arith.subf %639, %657 : vector<8x32xf32>
    %cst_548 = arith.constant 9.99999974E-6 : f32
    %659 = vector.broadcast %cst_548 : f32 to vector<8x1xf32>
    %660 = arith.addf %656, %659 : vector<8x1xf32>
    %661 = math.rsqrt %660 : vector<8x1xf32>
    %662 = vector.broadcast %661 : vector<8x1xf32> to vector<8x32xf32>
    %663 = arith.mulf %658, %662 : vector<8x32xf32>
    %664 = vector.broadcast %641 : vector<1x32xf32> to vector<8x32xf32>
    %665 = arith.mulf %663, %664 : vector<8x32xf32>
    %666 = vector.broadcast %643 : vector<1x32xf32> to vector<8x32xf32>
    %667 = arith.addf %665, %666 : vector<8x32xf32>
    %c1_549 = arith.constant 1 : index
    %c0_550 = arith.constant 0 : index
    %c0_551 = arith.constant 0 : index
    %668 = vector.load %arg12[%c1_549, %c0_550, %c0_551] : memref<2x32x32xf32, #tpu.memory_space<vmem>>, vector<1x32x32xf32>
    %669 = vector.shape_cast %668 : vector<1x32x32xf32> to vector<32x32xf32>
    %cst_552 = arith.constant dense<0.000000e+00> : vector<8x32xf32>
    %670 = tpu.matmul %667, %669, %cst_552 {dimension_numbers = #tpu.dot_dimension_numbers<[1], [0], [0], [1], [0, 0, 1, 1], [], []>} : vector<8x32xf32>, vector<32x32xf32>, vector<8x32xf32> -> vector<8x32xf32>
    %c1_553 = arith.constant 1 : index
    %c0_554 = arith.constant 0 : index
    %c0_555 = arith.constant 0 : index
    %671 = vector.load %arg13[%c1_553, %c0_554, %c0_555] : memref<2x1x32xf32, #tpu.memory_space<vmem>>, vector<1x1x32xf32>
    %672 = vector.shape_cast %671 : vector<1x1x32xf32> to vector<1x32xf32>
    %673 = vector.broadcast %672 : vector<1x32xf32> to vector<8x32xf32>
    %674 = arith.addf %670, %673 : vector<8x32xf32>
    %cst_556 = arith.constant 0.000000e+00 : f32
    %675 = vector.broadcast %cst_556 : f32 to vector<8x32xf32>
    %676 = arith.maximumf %674, %675 : vector<8x32xf32>
    %c1_557 = arith.constant 1 : index
    %c0_558 = arith.constant 0 : index
    %c0_559 = arith.constant 0 : index
    %677 = vector.load %arg14[%c1_557, %c0_558, %c0_559] : memref<2x32x32xf32, #tpu.memory_space<vmem>>, vector<1x32x32xf32>
    %678 = vector.shape_cast %677 : vector<1x32x32xf32> to vector<32x32xf32>
    %cst_560 = arith.constant dense<0.000000e+00> : vector<8x32xf32>
    %679 = tpu.matmul %676, %678, %cst_560 {dimension_numbers = #tpu.dot_dimension_numbers<[1], [0], [0], [1], [0, 0, 1, 1], [], []>} : vector<8x32xf32>, vector<32x32xf32>, vector<8x32xf32> -> vector<8x32xf32>
    %c1_561 = arith.constant 1 : index
    %c0_562 = arith.constant 0 : index
    %c0_563 = arith.constant 0 : index
    %680 = vector.load %arg15[%c1_561, %c0_562, %c0_563] : memref<2x1x32xf32, #tpu.memory_space<vmem>>, vector<1x1x32xf32>
    %681 = vector.shape_cast %680 : vector<1x1x32xf32> to vector<1x32xf32>
    %682 = vector.broadcast %681 : vector<1x32xf32> to vector<8x32xf32>
    %683 = arith.addf %679, %682 : vector<8x32xf32>
    %684 = arith.addf %667, %683 : vector<8x32xf32>
    %c1_564 = arith.constant 1 : index
    %c0_565 = arith.constant 0 : index
    %c0_566 = arith.constant 0 : index
    %685 = vector.load %arg16[%c1_564, %c0_565, %c0_566] : memref<2x1x32xf32, #tpu.memory_space<vmem>>, vector<1x1x32xf32>
    %686 = vector.shape_cast %685 : vector<1x1x32xf32> to vector<1x32xf32>
    %c1_567 = arith.constant 1 : index
    %c0_568 = arith.constant 0 : index
    %c0_569 = arith.constant 0 : index
    %687 = vector.load %arg17[%c1_567, %c0_568, %c0_569] : memref<2x1x32xf32, #tpu.memory_space<vmem>>, vector<1x1x32xf32>
    %688 = vector.shape_cast %687 : vector<1x1x32xf32> to vector<1x32xf32>
    %cst_570 = arith.constant dense<0.000000e+00> : vector<8xf32>
    %689 = vector.multi_reduction <add>, %684, %cst_570 [1] : vector<8x32xf32> to vector<8xf32>
    %690 = vector.shape_cast %689 : vector<8xf32> to vector<8x1xf32>
    %cst_571 = arith.constant 3.200000e+01 : f32
    %691 = vector.broadcast %cst_571 : f32 to vector<8x1xf32>
    %692 = arith.divf %690, %691 : vector<8x1xf32>
    %693 = vector.broadcast %692 : vector<8x1xf32> to vector<8x32xf32>
    %694 = arith.subf %684, %693 : vector<8x32xf32>
    %695 = vector.broadcast %692 : vector<8x1xf32> to vector<8x32xf32>
    %696 = arith.subf %684, %695 : vector<8x32xf32>
    %697 = arith.mulf %694, %696 : vector<8x32xf32>
    %cst_572 = arith.constant dense<0.000000e+00> : vector<8xf32>
    %698 = vector.multi_reduction <add>, %697, %cst_572 [1] : vector<8x32xf32> to vector<8xf32>
    %699 = vector.shape_cast %698 : vector<8xf32> to vector<8x1xf32>
    %cst_573 = arith.constant 3.200000e+01 : f32
    %700 = vector.broadcast %cst_573 : f32 to vector<8x1xf32>
    %701 = arith.divf %699, %700 : vector<8x1xf32>
    %702 = vector.broadcast %692 : vector<8x1xf32> to vector<8x32xf32>
    %703 = arith.subf %684, %702 : vector<8x32xf32>
    %cst_574 = arith.constant 9.99999974E-6 : f32
    %704 = vector.broadcast %cst_574 : f32 to vector<8x1xf32>
    %705 = arith.addf %701, %704 : vector<8x1xf32>
    %706 = math.rsqrt %705 : vector<8x1xf32>
    %707 = vector.broadcast %706 : vector<8x1xf32> to vector<8x32xf32>
    %708 = arith.mulf %703, %707 : vector<8x32xf32>
    %709 = vector.broadcast %686 : vector<1x32xf32> to vector<8x32xf32>
    %710 = arith.mulf %708, %709 : vector<8x32xf32>
    %711 = vector.broadcast %688 : vector<1x32xf32> to vector<8x32xf32>
    %712 = arith.addf %710, %711 : vector<8x32xf32>
    %cst_575 = arith.constant dense<0.000000e+00> : vector<32xf32>
    %713 = vector.multi_reduction <add>, %712, %cst_575 [0] : vector<8x32xf32> to vector<32xf32>
    %714 = vector.shape_cast %713 : vector<32xf32> to vector<1x32xf32>
    %cst_576 = arith.constant 8.000000e+00 : f32
    %715 = vector.broadcast %cst_576 : f32 to vector<1x32xf32>
    %716 = arith.divf %714, %715 : vector<1x32xf32>
    %c0_577 = arith.constant 0 : index
    %c3_578 = arith.constant 3 : index
    %c0_579 = arith.constant 0 : index
    %c0_580 = arith.constant 0 : index
    %717 = vector.load %arg1[%c0_577, %c3_578, %c0_579, %c0_580] : memref<1x4x8x32xf32, #tpu.memory_space<vmem>>, vector<1x1x8x32xf32>
    %718 = vector.shape_cast %717 : vector<1x1x8x32xf32> to vector<8x32xf32>
    %c1_581 = arith.constant 1 : index
    %c0_582 = arith.constant 0 : index
    %c0_583 = arith.constant 0 : index
    %c0_584 = arith.constant 0 : index
    %719 = vector.load %arg2[%c1_581, %c0_582, %c0_583, %c0_584] : memref<2x4x32x8xf32, #tpu.memory_space<vmem>>, vector<1x1x32x8xf32>
    %720 = vector.shape_cast %719 : vector<1x1x32x8xf32> to vector<32x8xf32>
    %cst_585 = arith.constant dense<0.000000e+00> : vector<8x8xf32>
    %721 = tpu.matmul %718, %720, %cst_585 {dimension_numbers = #tpu.dot_dimension_numbers<[1], [0], [0], [1], [0, 0, 1, 1], [], []>} : vector<8x32xf32>, vector<32x8xf32>, vector<8x8xf32> -> vector<8x8xf32>
    %c1_586 = arith.constant 1 : index
    %c0_587 = arith.constant 0 : index
    %c0_588 = arith.constant 0 : index
    %c0_589 = arith.constant 0 : index
    %722 = vector.load %arg5[%c1_586, %c0_587, %c0_588, %c0_589] : memref<2x4x1x8xf32, #tpu.memory_space<vmem>>, vector<1x1x1x8xf32>
    %723 = vector.shape_cast %722 : vector<1x1x1x8xf32> to vector<1x8xf32>
    %724 = vector.broadcast %723 : vector<1x8xf32> to vector<8x8xf32>
    %725 = arith.addf %721, %724 : vector<8x8xf32>
    %c1_590 = arith.constant 1 : index
    %c0_591 = arith.constant 0 : index
    %c0_592 = arith.constant 0 : index
    %c0_593 = arith.constant 0 : index
    %726 = vector.load %arg3[%c1_590, %c0_591, %c0_592, %c0_593] : memref<2x4x32x8xf32, #tpu.memory_space<vmem>>, vector<1x1x32x8xf32>
    %727 = vector.shape_cast %726 : vector<1x1x32x8xf32> to vector<32x8xf32>
    %cst_594 = arith.constant dense<0.000000e+00> : vector<8x8xf32>
    %728 = tpu.matmul %718, %727, %cst_594 {dimension_numbers = #tpu.dot_dimension_numbers<[1], [0], [0], [1], [0, 0, 1, 1], [], []>} : vector<8x32xf32>, vector<32x8xf32>, vector<8x8xf32> -> vector<8x8xf32>
    %c1_595 = arith.constant 1 : index
    %c0_596 = arith.constant 0 : index
    %c0_597 = arith.constant 0 : index
    %c0_598 = arith.constant 0 : index
    %729 = vector.load %arg6[%c1_595, %c0_596, %c0_597, %c0_598] : memref<2x4x1x8xf32, #tpu.memory_space<vmem>>, vector<1x1x1x8xf32>
    %730 = vector.shape_cast %729 : vector<1x1x1x8xf32> to vector<1x8xf32>
    %731 = vector.broadcast %730 : vector<1x8xf32> to vector<8x8xf32>
    %732 = arith.addf %728, %731 : vector<8x8xf32>
    %c1_599 = arith.constant 1 : index
    %c0_600 = arith.constant 0 : index
    %c0_601 = arith.constant 0 : index
    %c0_602 = arith.constant 0 : index
    %733 = vector.load %arg4[%c1_599, %c0_600, %c0_601, %c0_602] : memref<2x4x32x8xf32, #tpu.memory_space<vmem>>, vector<1x1x32x8xf32>
    %734 = vector.shape_cast %733 : vector<1x1x32x8xf32> to vector<32x8xf32>
    %cst_603 = arith.constant dense<0.000000e+00> : vector<8x8xf32>
    %735 = tpu.matmul %718, %734, %cst_603 {dimension_numbers = #tpu.dot_dimension_numbers<[1], [0], [0], [1], [0, 0, 1, 1], [], []>} : vector<8x32xf32>, vector<32x8xf32>, vector<8x8xf32> -> vector<8x8xf32>
    %c1_604 = arith.constant 1 : index
    %c0_605 = arith.constant 0 : index
    %c0_606 = arith.constant 0 : index
    %c0_607 = arith.constant 0 : index
    %736 = vector.load %arg7[%c1_604, %c0_605, %c0_606, %c0_607] : memref<2x4x1x8xf32, #tpu.memory_space<vmem>>, vector<1x1x1x8xf32>
    %737 = vector.shape_cast %736 : vector<1x1x1x8xf32> to vector<1x8xf32>
    %738 = vector.broadcast %737 : vector<1x8xf32> to vector<8x8xf32>
    %739 = arith.addf %735, %738 : vector<8x8xf32>
    %cst_608 = arith.constant dense<0.000000e+00> : vector<8x8xf32>
    %740 = tpu.matmul %725, %732, %cst_608 {dimension_numbers = #tpu.dot_dimension_numbers<[1], [1], [0], [0], [0, 0, 1, 0], [], []>} : vector<8x8xf32>, vector<8x8xf32>, vector<8x8xf32> -> vector<8x8xf32>
    %cst_609 = arith.constant 0.353553385 : f32
    %741 = vector.broadcast %cst_609 : f32 to vector<8x8xf32>
    %742 = arith.mulf %740, %741 : vector<8x8xf32>
    %cst_610 = arith.constant dense<0xFF800000> : vector<8xf32>
    %743 = vector.multi_reduction <maximumf>, %742, %cst_610 [1] : vector<8x8xf32> to vector<8xf32>
    %744 = vector.shape_cast %743 : vector<8xf32> to vector<8x1xf32>
    %745 = vector.broadcast %744 : vector<8x1xf32> to vector<8x8xf32>
    %746 = arith.subf %742, %745 : vector<8x8xf32>
    %747 = math.exp %746 : vector<8x8xf32>
    %cst_611 = arith.constant dense<0.000000e+00> : vector<8xf32>
    %748 = vector.multi_reduction <add>, %747, %cst_611 [1] : vector<8x8xf32> to vector<8xf32>
    %749 = vector.shape_cast %748 : vector<8xf32> to vector<8x1xf32>
    %750 = tpu.reciprocal %749 {approx = true} : vector<8x1xf32> -> vector<8x1xf32>
    %751 = vector.broadcast %750 : vector<8x1xf32> to vector<8x8xf32>
    %752 = arith.mulf %747, %751 : vector<8x8xf32>
    %cst_612 = arith.constant dense<0.000000e+00> : vector<8x8xf32>
    %753 = tpu.matmul %752, %739, %cst_612 {dimension_numbers = #tpu.dot_dimension_numbers<[1], [0], [0], [1], [0, 0, 1, 1], [], []>} : vector<8x8xf32>, vector<8x8xf32>, vector<8x8xf32> -> vector<8x8xf32>
    %c1_613 = arith.constant 1 : index
    %c0_614 = arith.constant 0 : index
    %c0_615 = arith.constant 0 : index
    %c0_616 = arith.constant 0 : index
    %754 = vector.load %arg8[%c1_613, %c0_614, %c0_615, %c0_616] : memref<2x4x8x32xf32, #tpu.memory_space<vmem>>, vector<1x1x8x32xf32>
    %755 = vector.shape_cast %754 : vector<1x1x8x32xf32> to vector<8x32xf32>
    %cst_617 = arith.constant dense<0.000000e+00> : vector<8x32xf32>
    %756 = tpu.matmul %753, %755, %cst_617 {dimension_numbers = #tpu.dot_dimension_numbers<[1], [0], [0], [1], [0, 0, 1, 1], [], []>} : vector<8x8xf32>, vector<8x32xf32>, vector<8x32xf32> -> vector<8x32xf32>
    %c1_618 = arith.constant 1 : index
    %c1_619 = arith.constant 1 : index
    %c0_620 = arith.constant 0 : index
    %c0_621 = arith.constant 0 : index
    %757 = vector.load %arg2[%c1_618, %c1_619, %c0_620, %c0_621] : memref<2x4x32x8xf32, #tpu.memory_space<vmem>>, vector<1x1x32x8xf32>
    %758 = vector.shape_cast %757 : vector<1x1x32x8xf32> to vector<32x8xf32>
    %cst_622 = arith.constant dense<0.000000e+00> : vector<8x8xf32>
    %759 = tpu.matmul %718, %758, %cst_622 {dimension_numbers = #tpu.dot_dimension_numbers<[1], [0], [0], [1], [0, 0, 1, 1], [], []>} : vector<8x32xf32>, vector<32x8xf32>, vector<8x8xf32> -> vector<8x8xf32>
    %c1_623 = arith.constant 1 : index
    %c1_624 = arith.constant 1 : index
    %c0_625 = arith.constant 0 : index
    %c0_626 = arith.constant 0 : index
    %760 = vector.load %arg5[%c1_623, %c1_624, %c0_625, %c0_626] : memref<2x4x1x8xf32, #tpu.memory_space<vmem>>, vector<1x1x1x8xf32>
    %761 = vector.shape_cast %760 : vector<1x1x1x8xf32> to vector<1x8xf32>
    %762 = vector.broadcast %761 : vector<1x8xf32> to vector<8x8xf32>
    %763 = arith.addf %759, %762 : vector<8x8xf32>
    %c1_627 = arith.constant 1 : index
    %c1_628 = arith.constant 1 : index
    %c0_629 = arith.constant 0 : index
    %c0_630 = arith.constant 0 : index
    %764 = vector.load %arg3[%c1_627, %c1_628, %c0_629, %c0_630] : memref<2x4x32x8xf32, #tpu.memory_space<vmem>>, vector<1x1x32x8xf32>
    %765 = vector.shape_cast %764 : vector<1x1x32x8xf32> to vector<32x8xf32>
    %cst_631 = arith.constant dense<0.000000e+00> : vector<8x8xf32>
    %766 = tpu.matmul %718, %765, %cst_631 {dimension_numbers = #tpu.dot_dimension_numbers<[1], [0], [0], [1], [0, 0, 1, 1], [], []>} : vector<8x32xf32>, vector<32x8xf32>, vector<8x8xf32> -> vector<8x8xf32>
    %c1_632 = arith.constant 1 : index
    %c1_633 = arith.constant 1 : index
    %c0_634 = arith.constant 0 : index
    %c0_635 = arith.constant 0 : index
    %767 = vector.load %arg6[%c1_632, %c1_633, %c0_634, %c0_635] : memref<2x4x1x8xf32, #tpu.memory_space<vmem>>, vector<1x1x1x8xf32>
    %768 = vector.shape_cast %767 : vector<1x1x1x8xf32> to vector<1x8xf32>
    %769 = vector.broadcast %768 : vector<1x8xf32> to vector<8x8xf32>
    %770 = arith.addf %766, %769 : vector<8x8xf32>
    %c1_636 = arith.constant 1 : index
    %c1_637 = arith.constant 1 : index
    %c0_638 = arith.constant 0 : index
    %c0_639 = arith.constant 0 : index
    %771 = vector.load %arg4[%c1_636, %c1_637, %c0_638, %c0_639] : memref<2x4x32x8xf32, #tpu.memory_space<vmem>>, vector<1x1x32x8xf32>
    %772 = vector.shape_cast %771 : vector<1x1x32x8xf32> to vector<32x8xf32>
    %cst_640 = arith.constant dense<0.000000e+00> : vector<8x8xf32>
    %773 = tpu.matmul %718, %772, %cst_640 {dimension_numbers = #tpu.dot_dimension_numbers<[1], [0], [0], [1], [0, 0, 1, 1], [], []>} : vector<8x32xf32>, vector<32x8xf32>, vector<8x8xf32> -> vector<8x8xf32>
    %c1_641 = arith.constant 1 : index
    %c1_642 = arith.constant 1 : index
    %c0_643 = arith.constant 0 : index
    %c0_644 = arith.constant 0 : index
    %774 = vector.load %arg7[%c1_641, %c1_642, %c0_643, %c0_644] : memref<2x4x1x8xf32, #tpu.memory_space<vmem>>, vector<1x1x1x8xf32>
    %775 = vector.shape_cast %774 : vector<1x1x1x8xf32> to vector<1x8xf32>
    %776 = vector.broadcast %775 : vector<1x8xf32> to vector<8x8xf32>
    %777 = arith.addf %773, %776 : vector<8x8xf32>
    %cst_645 = arith.constant dense<0.000000e+00> : vector<8x8xf32>
    %778 = tpu.matmul %763, %770, %cst_645 {dimension_numbers = #tpu.dot_dimension_numbers<[1], [1], [0], [0], [0, 0, 1, 0], [], []>} : vector<8x8xf32>, vector<8x8xf32>, vector<8x8xf32> -> vector<8x8xf32>
    %cst_646 = arith.constant 0.353553385 : f32
    %779 = vector.broadcast %cst_646 : f32 to vector<8x8xf32>
    %780 = arith.mulf %778, %779 : vector<8x8xf32>
    %cst_647 = arith.constant dense<0xFF800000> : vector<8xf32>
    %781 = vector.multi_reduction <maximumf>, %780, %cst_647 [1] : vector<8x8xf32> to vector<8xf32>
    %782 = vector.shape_cast %781 : vector<8xf32> to vector<8x1xf32>
    %783 = vector.broadcast %782 : vector<8x1xf32> to vector<8x8xf32>
    %784 = arith.subf %780, %783 : vector<8x8xf32>
    %785 = math.exp %784 : vector<8x8xf32>
    %cst_648 = arith.constant dense<0.000000e+00> : vector<8xf32>
    %786 = vector.multi_reduction <add>, %785, %cst_648 [1] : vector<8x8xf32> to vector<8xf32>
    %787 = vector.shape_cast %786 : vector<8xf32> to vector<8x1xf32>
    %788 = tpu.reciprocal %787 {approx = true} : vector<8x1xf32> -> vector<8x1xf32>
    %789 = vector.broadcast %788 : vector<8x1xf32> to vector<8x8xf32>
    %790 = arith.mulf %785, %789 : vector<8x8xf32>
    %cst_649 = arith.constant dense<0.000000e+00> : vector<8x8xf32>
    %791 = tpu.matmul %790, %777, %cst_649 {dimension_numbers = #tpu.dot_dimension_numbers<[1], [0], [0], [1], [0, 0, 1, 1], [], []>} : vector<8x8xf32>, vector<8x8xf32>, vector<8x8xf32> -> vector<8x8xf32>
    %c1_650 = arith.constant 1 : index
    %c1_651 = arith.constant 1 : index
    %c0_652 = arith.constant 0 : index
    %c0_653 = arith.constant 0 : index
    %792 = vector.load %arg8[%c1_650, %c1_651, %c0_652, %c0_653] : memref<2x4x8x32xf32, #tpu.memory_space<vmem>>, vector<1x1x8x32xf32>
    %793 = vector.shape_cast %792 : vector<1x1x8x32xf32> to vector<8x32xf32>
    %cst_654 = arith.constant dense<0.000000e+00> : vector<8x32xf32>
    %794 = tpu.matmul %791, %793, %cst_654 {dimension_numbers = #tpu.dot_dimension_numbers<[1], [0], [0], [1], [0, 0, 1, 1], [], []>} : vector<8x8xf32>, vector<8x32xf32>, vector<8x32xf32> -> vector<8x32xf32>
    %795 = arith.addf %756, %794 : vector<8x32xf32>
    %c1_655 = arith.constant 1 : index
    %c2_656 = arith.constant 2 : index
    %c0_657 = arith.constant 0 : index
    %c0_658 = arith.constant 0 : index
    %796 = vector.load %arg2[%c1_655, %c2_656, %c0_657, %c0_658] : memref<2x4x32x8xf32, #tpu.memory_space<vmem>>, vector<1x1x32x8xf32>
    %797 = vector.shape_cast %796 : vector<1x1x32x8xf32> to vector<32x8xf32>
    %cst_659 = arith.constant dense<0.000000e+00> : vector<8x8xf32>
    %798 = tpu.matmul %718, %797, %cst_659 {dimension_numbers = #tpu.dot_dimension_numbers<[1], [0], [0], [1], [0, 0, 1, 1], [], []>} : vector<8x32xf32>, vector<32x8xf32>, vector<8x8xf32> -> vector<8x8xf32>
    %c1_660 = arith.constant 1 : index
    %c2_661 = arith.constant 2 : index
    %c0_662 = arith.constant 0 : index
    %c0_663 = arith.constant 0 : index
    %799 = vector.load %arg5[%c1_660, %c2_661, %c0_662, %c0_663] : memref<2x4x1x8xf32, #tpu.memory_space<vmem>>, vector<1x1x1x8xf32>
    %800 = vector.shape_cast %799 : vector<1x1x1x8xf32> to vector<1x8xf32>
    %801 = vector.broadcast %800 : vector<1x8xf32> to vector<8x8xf32>
    %802 = arith.addf %798, %801 : vector<8x8xf32>
    %c1_664 = arith.constant 1 : index
    %c2_665 = arith.constant 2 : index
    %c0_666 = arith.constant 0 : index
    %c0_667 = arith.constant 0 : index
    %803 = vector.load %arg3[%c1_664, %c2_665, %c0_666, %c0_667] : memref<2x4x32x8xf32, #tpu.memory_space<vmem>>, vector<1x1x32x8xf32>
    %804 = vector.shape_cast %803 : vector<1x1x32x8xf32> to vector<32x8xf32>
    %cst_668 = arith.constant dense<0.000000e+00> : vector<8x8xf32>
    %805 = tpu.matmul %718, %804, %cst_668 {dimension_numbers = #tpu.dot_dimension_numbers<[1], [0], [0], [1], [0, 0, 1, 1], [], []>} : vector<8x32xf32>, vector<32x8xf32>, vector<8x8xf32> -> vector<8x8xf32>
    %c1_669 = arith.constant 1 : index
    %c2_670 = arith.constant 2 : index
    %c0_671 = arith.constant 0 : index
    %c0_672 = arith.constant 0 : index
    %806 = vector.load %arg6[%c1_669, %c2_670, %c0_671, %c0_672] : memref<2x4x1x8xf32, #tpu.memory_space<vmem>>, vector<1x1x1x8xf32>
    %807 = vector.shape_cast %806 : vector<1x1x1x8xf32> to vector<1x8xf32>
    %808 = vector.broadcast %807 : vector<1x8xf32> to vector<8x8xf32>
    %809 = arith.addf %805, %808 : vector<8x8xf32>
    %c1_673 = arith.constant 1 : index
    %c2_674 = arith.constant 2 : index
    %c0_675 = arith.constant 0 : index
    %c0_676 = arith.constant 0 : index
    %810 = vector.load %arg4[%c1_673, %c2_674, %c0_675, %c0_676] : memref<2x4x32x8xf32, #tpu.memory_space<vmem>>, vector<1x1x32x8xf32>
    %811 = vector.shape_cast %810 : vector<1x1x32x8xf32> to vector<32x8xf32>
    %cst_677 = arith.constant dense<0.000000e+00> : vector<8x8xf32>
    %812 = tpu.matmul %718, %811, %cst_677 {dimension_numbers = #tpu.dot_dimension_numbers<[1], [0], [0], [1], [0, 0, 1, 1], [], []>} : vector<8x32xf32>, vector<32x8xf32>, vector<8x8xf32> -> vector<8x8xf32>
    %c1_678 = arith.constant 1 : index
    %c2_679 = arith.constant 2 : index
    %c0_680 = arith.constant 0 : index
    %c0_681 = arith.constant 0 : index
    %813 = vector.load %arg7[%c1_678, %c2_679, %c0_680, %c0_681] : memref<2x4x1x8xf32, #tpu.memory_space<vmem>>, vector<1x1x1x8xf32>
    %814 = vector.shape_cast %813 : vector<1x1x1x8xf32> to vector<1x8xf32>
    %815 = vector.broadcast %814 : vector<1x8xf32> to vector<8x8xf32>
    %816 = arith.addf %812, %815 : vector<8x8xf32>
    %cst_682 = arith.constant dense<0.000000e+00> : vector<8x8xf32>
    %817 = tpu.matmul %802, %809, %cst_682 {dimension_numbers = #tpu.dot_dimension_numbers<[1], [1], [0], [0], [0, 0, 1, 0], [], []>} : vector<8x8xf32>, vector<8x8xf32>, vector<8x8xf32> -> vector<8x8xf32>
    %cst_683 = arith.constant 0.353553385 : f32
    %818 = vector.broadcast %cst_683 : f32 to vector<8x8xf32>
    %819 = arith.mulf %817, %818 : vector<8x8xf32>
    %cst_684 = arith.constant dense<0xFF800000> : vector<8xf32>
    %820 = vector.multi_reduction <maximumf>, %819, %cst_684 [1] : vector<8x8xf32> to vector<8xf32>
    %821 = vector.shape_cast %820 : vector<8xf32> to vector<8x1xf32>
    %822 = vector.broadcast %821 : vector<8x1xf32> to vector<8x8xf32>
    %823 = arith.subf %819, %822 : vector<8x8xf32>
    %824 = math.exp %823 : vector<8x8xf32>
    %cst_685 = arith.constant dense<0.000000e+00> : vector<8xf32>
    %825 = vector.multi_reduction <add>, %824, %cst_685 [1] : vector<8x8xf32> to vector<8xf32>
    %826 = vector.shape_cast %825 : vector<8xf32> to vector<8x1xf32>
    %827 = tpu.reciprocal %826 {approx = true} : vector<8x1xf32> -> vector<8x1xf32>
    %828 = vector.broadcast %827 : vector<8x1xf32> to vector<8x8xf32>
    %829 = arith.mulf %824, %828 : vector<8x8xf32>
    %cst_686 = arith.constant dense<0.000000e+00> : vector<8x8xf32>
    %830 = tpu.matmul %829, %816, %cst_686 {dimension_numbers = #tpu.dot_dimension_numbers<[1], [0], [0], [1], [0, 0, 1, 1], [], []>} : vector<8x8xf32>, vector<8x8xf32>, vector<8x8xf32> -> vector<8x8xf32>
    %c1_687 = arith.constant 1 : index
    %c2_688 = arith.constant 2 : index
    %c0_689 = arith.constant 0 : index
    %c0_690 = arith.constant 0 : index
    %831 = vector.load %arg8[%c1_687, %c2_688, %c0_689, %c0_690] : memref<2x4x8x32xf32, #tpu.memory_space<vmem>>, vector<1x1x8x32xf32>
    %832 = vector.shape_cast %831 : vector<1x1x8x32xf32> to vector<8x32xf32>
    %cst_691 = arith.constant dense<0.000000e+00> : vector<8x32xf32>
    %833 = tpu.matmul %830, %832, %cst_691 {dimension_numbers = #tpu.dot_dimension_numbers<[1], [0], [0], [1], [0, 0, 1, 1], [], []>} : vector<8x8xf32>, vector<8x32xf32>, vector<8x32xf32> -> vector<8x32xf32>
    %834 = arith.addf %795, %833 : vector<8x32xf32>
    %c1_692 = arith.constant 1 : index
    %c3_693 = arith.constant 3 : index
    %c0_694 = arith.constant 0 : index
    %c0_695 = arith.constant 0 : index
    %835 = vector.load %arg2[%c1_692, %c3_693, %c0_694, %c0_695] : memref<2x4x32x8xf32, #tpu.memory_space<vmem>>, vector<1x1x32x8xf32>
    %836 = vector.shape_cast %835 : vector<1x1x32x8xf32> to vector<32x8xf32>
    %cst_696 = arith.constant dense<0.000000e+00> : vector<8x8xf32>
    %837 = tpu.matmul %718, %836, %cst_696 {dimension_numbers = #tpu.dot_dimension_numbers<[1], [0], [0], [1], [0, 0, 1, 1], [], []>} : vector<8x32xf32>, vector<32x8xf32>, vector<8x8xf32> -> vector<8x8xf32>
    %c1_697 = arith.constant 1 : index
    %c3_698 = arith.constant 3 : index
    %c0_699 = arith.constant 0 : index
    %c0_700 = arith.constant 0 : index
    %838 = vector.load %arg5[%c1_697, %c3_698, %c0_699, %c0_700] : memref<2x4x1x8xf32, #tpu.memory_space<vmem>>, vector<1x1x1x8xf32>
    %839 = vector.shape_cast %838 : vector<1x1x1x8xf32> to vector<1x8xf32>
    %840 = vector.broadcast %839 : vector<1x8xf32> to vector<8x8xf32>
    %841 = arith.addf %837, %840 : vector<8x8xf32>
    %c1_701 = arith.constant 1 : index
    %c3_702 = arith.constant 3 : index
    %c0_703 = arith.constant 0 : index
    %c0_704 = arith.constant 0 : index
    %842 = vector.load %arg3[%c1_701, %c3_702, %c0_703, %c0_704] : memref<2x4x32x8xf32, #tpu.memory_space<vmem>>, vector<1x1x32x8xf32>
    %843 = vector.shape_cast %842 : vector<1x1x32x8xf32> to vector<32x8xf32>
    %cst_705 = arith.constant dense<0.000000e+00> : vector<8x8xf32>
    %844 = tpu.matmul %718, %843, %cst_705 {dimension_numbers = #tpu.dot_dimension_numbers<[1], [0], [0], [1], [0, 0, 1, 1], [], []>} : vector<8x32xf32>, vector<32x8xf32>, vector<8x8xf32> -> vector<8x8xf32>
    %c1_706 = arith.constant 1 : index
    %c3_707 = arith.constant 3 : index
    %c0_708 = arith.constant 0 : index
    %c0_709 = arith.constant 0 : index
    %845 = vector.load %arg6[%c1_706, %c3_707, %c0_708, %c0_709] : memref<2x4x1x8xf32, #tpu.memory_space<vmem>>, vector<1x1x1x8xf32>
    %846 = vector.shape_cast %845 : vector<1x1x1x8xf32> to vector<1x8xf32>
    %847 = vector.broadcast %846 : vector<1x8xf32> to vector<8x8xf32>
    %848 = arith.addf %844, %847 : vector<8x8xf32>
    %c1_710 = arith.constant 1 : index
    %c3_711 = arith.constant 3 : index
    %c0_712 = arith.constant 0 : index
    %c0_713 = arith.constant 0 : index
    %849 = vector.load %arg4[%c1_710, %c3_711, %c0_712, %c0_713] : memref<2x4x32x8xf32, #tpu.memory_space<vmem>>, vector<1x1x32x8xf32>
    %850 = vector.shape_cast %849 : vector<1x1x32x8xf32> to vector<32x8xf32>
    %cst_714 = arith.constant dense<0.000000e+00> : vector<8x8xf32>
    %851 = tpu.matmul %718, %850, %cst_714 {dimension_numbers = #tpu.dot_dimension_numbers<[1], [0], [0], [1], [0, 0, 1, 1], [], []>} : vector<8x32xf32>, vector<32x8xf32>, vector<8x8xf32> -> vector<8x8xf32>
    %c1_715 = arith.constant 1 : index
    %c3_716 = arith.constant 3 : index
    %c0_717 = arith.constant 0 : index
    %c0_718 = arith.constant 0 : index
    %852 = vector.load %arg7[%c1_715, %c3_716, %c0_717, %c0_718] : memref<2x4x1x8xf32, #tpu.memory_space<vmem>>, vector<1x1x1x8xf32>
    %853 = vector.shape_cast %852 : vector<1x1x1x8xf32> to vector<1x8xf32>
    %854 = vector.broadcast %853 : vector<1x8xf32> to vector<8x8xf32>
    %855 = arith.addf %851, %854 : vector<8x8xf32>
    %cst_719 = arith.constant dense<0.000000e+00> : vector<8x8xf32>
    %856 = tpu.matmul %841, %848, %cst_719 {dimension_numbers = #tpu.dot_dimension_numbers<[1], [1], [0], [0], [0, 0, 1, 0], [], []>} : vector<8x8xf32>, vector<8x8xf32>, vector<8x8xf32> -> vector<8x8xf32>
    %cst_720 = arith.constant 0.353553385 : f32
    %857 = vector.broadcast %cst_720 : f32 to vector<8x8xf32>
    %858 = arith.mulf %856, %857 : vector<8x8xf32>
    %cst_721 = arith.constant dense<0xFF800000> : vector<8xf32>
    %859 = vector.multi_reduction <maximumf>, %858, %cst_721 [1] : vector<8x8xf32> to vector<8xf32>
    %860 = vector.shape_cast %859 : vector<8xf32> to vector<8x1xf32>
    %861 = vector.broadcast %860 : vector<8x1xf32> to vector<8x8xf32>
    %862 = arith.subf %858, %861 : vector<8x8xf32>
    %863 = math.exp %862 : vector<8x8xf32>
    %cst_722 = arith.constant dense<0.000000e+00> : vector<8xf32>
    %864 = vector.multi_reduction <add>, %863, %cst_722 [1] : vector<8x8xf32> to vector<8xf32>
    %865 = vector.shape_cast %864 : vector<8xf32> to vector<8x1xf32>
    %866 = tpu.reciprocal %865 {approx = true} : vector<8x1xf32> -> vector<8x1xf32>
    %867 = vector.broadcast %866 : vector<8x1xf32> to vector<8x8xf32>
    %868 = arith.mulf %863, %867 : vector<8x8xf32>
    %cst_723 = arith.constant dense<0.000000e+00> : vector<8x8xf32>
    %869 = tpu.matmul %868, %855, %cst_723 {dimension_numbers = #tpu.dot_dimension_numbers<[1], [0], [0], [1], [0, 0, 1, 1], [], []>} : vector<8x8xf32>, vector<8x8xf32>, vector<8x8xf32> -> vector<8x8xf32>
    %c1_724 = arith.constant 1 : index
    %c3_725 = arith.constant 3 : index
    %c0_726 = arith.constant 0 : index
    %c0_727 = arith.constant 0 : index
    %870 = vector.load %arg8[%c1_724, %c3_725, %c0_726, %c0_727] : memref<2x4x8x32xf32, #tpu.memory_space<vmem>>, vector<1x1x8x32xf32>
    %871 = vector.shape_cast %870 : vector<1x1x8x32xf32> to vector<8x32xf32>
    %cst_728 = arith.constant dense<0.000000e+00> : vector<8x32xf32>
    %872 = tpu.matmul %869, %871, %cst_728 {dimension_numbers = #tpu.dot_dimension_numbers<[1], [0], [0], [1], [0, 0, 1, 1], [], []>} : vector<8x8xf32>, vector<8x32xf32>, vector<8x32xf32> -> vector<8x32xf32>
    %873 = arith.addf %834, %872 : vector<8x32xf32>
    %c1_729 = arith.constant 1 : index
    %c0_730 = arith.constant 0 : index
    %c0_731 = arith.constant 0 : index
    %874 = vector.load %arg9[%c1_729, %c0_730, %c0_731] : memref<2x1x32xf32, #tpu.memory_space<vmem>>, vector<1x1x32xf32>
    %875 = vector.shape_cast %874 : vector<1x1x32xf32> to vector<1x32xf32>
    %876 = vector.broadcast %875 : vector<1x32xf32> to vector<8x32xf32>
    %877 = arith.addf %873, %876 : vector<8x32xf32>
    %878 = arith.addf %718, %877 : vector<8x32xf32>
    %c1_732 = arith.constant 1 : index
    %c0_733 = arith.constant 0 : index
    %c0_734 = arith.constant 0 : index
    %879 = vector.load %arg10[%c1_732, %c0_733, %c0_734] : memref<2x1x32xf32, #tpu.memory_space<vmem>>, vector<1x1x32xf32>
    %880 = vector.shape_cast %879 : vector<1x1x32xf32> to vector<1x32xf32>
    %c1_735 = arith.constant 1 : index
    %c0_736 = arith.constant 0 : index
    %c0_737 = arith.constant 0 : index
    %881 = vector.load %arg11[%c1_735, %c0_736, %c0_737] : memref<2x1x32xf32, #tpu.memory_space<vmem>>, vector<1x1x32xf32>
    %882 = vector.shape_cast %881 : vector<1x1x32xf32> to vector<1x32xf32>
    %cst_738 = arith.constant dense<0.000000e+00> : vector<8xf32>
    %883 = vector.multi_reduction <add>, %878, %cst_738 [1] : vector<8x32xf32> to vector<8xf32>
    %884 = vector.shape_cast %883 : vector<8xf32> to vector<8x1xf32>
    %cst_739 = arith.constant 3.200000e+01 : f32
    %885 = vector.broadcast %cst_739 : f32 to vector<8x1xf32>
    %886 = arith.divf %884, %885 : vector<8x1xf32>
    %887 = vector.broadcast %886 : vector<8x1xf32> to vector<8x32xf32>
    %888 = arith.subf %878, %887 : vector<8x32xf32>
    %889 = vector.broadcast %886 : vector<8x1xf32> to vector<8x32xf32>
    %890 = arith.subf %878, %889 : vector<8x32xf32>
    %891 = arith.mulf %888, %890 : vector<8x32xf32>
    %cst_740 = arith.constant dense<0.000000e+00> : vector<8xf32>
    %892 = vector.multi_reduction <add>, %891, %cst_740 [1] : vector<8x32xf32> to vector<8xf32>
    %893 = vector.shape_cast %892 : vector<8xf32> to vector<8x1xf32>
    %cst_741 = arith.constant 3.200000e+01 : f32
    %894 = vector.broadcast %cst_741 : f32 to vector<8x1xf32>
    %895 = arith.divf %893, %894 : vector<8x1xf32>
    %896 = vector.broadcast %886 : vector<8x1xf32> to vector<8x32xf32>
    %897 = arith.subf %878, %896 : vector<8x32xf32>
    %cst_742 = arith.constant 9.99999974E-6 : f32
    %898 = vector.broadcast %cst_742 : f32 to vector<8x1xf32>
    %899 = arith.addf %895, %898 : vector<8x1xf32>
    %900 = math.rsqrt %899 : vector<8x1xf32>
    %901 = vector.broadcast %900 : vector<8x1xf32> to vector<8x32xf32>
    %902 = arith.mulf %897, %901 : vector<8x32xf32>
    %903 = vector.broadcast %880 : vector<1x32xf32> to vector<8x32xf32>
    %904 = arith.mulf %902, %903 : vector<8x32xf32>
    %905 = vector.broadcast %882 : vector<1x32xf32> to vector<8x32xf32>
    %906 = arith.addf %904, %905 : vector<8x32xf32>
    %c1_743 = arith.constant 1 : index
    %c0_744 = arith.constant 0 : index
    %c0_745 = arith.constant 0 : index
    %907 = vector.load %arg12[%c1_743, %c0_744, %c0_745] : memref<2x32x32xf32, #tpu.memory_space<vmem>>, vector<1x32x32xf32>
    %908 = vector.shape_cast %907 : vector<1x32x32xf32> to vector<32x32xf32>
    %cst_746 = arith.constant dense<0.000000e+00> : vector<8x32xf32>
    %909 = tpu.matmul %906, %908, %cst_746 {dimension_numbers = #tpu.dot_dimension_numbers<[1], [0], [0], [1], [0, 0, 1, 1], [], []>} : vector<8x32xf32>, vector<32x32xf32>, vector<8x32xf32> -> vector<8x32xf32>
    %c1_747 = arith.constant 1 : index
    %c0_748 = arith.constant 0 : index
    %c0_749 = arith.constant 0 : index
    %910 = vector.load %arg13[%c1_747, %c0_748, %c0_749] : memref<2x1x32xf32, #tpu.memory_space<vmem>>, vector<1x1x32xf32>
    %911 = vector.shape_cast %910 : vector<1x1x32xf32> to vector<1x32xf32>
    %912 = vector.broadcast %911 : vector<1x32xf32> to vector<8x32xf32>
    %913 = arith.addf %909, %912 : vector<8x32xf32>
    %cst_750 = arith.constant 0.000000e+00 : f32
    %914 = vector.broadcast %cst_750 : f32 to vector<8x32xf32>
    %915 = arith.maximumf %913, %914 : vector<8x32xf32>
    %c1_751 = arith.constant 1 : index
    %c0_752 = arith.constant 0 : index
    %c0_753 = arith.constant 0 : index
    %916 = vector.load %arg14[%c1_751, %c0_752, %c0_753] : memref<2x32x32xf32, #tpu.memory_space<vmem>>, vector<1x32x32xf32>
    %917 = vector.shape_cast %916 : vector<1x32x32xf32> to vector<32x32xf32>
    %cst_754 = arith.constant dense<0.000000e+00> : vector<8x32xf32>
    %918 = tpu.matmul %915, %917, %cst_754 {dimension_numbers = #tpu.dot_dimension_numbers<[1], [0], [0], [1], [0, 0, 1, 1], [], []>} : vector<8x32xf32>, vector<32x32xf32>, vector<8x32xf32> -> vector<8x32xf32>
    %c1_755 = arith.constant 1 : index
    %c0_756 = arith.constant 0 : index
    %c0_757 = arith.constant 0 : index
    %919 = vector.load %arg15[%c1_755, %c0_756, %c0_757] : memref<2x1x32xf32, #tpu.memory_space<vmem>>, vector<1x1x32xf32>
    %920 = vector.shape_cast %919 : vector<1x1x32xf32> to vector<1x32xf32>
    %921 = vector.broadcast %920 : vector<1x32xf32> to vector<8x32xf32>
    %922 = arith.addf %918, %921 : vector<8x32xf32>
    %923 = arith.addf %906, %922 : vector<8x32xf32>
    %c1_758 = arith.constant 1 : index
    %c0_759 = arith.constant 0 : index
    %c0_760 = arith.constant 0 : index
    %924 = vector.load %arg16[%c1_758, %c0_759, %c0_760] : memref<2x1x32xf32, #tpu.memory_space<vmem>>, vector<1x1x32xf32>
    %925 = vector.shape_cast %924 : vector<1x1x32xf32> to vector<1x32xf32>
    %c1_761 = arith.constant 1 : index
    %c0_762 = arith.constant 0 : index
    %c0_763 = arith.constant 0 : index
    %926 = vector.load %arg17[%c1_761, %c0_762, %c0_763] : memref<2x1x32xf32, #tpu.memory_space<vmem>>, vector<1x1x32xf32>
    %927 = vector.shape_cast %926 : vector<1x1x32xf32> to vector<1x32xf32>
    %cst_764 = arith.constant dense<0.000000e+00> : vector<8xf32>
    %928 = vector.multi_reduction <add>, %923, %cst_764 [1] : vector<8x32xf32> to vector<8xf32>
    %929 = vector.shape_cast %928 : vector<8xf32> to vector<8x1xf32>
    %cst_765 = arith.constant 3.200000e+01 : f32
    %930 = vector.broadcast %cst_765 : f32 to vector<8x1xf32>
    %931 = arith.divf %929, %930 : vector<8x1xf32>
    %932 = vector.broadcast %931 : vector<8x1xf32> to vector<8x32xf32>
    %933 = arith.subf %923, %932 : vector<8x32xf32>
    %934 = vector.broadcast %931 : vector<8x1xf32> to vector<8x32xf32>
    %935 = arith.subf %923, %934 : vector<8x32xf32>
    %936 = arith.mulf %933, %935 : vector<8x32xf32>
    %cst_766 = arith.constant dense<0.000000e+00> : vector<8xf32>
    %937 = vector.multi_reduction <add>, %936, %cst_766 [1] : vector<8x32xf32> to vector<8xf32>
    %938 = vector.shape_cast %937 : vector<8xf32> to vector<8x1xf32>
    %cst_767 = arith.constant 3.200000e+01 : f32
    %939 = vector.broadcast %cst_767 : f32 to vector<8x1xf32>
    %940 = arith.divf %938, %939 : vector<8x1xf32>
    %941 = vector.broadcast %931 : vector<8x1xf32> to vector<8x32xf32>
    %942 = arith.subf %923, %941 : vector<8x32xf32>
    %cst_768 = arith.constant 9.99999974E-6 : f32
    %943 = vector.broadcast %cst_768 : f32 to vector<8x1xf32>
    %944 = arith.addf %940, %943 : vector<8x1xf32>
    %945 = math.rsqrt %944 : vector<8x1xf32>
    %946 = vector.broadcast %945 : vector<8x1xf32> to vector<8x32xf32>
    %947 = arith.mulf %942, %946 : vector<8x32xf32>
    %948 = vector.broadcast %925 : vector<1x32xf32> to vector<8x32xf32>
    %949 = arith.mulf %947, %948 : vector<8x32xf32>
    %950 = vector.broadcast %927 : vector<1x32xf32> to vector<8x32xf32>
    %951 = arith.addf %949, %950 : vector<8x32xf32>
    %cst_769 = arith.constant dense<0.000000e+00> : vector<32xf32>
    %952 = vector.multi_reduction <add>, %951, %cst_769 [0] : vector<8x32xf32> to vector<32xf32>
    %953 = vector.shape_cast %952 : vector<32xf32> to vector<1x32xf32>
    %cst_770 = arith.constant 8.000000e+00 : f32
    %954 = vector.broadcast %cst_770 : f32 to vector<1x32xf32>
    %955 = arith.divf %953, %954 : vector<1x32xf32>
    %c0_771 = arith.constant 0 : index
    %c0_772 = arith.constant 0 : index
    %c0_773 = arith.constant 0 : index
    %956 = vector.load %arg18[%c0_771, %c0_772, %c0_773] : memref<4x32x64xf32, #tpu.memory_space<vmem>>, vector<1x32x64xf32>
    %957 = vector.shape_cast %956 : vector<1x32x64xf32> to vector<32x64xf32>
    %cst_774 = arith.constant dense<0.000000e+00> : vector<1x64xf32>
    %958 = tpu.matmul %238, %957, %cst_774 {dimension_numbers = #tpu.dot_dimension_numbers<[1], [0], [0], [1], [0, 0, 1, 1], [], []>} : vector<1x32xf32>, vector<32x64xf32>, vector<1x64xf32> -> vector<1x64xf32>
    %959 = arith.subf %238, %477 : vector<1x32xf32>
    %c1_775 = arith.constant 1 : index
    %c0_776 = arith.constant 0 : index
    %c0_777 = arith.constant 0 : index
    %960 = vector.load %arg18[%c1_775, %c0_776, %c0_777] : memref<4x32x64xf32, #tpu.memory_space<vmem>>, vector<1x32x64xf32>
    %961 = vector.shape_cast %960 : vector<1x32x64xf32> to vector<32x64xf32>
    %cst_778 = arith.constant dense<0.000000e+00> : vector<1x64xf32>
    %962 = tpu.matmul %959, %961, %cst_778 {dimension_numbers = #tpu.dot_dimension_numbers<[1], [0], [0], [1], [0, 0, 1, 1], [], []>} : vector<1x32xf32>, vector<32x64xf32>, vector<1x64xf32> -> vector<1x64xf32>
    %963 = arith.addf %958, %962 : vector<1x64xf32>
    %c2_779 = arith.constant 2 : index
    %c0_780 = arith.constant 0 : index
    %c0_781 = arith.constant 0 : index
    %964 = vector.load %arg18[%c2_779, %c0_780, %c0_781] : memref<4x32x64xf32, #tpu.memory_space<vmem>>, vector<1x32x64xf32>
    %965 = vector.shape_cast %964 : vector<1x32x64xf32> to vector<32x64xf32>
    %cst_782 = arith.constant dense<0.000000e+00> : vector<1x64xf32>
    %966 = tpu.matmul %716, %965, %cst_782 {dimension_numbers = #tpu.dot_dimension_numbers<[1], [0], [0], [1], [0, 0, 1, 1], [], []>} : vector<1x32xf32>, vector<32x64xf32>, vector<1x64xf32> -> vector<1x64xf32>
    %967 = arith.addf %963, %966 : vector<1x64xf32>
    %968 = arith.subf %716, %955 : vector<1x32xf32>
    %c3_783 = arith.constant 3 : index
    %c0_784 = arith.constant 0 : index
    %c0_785 = arith.constant 0 : index
    %969 = vector.load %arg18[%c3_783, %c0_784, %c0_785] : memref<4x32x64xf32, #tpu.memory_space<vmem>>, vector<1x32x64xf32>
    %970 = vector.shape_cast %969 : vector<1x32x64xf32> to vector<32x64xf32>
    %cst_786 = arith.constant dense<0.000000e+00> : vector<1x64xf32>
    %971 = tpu.matmul %968, %970, %cst_786 {dimension_numbers = #tpu.dot_dimension_numbers<[1], [0], [0], [1], [0, 0, 1, 1], [], []>} : vector<1x32xf32>, vector<32x64xf32>, vector<1x64xf32> -> vector<1x64xf32>
    %972 = arith.addf %967, %971 : vector<1x64xf32>
    %c0_787 = arith.constant 0 : index
    %c0_788 = arith.constant 0 : index
    %973 = vector.load %arg19[%c0_787, %c0_788] : memref<1x64xf32, #tpu.memory_space<vmem>>, vector<1x64xf32>
    %974 = arith.addf %972, %973 : vector<1x64xf32>
    %cst_789 = arith.constant 0.000000e+00 : f32
    %975 = vector.broadcast %cst_789 : f32 to vector<1x64xf32>
    %976 = arith.cmpf ogt, %974, %975 : vector<1x64xf32>
    %cst_790 = arith.constant 0.00999999977 : f32
    %977 = vector.broadcast %cst_790 : f32 to vector<1x64xf32>
    %978 = arith.mulf %977, %974 : vector<1x64xf32>
    %979 = arith.select %976, %974, %978 : vector<1x64xi1>, vector<1x64xf32>
    %c0_791 = arith.constant 0 : index
    %c0_792 = arith.constant 0 : index
    %980 = vector.load %arg20[%c0_791, %c0_792] : memref<64x5xf32, #tpu.memory_space<vmem>>, vector<64x5xf32>
    %cst_793 = arith.constant dense<0.000000e+00> : vector<1x5xf32>
    %981 = tpu.matmul %979, %980, %cst_793 {dimension_numbers = #tpu.dot_dimension_numbers<[1], [0], [0], [1], [0, 0, 1, 1], [], []>} : vector<1x64xf32>, vector<64x5xf32>, vector<1x5xf32> -> vector<1x5xf32>
    %c0_794 = arith.constant 0 : index
    %c0_795 = arith.constant 0 : index
    %982 = vector.load %arg21[%c0_794, %c0_795] : memref<1x5xf32, #tpu.memory_space<vmem>>, vector<1x5xf32>
    %983 = arith.addf %981, %982 : vector<1x5xf32>
    %c0_796 = arith.constant 0 : index
    %c0_797 = arith.constant 0 : index
    %c0_798 = arith.constant 0 : index
    %984 = vector.load %arg22[%c0_796, %c0_797, %c0_798] : memref<1x1x5xf32, #tpu.memory_space<vmem>>, vector<1x1x5xf32>
    %985 = vector.shape_cast %984 : vector<1x1x5xf32> to vector<1x5xf32>
    %986 = vector.shape_cast %983 : vector<1x5xf32> to vector<1x1x5xf32>
    tpu.vector_store %arg22[%c0_796, %c0_797, %c0_798], %986 {strides = array<i32>} : memref<1x1x5xf32, #tpu.memory_space<vmem>>, vector<1x1x5xf32>,
    return
  }
  func.func @transform_0(%arg0: i32) -> (i32, i32, i32, i32) {
    %c0_i32 = arith.constant 0 : i32
    %c0_i32_0 = arith.constant 0 : i32
    %c0_i32_1 = arith.constant 0 : i32
    %c0_i32_2 = arith.constant 0 : i32
    return %arg0, %c0_i32, %c0_i32_0, %c0_i32_1 : i32, i32, i32, i32
  }
  func.func @transform_1(%arg0: i32) -> (i32, i32, i32, i32) {
    %c0_i32 = arith.constant 0 : i32
    %c0_i32_0 = arith.constant 0 : i32
    %c0_i32_1 = arith.constant 0 : i32
    %c0_i32_2 = arith.constant 0 : i32
    %c0_i32_3 = arith.constant 0 : i32
    return %c0_i32, %c0_i32_0, %c0_i32_1, %c0_i32_2 : i32, i32, i32, i32
  }
  func.func @transform_2(%arg0: i32) -> (i32, i32, i32, i32) {
    %c0_i32 = arith.constant 0 : i32
    %c0_i32_0 = arith.constant 0 : i32
    %c0_i32_1 = arith.constant 0 : i32
    %c0_i32_2 = arith.constant 0 : i32
    %c0_i32_3 = arith.constant 0 : i32
    return %c0_i32, %c0_i32_0, %c0_i32_1, %c0_i32_2 : i32, i32, i32, i32
  }
  func.func @transform_3(%arg0: i32) -> (i32, i32, i32, i32) {
    %c0_i32 = arith.constant 0 : i32
    %c0_i32_0 = arith.constant 0 : i32
    %c0_i32_1 = arith.constant 0 : i32
    %c0_i32_2 = arith.constant 0 : i32
    %c0_i32_3 = arith.constant 0 : i32
    return %c0_i32, %c0_i32_0, %c0_i32_1, %c0_i32_2 : i32, i32, i32, i32
  }
  func.func @transform_4(%arg0: i32) -> (i32, i32, i32, i32) {
    %c0_i32 = arith.constant 0 : i32
    %c0_i32_0 = arith.constant 0 : i32
    %c0_i32_1 = arith.constant 0 : i32
    %c0_i32_2 = arith.constant 0 : i32
    %c0_i32_3 = arith.constant 0 : i32
    return %c0_i32, %c0_i32_0, %c0_i32_1, %c0_i32_2 : i32, i32, i32, i32
  }
  func.func @transform_5(%arg0: i32) -> (i32, i32, i32, i32) {
    %c0_i32 = arith.constant 0 : i32
    %c0_i32_0 = arith.constant 0 : i32
    %c0_i32_1 = arith.constant 0 : i32
    %c0_i32_2 = arith.constant 0 : i32
    %c0_i32_3 = arith.constant 0 : i32
    return %c0_i32, %c0_i32_0, %c0_i32_1, %c0_i32_2 : i32, i32, i32, i32
  }
  func.func @transform_6(%arg0: i32) -> (i32, i32, i32, i32) {
    %c0_i32 = arith.constant 0 : i32
    %c0_i32_0 = arith.constant 0 : i32
    %c0_i32_1 = arith.constant 0 : i32
    %c0_i32_2 = arith.constant 0 : i32
    %c0_i32_3 = arith.constant 0 : i32
    return %c0_i32, %c0_i32_0, %c0_i32_1, %c0_i32_2 : i32, i32, i32, i32
  }
  func.func @transform_7(%arg0: i32) -> (i32, i32, i32, i32) {
    %c0_i32 = arith.constant 0 : i32
    %c0_i32_0 = arith.constant 0 : i32
    %c0_i32_1 = arith.constant 0 : i32
    %c0_i32_2 = arith.constant 0 : i32
    %c0_i32_3 = arith.constant 0 : i32
    return %c0_i32, %c0_i32_0, %c0_i32_1, %c0_i32_2 : i32, i32, i32, i32
  }
  func.func @transform_8(%arg0: i32) -> (i32, i32, i32) {
    %c0_i32 = arith.constant 0 : i32
    %c0_i32_0 = arith.constant 0 : i32
    %c0_i32_1 = arith.constant 0 : i32
    %c0_i32_2 = arith.constant 0 : i32
    return %c0_i32, %c0_i32_0, %c0_i32_1 : i32, i32, i32
  }
  func.func @transform_9(%arg0: i32) -> (i32, i32, i32) {
    %c0_i32 = arith.constant 0 : i32
    %c0_i32_0 = arith.constant 0 : i32
    %c0_i32_1 = arith.constant 0 : i32
    %c0_i32_2 = arith.constant 0 : i32
    return %c0_i32, %c0_i32_0, %c0_i32_1 : i32, i32, i32
  }
  func.func @transform_10(%arg0: i32) -> (i32, i32, i32) {
    %c0_i32 = arith.constant 0 : i32
    %c0_i32_0 = arith.constant 0 : i32
    %c0_i32_1 = arith.constant 0 : i32
    %c0_i32_2 = arith.constant 0 : i32
    return %c0_i32, %c0_i32_0, %c0_i32_1 : i32, i32, i32
  }
  func.func @transform_11(%arg0: i32) -> (i32, i32, i32) {
    %c0_i32 = arith.constant 0 : i32
    %c0_i32_0 = arith.constant 0 : i32
    %c0_i32_1 = arith.constant 0 : i32
    %c0_i32_2 = arith.constant 0 : i32
    return %c0_i32, %c0_i32_0, %c0_i32_1 : i32, i32, i32
  }
  func.func @transform_12(%arg0: i32) -> (i32, i32, i32) {
    %c0_i32 = arith.constant 0 : i32
    %c0_i32_0 = arith.constant 0 : i32
    %c0_i32_1 = arith.constant 0 : i32
    %c0_i32_2 = arith.constant 0 : i32
    return %c0_i32, %c0_i32_0, %c0_i32_1 : i32, i32, i32
  }
  func.func @transform_13(%arg0: i32) -> (i32, i32, i32) {
    %c0_i32 = arith.constant 0 : i32
    %c0_i32_0 = arith.constant 0 : i32
    %c0_i32_1 = arith.constant 0 : i32
    %c0_i32_2 = arith.constant 0 : i32
    return %c0_i32, %c0_i32_0, %c0_i32_1 : i32, i32, i32
  }
  func.func @transform_14(%arg0: i32) -> (i32, i32, i32) {
    %c0_i32 = arith.constant 0 : i32
    %c0_i32_0 = arith.constant 0 : i32
    %c0_i32_1 = arith.constant 0 : i32
    %c0_i32_2 = arith.constant 0 : i32
    return %c0_i32, %c0_i32_0, %c0_i32_1 : i32, i32, i32
  }
  func.func @transform_15(%arg0: i32) -> (i32, i32, i32) {
    %c0_i32 = arith.constant 0 : i32
    %c0_i32_0 = arith.constant 0 : i32
    %c0_i32_1 = arith.constant 0 : i32
    %c0_i32_2 = arith.constant 0 : i32
    return %c0_i32, %c0_i32_0, %c0_i32_1 : i32, i32, i32
  }
  func.func @transform_16(%arg0: i32) -> (i32, i32, i32) {
    %c0_i32 = arith.constant 0 : i32
    %c0_i32_0 = arith.constant 0 : i32
    %c0_i32_1 = arith.constant 0 : i32
    %c0_i32_2 = arith.constant 0 : i32
    return %c0_i32, %c0_i32_0, %c0_i32_1 : i32, i32, i32
  }
  func.func @transform_17(%arg0: i32) -> (i32, i32, i32) {
    %c0_i32 = arith.constant 0 : i32
    %c0_i32_0 = arith.constant 0 : i32
    %c0_i32_1 = arith.constant 0 : i32
    %c0_i32_2 = arith.constant 0 : i32
    return %c0_i32, %c0_i32_0, %c0_i32_1 : i32, i32, i32
  }
  func.func @transform_18(%arg0: i32) -> (i32, i32) {
    %c0_i32 = arith.constant 0 : i32
    %c0_i32_0 = arith.constant 0 : i32
    %c0_i32_1 = arith.constant 0 : i32
    return %c0_i32, %c0_i32_0 : i32, i32
  }
  func.func @transform_19(%arg0: i32) -> (i32, i32) {
    %c0_i32 = arith.constant 0 : i32
    %c0_i32_0 = arith.constant 0 : i32
    %c0_i32_1 = arith.constant 0 : i32
    return %c0_i32, %c0_i32_0 : i32, i32
  }
  func.func @transform_20(%arg0: i32) -> (i32, i32) {
    %c0_i32 = arith.constant 0 : i32
    %c0_i32_0 = arith.constant 0 : i32
    %c0_i32_1 = arith.constant 0 : i32
    return %c0_i32, %c0_i32_0 : i32, i32
  }
  func.func @transform_21(%arg0: i32) -> (i32, i32, i32) {
    %c0_i32 = arith.constant 0 : i32
    %c0_i32_0 = arith.constant 0 : i32
    %c0_i32_1 = arith.constant 0 : i32
    return %arg0, %c0_i32, %c0_i32_0 : i32, i32, i32
  }
}

</mosaic_0001>

<bundles_post_ra>
// kernel: desautels_forward_impl.1
= control target key start
LH: loop header
LB: loop body
LE: loop exit
PB: predicated region body
PF: predicated region fallthrough
CT: control target
= control target key end

     0   :  { %s6161_s0 = inlined_call_operand.vmem [shape: f32[2,4,8,32], index: 0, kind: input, shape index: {}]   ;;  %s6162_s1 = inlined_call_operand.vmem [shape: f32[2,4,32,8], index: 1, kind: input, shape index: {}]   ;;  %s6163_s2 = inlined_call_operand.vmem [shape: f32[2,4,32,8], index: 2, kind: input, shape index: {}]   ;;  %s6164_s3 = inlined_call_operand.vmem [shape: f32[2,4,32,8], index: 3, kind: input, shape index: {}]   ;;  %s6165_s4 = inlined_call_operand.vmem [shape: f32[2,4,1,8], index: 4, kind: input, shape index: {}]   ;;  %s6166_s5 = inlined_call_operand.vmem [shape: f32[2,4,1,8], index: 5, kind: input, shape index: {}]   ;;  %s6167_s6 = inlined_call_operand.vmem [shape: f32[2,4,1,8], index: 6, kind: input, shape index: {}]   ;;  %s6168_s7 = inlined_call_operand.vmem [shape: f32[2,4,8,32], index: 7, kind: input, shape index: {}]   ;;  %s6169_s8 = inlined_call_operand.vmem [shape: f32[2,1,32], index: 8, kind: input, shape index: {}]   ;;  %s6170_s9 = inlined_call_operand.vmem [shape: f32[2,1,32], index: 9, kind: input, shape index: {}]   ;;  %s6171_s10 = inlined_call_operand.vmem [shape: f32[2,1,32], index: 10, kind: input, shape index: {}]   ;;  %s6172_s11 = inlined_call_operand.vmem [shape: f32[2,32,32], index: 11, kind: input, shape index: {}]   ;;  %s6173_s12 = inlined_call_operand.vmem [shape: f32[2,1,32], index: 12, kind: input, shape index: {}]   ;;  %s6174_s13 = inlined_call_operand.vmem [shape: f32[2,32,32], index: 13, kind: input, shape index: {}]   ;;  %s6175_s14 = inlined_call_operand.vmem [shape: f32[2,1,32], index: 14, kind: input, shape index: {}]   ;;  %s6176_s15 = inlined_call_operand.vmem [shape: f32[2,1,32], index: 15, kind: input, shape index: {}]   ;;  %s6177_s16 = inlined_call_operand.vmem [shape: f32[2,1,32], index: 16, kind: input, shape index: {}]   ;;  %s6178_s17 = inlined_call_operand.vmem [shape: f32[4,32,64], index: 17, kind: input, shape index: {}]   ;;  %s6179_s18 = inlined_call_operand.vmem [shape: f32[1,64], index: 18, kind: input, shape index: {}]   ;;  %s6180_s19 = inlined_call_operand.vmem [shape: f32[64,5], index: 19, kind: input, shape index: {}]   ;;  %s6181_s20 = inlined_call_operand.vmem [shape: f32[1,5], index: 20, kind: input, shape index: {}]   ;;  %s6182_s21 = inlined_call_operand.hbm [shape: f32[2,1,5], index: 21, kind: output, shape index: {}]  }
   0x1   :  { %6227 = sst [smem:[#allocation30_spill]] %s6161_s0 }
   0x2   :  { %6228 = sst [smem:[#allocation31_spill]] %s6162_s1 }
   0x3   :  { %6229 = sst [smem:[#allocation32_spill]] %s6163_s2 }
   0x4   :  { %6230 = sst [smem:[#allocation33_spill]] %s6164_s3 }
   0x5   :  { %6231 = sst [smem:[#allocation34_spill]] %s6165_s4 }
   0x6   :  { %6232 = sst [smem:[#allocation35_spill]] %s6166_s5 }
   0x7   :  { %6233 = sst [smem:[#allocation36_spill]] %s6167_s6 }
   0x8   :  { %6234 = sst [smem:[#allocation37_spill]] %s6168_s7 }
   0x9   :  { %6235 = sst [smem:[#allocation38_spill]] %s6169_s8 }
   0xa   :  { %6236 = sst [smem:[#allocation39_spill]] %s6181_s20 }
   0xb   :  { %26 = vsyncpa [#allocation3], 0 }
   0xc   :  { %28 = vsyncpa [#allocation3 + $0x1], 0  ;;  %s4593_s2 = smov 0   ;;  %s4595_s25 = smov 0  }
   0xd   :  { %s4597_s26 = smov 0   ;;  %s4599_s27 = smov 0  }
   0xe LB: > { %6237 = sst [smem:[#allocation5_spill]] %s4467_s2  ;;  %s4614_s3 = sadd.s32 4294967295, %s4479_s27   ;;  %s4479_s27 = sphi %s4599_s27, %s6323_s27   ;;  %s4475_s26 = sphi %s4597_s26, %s6325_s26   ;;  %s4471_s25 = sphi %s4595_s25, %s6327_s25   ;;  %s4467_s2 = sphi %s4593_s2, %s6326_s2  }
   0xf   : > { %6238 = sst [smem:[#allocation6_spill]] %s4475_s26  ;;  %s3978_s28 = sadd.s32 4294967294, %s4479_s27  }
  0x10   : > { %6239 = sst [smem:[#allocation7_spill]] %s4479_s27  ;;  %s4618_s29 = sadd.s32 1, %s4479_s27  }
  0x11   : > { %6240 = sst [smem:[#allocation8_spill]] %s4618_s29  ;;  %s487_s0 = sadd.s32 1, %s4475_s26 }
  0x12   : > { %s484_s4 = ssub.s32 %s4479_s27, %s4618_s29  ;;  %p497_p0 = scmp.ne.s32.totalorder %s4475_s26, %s4471_s25 }
  0x13   : > { %p485_p1 = scmp.eq.s32.totalorder %s484_s4, 0  ;;  %p498_p2 = scmp.eq.s32.totalorder %s4614_s3, 1 }
  0x14   : > { %p503_p3 = scmp.ne.s32.totalorder %s4471_s25, %s4467_s2  ;;  %p504_p4 = scmp.eq.s32.totalorder %s3978_s28, 1 }
  0x15   : > { %s4629_s30 = scalar_select %p485_p1, %s4475_s26, %s487_s0  }
  0x16   : > { %p4631_p5 = por %p498_p2, %p497_p0  ;;  %p4635_p6 = por %p504_p4, %p503_p3 }
  0x17   : > { %6241 = sst [smem:[#allocation9_spill]] %s4629_s30  ;;  %p3981_p7 = scmp.ge.s32.totalorder %s4479_s27, 1 }
  0x18   : > { %s6242_s5 = scalar_select %p4631_p5, 1, 0 }
  0x19   : > { %s6244_s22 = scalar_select %p4635_p6, 1, 0 }
  0x1a   : > { %6243 = sst [smem:[#allocation10_spill]] %s6242_s5  ;;  %p590_p8 = scmp.lt.s32.totalorder %s4479_s27, 3 }
  0x1b   : > { %6245 = sst [smem:[#allocation11_spill]] %s6244_s22 }
  0x1c   : > { %p591_p9 = pnand %p3981_p7, %p590_p8 }
  0x1e   : > { %594 = sbr.rel (%p591_p9) target bundleno = 10863 (0x2a6f), region = 104 }
  0x23   : > { %s6246_s24 = sld [smem:[#allocation32_spill]]  ;;  %p649_p10 = scmp.lt.s32.totalorder %s4614_s3, 1  ;;  %vm663_vm0 = vcmask 261120   ;;  %vm743_vm1 = vcmask 64512  }
  0x24   : > { %s6247_s26 = sld [smem:[#allocation31_spill]]  ;;  %s647_s30 = sand.u32 1, %s4471_s25  }
  0x25   : > { %s6249_s0 = sld [smem:[#allocation30_spill]]  ;;  %s4437_s5 = scalar_lea.hbm %s6182_s21, 2 }
  0x26   : > { %s6250_s4 = sld [smem:[#allocation35_spill]] }
  0x27   : > { %s6251_s22 = sld [smem:[#allocation34_spill]] }
  0x28   : > { %s6253_s6 = sld [smem:[#allocation36_spill]] }
  0x29   : > { %v4644_v0 = vld [vmem:[%s6246_s24 + $0x18] sm:$0xff]  ;;  %v4649_v1 = vld [vmem:[%s6246_s24 + $0x10] sm:$0xff]  ;;  %v4667_v4 = vld [vmem:[%s6246_s24 + $0x8] sm:$0xff]  ;;  %s6254_s7 = sld [smem:[#allocation37_spill]] }
  0x2a   : > { %s6248_s29 = smov %s6247_s26  ;;  %v4654_v2 = vld [vmem:[%s6247_s26 + $0x18] sm:$0xff]  ;;  %707 = vmatpush.msra.mxu1 %v4644_v0  ;;  %v4680_v6 = vld [vmem:[%s6246_s24] sm:$0xff]  ;;  %v4752_v23 = vld [vmem:[%s6246_s24 + $0x30] sm:$0xff]  ;;  %s6268_s8 = sld [smem:[#allocation38_spill]] }
  0x2b   : > { %679 = vmatpush.msra.mxu0 %v4654_v2  ;;  %v4662_v3 = vld [vmem:[%s6248_s29 + $0x10] sm:$0xff]  ;;  %v4672_v5 = vld [vmem:[%s6248_s29 + $0x8] sm:$0xff]  ;;  %s650_s26 = scalar_select %p649_p10, %s4614_s3, 1  ;;  %v4685_v7 = vld [vmem:[%s6248_s29] sm:$0xff] }
  0x2c   : > { %708 = vmatpush.msra.mxu1 %v4649_v1  ;;  %v4706_v9 = vld [vmem:[%s6250_s4] ss:$0 sm:$0xff]  ;;  %v4747_v22 = vld [vmem:[%s6246_s24 + $0x38] sm:$0xff]  ;;  %v4764_v25 = vld [vmem:[%s6248_s29 + $0x30] sm:$0xff]  ;;  %s6318_s28 = sld [smem:[#allocation39_spill]] }
  0x2d   : > { %680 = vmatpush.msra.mxu0 %v4662_v3  ;;  %s4253_s23 = sshll.u32 %s650_s26, 5  ;;  %v4711_v10 = vld [vmem:[%s6251_s22] ss:$0 sm:$0xff]  ;;  %v4757_v24 = vld [vmem:[%s6248_s29 + $0x38] sm:$0xff]  ;;  %v4769_v26 = vld [vmem:[%s6246_s24 + $0x28] sm:$0xff] }
  0x2e   : > { %709 = vmatpush.msra.mxu1 %v4667_v4  ;;  %s4692_s27 = scalar_lea.vmem %s6249_s0, %s4253_s23  ;;  %s6252_s0 = sld [smem:[#allocation33_spill]]  ;;  %v4777_v27 = vld [vmem:[%s6246_s24 + $0x20] sm:$0xff]  ;;  %v4782_v28 = vld [vmem:[%s6248_s29 + $0x28] sm:$0xff] }
  0x2f   : > { %681 = vmatpush.msra.mxu0 %v4672_v5  ;;  %v4695_v8 = vld [vmem:[%s4692_s27] sm:$0xff]  ;;  %s3919_s23 = scalar_lea.hbm %s6182_s21, %s4614_s3 }
  0x30   : > { %710 = vmatpush.msra.mxu1 %v4680_v6  ;;  %v4787_v29 = vld [vmem:[%s6248_s29 + $0x20] sm:$0xff]  ;;  %s3923_s26 = sshll.u32 %s3919_s23, 4  ;;  %s3924_s26 = int_to_ptr.hbm [resolvable:$true] %s3923_s26 }
  0x31   : > { %682 = vmatpush.msra.mxu0 %v4685_v7  ;;  %3985 = vmatmul.msk.f32.vlgmr.msra.gmra.mxu1 %vm663_vm0, %v4695_v8  ;;  %v4800_v35 = vld [vmem:[%s6253_s6] ss:$0 sm:$0xff]  ;;  %v4806_v38 = vld [vmem:[%s6250_s4 + $0x1] ss:$0 sm:$0xff] }
  0x32   : > { %3984 = vmatmul.msk.f32.vlgmr.msra.gmra.mxu0 %vm663_vm0, %v4695_v8  ;;  %858 = vmatpush.msrb.mxu1 %v4747_v22  ;;  %v4840_v48 = vld [vmem:[%s6251_s22 + $0x1] ss:$0 sm:$0xff] }
  0x33   : > { %v4847_v51 = vld [vmem:[%s6254_s7] sm:$0xff] }
  0x34   : > { %v4720_v15 = vld [vmem:[%s6252_s0 + $0x18] sm:$0xff]  ;;  %v4725_v16 = vld [vmem:[%s6252_s0 + $0x10] sm:$0xff]  ;;  %v4731_v17 = vld [vmem:[%s6252_s0 + $0x8] sm:$0xff]  ;;  %859 = vmatpush.msrb.mxu1 %v4752_v23 }
  0x35   : > { %735 = vmatpush.msra.mxu2 %v4720_v15  ;;  %v4739_v21 = vld [vmem:[%s6252_s0] sm:$0xff]  ;;  %v4813_v41 = vld [vmem:[%s6252_s0 + $0x38] sm:$0xff]  ;;  %v4818_v42 = vld [vmem:[%s6252_s0 + $0x30] sm:$0xff] }
  0x36   : > { %860 = vmatpush.msrb.mxu1 %v4769_v26  ;;  %v4824_v43 = vld [vmem:[%s6252_s0 + $0x28] sm:$0xff]  ;;  %v4830_v44 = vld [vmem:[%s6252_s0 + $0x20] sm:$0xff] }
  0x37   : > { %736 = vmatpush.msra.mxu2 %v4725_v16  ;;  %v4853_v52 = vld [vmem:[%s6253_s6 + $0x1] ss:$0 sm:$0xff] }
  0x38   : > { %861 = vmatpush.msrb.mxu1 %v4777_v27 }
  0x39   : > { %737 = vmatpush.msra.mxu2 %v4731_v17  ;;  %4001 = vmatmul.msk.f32.vlgmr.msrb.gmra.mxu1 %vm663_vm0, %v4695_v8 }
  0x3b   : > { %738 = vmatpush.msra.mxu2 %v4739_v21 }
  0x3c   : > { %3986 = vmatmul.msk.f32.vlgmr.msra.gmra.mxu2 %vm663_vm0, %v4695_v8 }
  0x3d   : > { %888 = vmatpush.msrb.mxu2 %v4813_v41 }
  0x3f   : > { %889 = vmatpush.msrb.mxu2 %v4818_v42 }
  0x41   : > { %890 = vmatpush.msrb.mxu2 %v4824_v43 }
  0x43   : > { %891 = vmatpush.msrb.mxu2 %v4830_v44 }
  0x44   : > { %4007 = vmatmul.msk.f32.vlgmr.msrb.gmra.mxu2 %vm663_vm0, %v4695_v8 }
  0x45   : > { %1000 = vmatpush.msra.mxu2 %v4847_v51 }
  0xae   : > { %v712_v11 = vpop.f32.mrf.mxu1 }
  0xaf   : > { %v684_v12 = vpop.f32.mrf.mxu0  ;;  %v713_v13 = vadd.f32 %v4706_v9, %v712_v11  ;;  %v4862_v11 = vld [vmem:[%s6248_s29 + $0x58] sm:$0xff] }
  0xb0   : > { %v685_v14 = vadd.f32 %v4711_v10, %v684_v12  ;;  %v4868_v12 = vld [vmem:[%s6248_s29 + $0x50] sm:$0xff] }
  0xb1   : > { %3987 = vmatpush.xpose.msk.msrb.mxu0 %vm743_vm1, %v713_v13  ;;  %v4874_v13 = vld [vmem:[%s6246_s24 + $0x58] sm:$0xff] }
  0xb4   : > { %3988 = vmatmul.msk.f32.vlgmr.msrb.gmra.mxu0 %vm743_vm1, %v685_v14  ;;  %v4879_v14 = vld [vmem:[%s6248_s29 + $0x48] sm:$0xff] }
  0xb5   : > { %828 = vmatpush.msra.mxu0 %v4757_v24 }
  0xb6   : > { %v863_v39 = vpop.f32.mrf.mxu1 }
  0xb7   : > { %829 = vmatpush.msra.mxu0 %v4764_v25  ;;  %v864_v40 = vadd.f32 %v4806_v38, %v863_v39  ;;  %v4927_v39 = vld [vmem:[%s6251_s22 + $0x2] ss:$0 sm:$0xff] }
  0xb8   : > { %6256 = vst [vmem:[#allocation13_spill] sm:$0xff] %v4927_v39 }
  0xb9   : > { %830 = vmatpush.msra.mxu0 %v4782_v28 }
  0xbb   : > { %831 = vmatpush.msra.mxu0 %v4787_v29 }
  0xbc   : > { %3995 = vmatmul.msk.f32.vlgmr.msra.gmra.mxu0 %vm663_vm0, %v4695_v8 }
  0xbf   : > { %v740_v36 = vpop.f32.mrf.mxu2 }
  0xc0   : > { %v741_v37 = vadd.f32 %v4800_v35, %v740_v36 }
  0xc2   : > { %800 = vmatpush.msra.mxu3 %v741_v37  ;;  %v4922_v37 = vld [vmem:[%s6250_s4 + $0x2] ss:$0 sm:$0xff] }
  0xc3   : > { %6255 = vst [vmem:[#allocation12_spill] sm:$0xff] %v4922_v37 }
  0xc4   : > { %4008 = vmatpush.xpose.msk.msrb.mxu3 %vm743_vm1, %v864_v40 }
  0xc7   : > { %v893_v53 = vpop.f32.mrf.mxu2 }
  0xc8   : > { %v894_v54 = vadd.f32 %v4853_v52, %v893_v53 }
  0xca   : > { %952 = vmatpush.msrb.mxu0 %v894_v54 }
  0xcc   : > { %1057 = vmatpush.msra.mxu0 %v4874_v13 }
 0x131   : > { %v767_v18 = vpop.f32.mrf.mxu0 }
 0x132   : > { %v770_v19 = vmul.f32 0.35355338, %v767_v18  ;;  %v4884_v18 = vld [vmem:[%s6246_s24 + $0x50] sm:$0xff] }
 0x133   : > { %1058 = vmatpush.msra.mxu0 %v4884_v18 }
 0x134   : > { %v771_v20 = vsel %vm743_vm1, %v770_v19, -inf }
 0x135   : > { %772 = vmax.xlane.f32.xlu0 %v771_v20  ;;  %v4896_v20 = vld [vmem:[%s6246_s24 + $0x48] sm:$0xff] }
 0x136   : > { %1059 = vmatpush.msra.mxu0 %v4896_v20 }
 0x139   : > { %v833_v49 = vpop.f32.mrf.mxu0 }
 0x13a   : > { %v834_v50 = vadd.f32 %v4840_v48, %v833_v49  ;;  %v4936_v49 = vld [vmem:[%s6252_s0 + $0x58] sm:$0xff] }
 0x1a8   : > { %v773_v30 = vpop.xlane.xlu0 %772 }
 0x1a9   : > { %v774_v31 = vsub.f32 %v770_v19, %v773_v30  ;;  %v4890_v19 = vld [vmem:[%s6248_s29 + $0x40] sm:$0xff] }
 0x1aa   : > { %v4903_v30 = vld [vmem:[%s6246_s24 + $0x40] sm:$0xff] }
 0x1ab   : > { %v775_v32 = vmul.f32 1.442695, %v774_v31  ;;  %1060 = vmatpush.msra.mxu0 %v4903_v30 }
 0x1ad   : > { %4333 = vpow2.f32 %v775_v32 }
 0x1b3   : > { %v4334_v33 = vpop.eup %4333 }
 0x1b4   : > { %v777_v34 = vsel %vm743_vm1, %v4334_v33, 0.0 }
 0x1b5   : > { %778 = vadd.xlane.f32.xlu0 %v777_v34  ;;  %v4915_v34 = vld [vmem:[%s6254_s7 + $0x8] sm:$0xff] }
 0x1b6   : > { %977 = vmatpush.msra.mxu1 %v4915_v34 }
 0x1b8   : > { %1087 = vmatpush.msrb.mxu1 %v4936_v49 }
 0x228   : > { %v779_v45 = vpop.xlane.xlu0 %778 }
 0x229   : > { %4335 = vrcp.f32 %v779_v45 }
 0x22f   : > { %v4336_v46 = vpop.eup %4335 }
 0x230   : > { %v781_v47 = vmul.f32 %v4336_v46, %v4334_v33 }
 0x232   : > { %3989 = vmatmul.msk.f32.vlgmr.msra.gmra.mxu3 %vm743_vm1, %v781_v47 }
 0x233   : > { %1027 = vmatpush.msra.mxu3 %v4862_v11 }
 0x235   : > { %1028 = vmatpush.msra.mxu3 %v4868_v12 }
 0x237   : > { %1029 = vmatpush.msra.mxu3 %v4879_v14 }
 0x239   : > { %1030 = vmatpush.msra.mxu3 %v4890_v19 }
 0x23a   : > { %4009 = vmatmul.msk.f32.vlgmr.msrb.gmra.mxu3 %vm743_vm1, %v834_v50 }
 0x242   : > { %4019 = vmatmul.msk.f32.vlgmr.msra.gmra.mxu3 %vm663_vm0, %v4695_v8 }
 0x2b5   : > { %v802_v55 = vpop.f32.mrf.mxu3 }
 0x2b6   : > { %4013 = vmatmul.msk.f32.vlgmr.msra.gmra.mxu2 %vm743_vm1, %v802_v55 }
 0x2bd   : > { %v919_v56 = vpop.f32.mrf.mxu3 }
 0x2be   : > { %v922_v57 = vmul.f32 0.35355338, %v919_v56  ;;  %v4945_v56 = vld [vmem:[%s6252_s0 + $0x50] sm:$0xff] }
 0x2bf   : > { %1088 = vmatpush.msrb.mxu1 %v4945_v56 }
 0x2c0   : > { %v923_v58 = vsel %vm743_vm1, %v922_v57, -inf }
 0x2c1   : > { %924 = vmax.xlane.f32.xlu1 %v923_v58  ;;  %v4956_v58 = vld [vmem:[%s6252_s0 + $0x40] sm:$0xff] }
 0x2c5   : > { %v1032_v40 = vpop.f32.mrf.mxu3 }
 0x2c6   : > { %v1033_v47 = vadd.f32 %v4927_v39, %v1032_v40 }
 0x334   : > { %v925_v59 = vpop.xlane.xlu1 %924 }
 0x335   : > { %v926_v60 = vsub.f32 %v922_v57, %v925_v59  ;;  %v4951_v57 = vld [vmem:[%s6252_s0 + $0x48] sm:$0xff] }
 0x336   : > { %1089 = vmatpush.msrb.mxu1 %v4951_v57 }
 0x337   : > { %v927_v61 = vmul.f32 1.442695, %v926_v60 }
 0x338   : > { %1090 = vmatpush.msrb.mxu1 %v4956_v58 }
 0x339   : > { %4337 = vpow2.f32 %v927_v61  ;;  %v4939_v50 = vpop.f32.mrf.mxu2 }
 0x33f   : > { %v4338_v62 = vpop.eup %4337 }
 0x340   : > { %v929_v63 = vsel %vm743_vm1, %v4338_v62, 0.0 }
 0x341   : > { %930 = vadd.xlane.f32.xlu1 %v929_v63 }
 0x3b4   : > { %v931_v31 = vpop.xlane.xlu1 %930 }
 0x3b5   : > { %4339 = vrcp.f32 %v931_v31 }
 0x3bb   : > { %v4340_v32 = vpop.eup %4339 }
 0x3bc   : > { %v933_v33 = vmul.f32 %v4340_v32, %v4338_v62  ;;  %v4968_v32 = vld [vmem:[%s6253_s6 + $0x2] ss:$0 sm:$0xff] }
 0x3bd   : > { %6257 = vst [vmem:[#allocation14_spill] sm:$0xff] %v4968_v32 }
 0x3be   : > { %4010 = vmatmul.msk.f32.vlgmr.msrb.gmra.mxu0 %vm743_vm1, %v933_v33  ;;  %v4973_v33 = vld [vmem:[%s6246_s24 + $0x78] sm:$0xff] }
 0x3bf   : > { %6258 = vst [vmem:[#allocation15_spill] sm:$0xff] %v4973_v33 }
 0x3c6   : > { %4025 = vmatmul.msk.f32.vlgmr.msra.gmra.mxu0 %vm663_vm0, %v4695_v8 }
 0x43b   : > { %v954_v36 = vpop.f32.mrf.mxu0 }
 0x43c   : > { %4012 = vmatmul.msk.f32.vlgmr.msra.gmra.mxu1 %vm743_vm1, %v954_v36 }
 0x443   : > { %v1062_v45 = vpop.f32.mrf.mxu0 }
 0x444   : > { %v1063_v46 = vadd.f32 %v4922_v37, %v1062_v45  ;;  %4031 = vmatmul.msk.f32.vlgmr.msrb.gmra.mxu1 %vm663_vm0, %v4695_v8  ;;  %v4980_v45 = vld [vmem:[%s6246_s24 + $0x70] sm:$0xff] }
 0x445   : > { %6259 = vst [vmem:[#allocation16_spill] sm:$0xff] %v4980_v45 }
 0x446   : > { %4032 = vmatpush.xpose.msk.msrb.mxu2 %vm743_vm1, %v1063_v46  ;;  %v4986_v46 = vld [vmem:[%s6246_s24 + $0x68] sm:$0xff] }
 0x447   : > { %6260 = vst [vmem:[#allocation17_spill] sm:$0xff] %v4986_v46 }
 0x449   : > { %4033 = vmatmul.msk.f32.vlgmr.msrb.gmra.mxu2 %vm743_vm1, %v1033_v47  ;;  %v4992_v47 = vld [vmem:[%s6246_s24 + $0x60] sm:$0xff] }
 0x44a   : > { %1234 = vmatpush.msra.mxu2 %v4973_v33  ;;  %6261 = vst [vmem:[#allocation18_spill] sm:$0xff] %v4992_v47 }
 0x44c   : > { %1235 = vmatpush.msra.mxu2 %v4980_v45 }
 0x44e   : > { %1236 = vmatpush.msra.mxu2 %v4986_v46 }
 0x450   : > { %1237 = vmatpush.msra.mxu2 %v4992_v47 }
 0x451   : > { %4048 = vmatmul.msk.f32.vlgmr.msra.gmra.mxu2 %vm663_vm0, %v4695_v8 }
 0x4b9   : > { %v4963_v31 = vpop.f32.mrf.mxu1 }
 0x4c1   : > { %v1092_v36 = vpop.f32.mrf.mxu1 }
 0x4c2   : > { %v1093_v40 = vadd.f32 %v4968_v32, %v1092_v36 }
 0x4c4   : > { %1151 = vmatpush.msrb.mxu3 %v1093_v40  ;;  %v5033_v40 = vld [vmem:[%s6250_s4 + $0x3] ss:$0 sm:$0xff] }
 0x4c5   : > { %6262 = vst [vmem:[#allocation19_spill] sm:$0xff] %v5033_v40 }
 0x4cc   : > { %v1118_v53 = vpop.f32.mrf.mxu2 }
 0x4cd   : > { %v1121_v54 = vmul.f32 0.35355338, %v1118_v53  ;;  %v4997_v53 = vld [vmem:[%s6248_s29 + $0x78] sm:$0xff] }
 0x4ce   : > { %1204 = vmatpush.msra.mxu1 %v4997_v53 }
 0x4cf   : > { %v1122_v55 = vsel %vm743_vm1, %v1121_v54, -inf }
 0x4d0   : > { %1123 = vmax.xlane.f32.xlu2 %v1122_v55  ;;  %v5008_v55 = vld [vmem:[%s6254_s7 + $0x10] sm:$0xff] }
 0x4d1   : > { %1176 = vmatpush.msrb.mxu0 %v5008_v55 }
 0x4d4   : > { %v1239_v32 = vpop.f32.mrf.mxu2 }
 0x4d5   : > { %v1240_v47 = vadd.f32 %v5033_v40, %v1239_v32  ;;  %v5053_v32 = vld [vmem:[%s6252_s0 + $0x70] sm:$0xff] }
 0x4d6   : > { %6265 = vst [vmem:[#allocation22_spill] sm:$0xff] %v5053_v32 }
 0x4d7   : > { %4055 = vmatpush.xpose.msk.msra.mxu0 %vm743_vm1, %v1240_v47  ;;  %v5065_v47 = vld [vmem:[%s6252_s0 + $0x60] sm:$0xff] }
 0x4d8   : > { %6267 = vst [vmem:[#allocation24_spill] sm:$0xff] %v5065_v47 }
 0x543   : > { %v1124_v59 = vpop.xlane.xlu2 %1123 }
 0x544   : > { %v1125_v60 = vsub.f32 %v1121_v54, %v1124_v59  ;;  %v5002_v54 = vld [vmem:[%s6248_s29 + $0x70] sm:$0xff]  ;;  %v5014_v59 = vld [vmem:[%s6248_s29 + $0x68] sm:$0xff] }
 0x545   : > { %1205 = vmatpush.msra.mxu1 %v5002_v54 }
 0x546   : > { %v1126_v61 = vmul.f32 1.442695, %v1125_v60  ;;  %v5023_v60 = vld [vmem:[%s6248_s29 + $0x60] sm:$0xff] }
 0x547   : > { %1206 = vmatpush.msra.mxu1 %v5014_v59 }
 0x548   : > { %4341 = vpow2.f32 %v1126_v61 }
 0x549   : > { %1207 = vmatpush.msra.mxu1 %v5023_v60 }
 0x54a   : > { %4042 = vmatmul.msk.f32.vlgmr.msra.gmra.mxu1 %vm663_vm0, %v4695_v8 }
 0x54e   : > { %v4342_v62 = vpop.eup %4341 }
 0x54f   : > { %v1128_v63 = vsel %vm743_vm1, %v4342_v62, 0.0 }
 0x550   : > { %1129 = vadd.xlane.f32.xlu2 %v1128_v63 }
 0x5c3   : > { %v1130_v61 = vpop.xlane.xlu2 %1129 }
 0x5c4   : > { %4343 = vrcp.f32 %v1130_v61  ;;  %v5041_v61 = vld [vmem:[%s6251_s22 + $0x3] ss:$0 sm:$0xff] }
 0x5c5   : > { %6263 = vst [vmem:[#allocation20_spill] sm:$0xff] %v5041_v61 }
 0x5ca   : > { %v4344_v63 = vpop.eup %4343 }
 0x5cb   : > { %v1132_v36 = vmul.f32 %v4344_v63, %v4342_v62  ;;  %v1209_v62 = vpop.f32.mrf.mxu1 }
 0x5cc   : > { %v1210_v63 = vadd.f32 %v5041_v61, %v1209_v62 }
 0x5cd   : > { %4034 = vmatmul.msk.f32.vlgmr.msrb.gmra.mxu3 %vm743_vm1, %v1132_v36  ;;  %v5048_v36 = vld [vmem:[%s6252_s0 + $0x78] sm:$0xff] }
 0x5ce   : > { %6264 = vst [vmem:[#allocation21_spill] sm:$0xff] %v5048_v36  ;;  %1264 = vmatpush.msra.mxu3 %v5048_v36 }
 0x5d0   : > { %1265 = vmatpush.msra.mxu3 %v5053_v32 }
 0x650   : > { %v1153_v46 = vpop.f32.mrf.mxu3 }
 0x651   : > { %4036 = vmatmul.msk.f32.vlgmr.msrb.gmra.mxu0 %vm743_vm1, %v1153_v46  ;;  %v5059_v46 = vld [vmem:[%s6252_s0 + $0x68] sm:$0xff] }
 0x652   : > { %6266 = vst [vmem:[#allocation23_spill] sm:$0xff] %v5059_v46  ;;  %1266 = vmatpush.msra.mxu3 %v5059_v46 }
 0x654   : > { %1267 = vmatpush.msra.mxu3 %v5065_v47  ;;  %v5076_v47 = vld [vmem:[%s6253_s6 + $0x3] ss:$0 sm:$0xff] }
 0x655   : > { %4054 = vmatmul.msk.f32.vlgmr.msra.gmra.mxu3 %vm663_vm0, %v4695_v8 }
 0x659   : > { %4056 = vmatmul.msk.f32.vlgmr.msra.gmra.mxu0 %vm743_vm1, %v1210_v63 }
 0x6ce   : > { %v1178_v62 = vpop.f32.mrf.mxu0 }
 0x6d6   : > { %v1295_v63 = vpop.f32.mrf.mxu0 }
 0x6d7   : > { %v1298_v61 = vmul.f32 0.35355338, %v1295_v63  ;;  %v5116_v63 = vld [vmem:[%s6172_s11 + $0x18] sm:$0xff] }
 0x6d8   : > { %v1269_v46 = vpop.f32.mrf.mxu3  ;;  %1427 = vmatpush.msrb.mxu3 %v5116_v63 }
 0x6d9   : > { %v1299_v40 = vsel %vm743_vm1, %v1298_v61, -inf  ;;  %v1270_v37 = vadd.f32 %v5076_v47, %v1269_v46 }
 0x6da   : > { %1300 = vmax.xlane.f32.xlu0 %v1299_v40  ;;  %v5082_v40 = vld [vmem:[%s6254_s7 + $0x18] sm:$0xff] }
 0x6db   : > { %1328 = vmatpush.msrb.mxu1 %v1270_v37  ;;  %1353 = vmatpush.msrb.mxu2 %v5082_v40 }
 0x6dd   : > { %1532 = vmatpush.msra.mxu1 %v4654_v2  ;;  %1552 = vmatpush.msra.mxu2 %v4644_v0  ;;  %v1003_v0 = vadd.f32 %v4939_v50, %v4963_v31 }
 0x6df   : > { %1533 = vmatpush.msra.mxu1 %v4662_v3  ;;  %1553 = vmatpush.msra.mxu2 %v4649_v1  ;;  %v1181_v1 = vadd.f32 %v1178_v62, %v1003_v0  ;;  %v5104_v3 = vld [vmem:[%s6268_s8] ss:$0 sm:$0xff]  ;;  %v5143_v0 = vld [vmem:[%s6174_s13 + $0x18] sm:$0xff] }
 0x6e0   : > { %1459 = vmatpush.msrb.mxu0 %v5143_v0 }
 0x6e1   : > { %1534 = vmatpush.msra.mxu1 %v4672_v5  ;;  %1554 = vmatpush.msra.mxu2 %v4667_v4 }
 0x6e3   : > { %1535 = vmatpush.msra.mxu1 %v4685_v7  ;;  %1555 = vmatpush.msra.mxu2 %v4680_v6 }
 0x74d   : > { %v1301_v36 = vpop.xlane.xlu0 %1300 }
 0x74e   : > { %v1302_v32 = vsub.f32 %v1298_v61, %v1301_v36 }
 0x750   : > { %v1303_v45 = vmul.f32 1.442695, %v1302_v32 }
 0x752   : > { %4345 = vpow2.f32 %v1303_v45 }
 0x758   : > { %v4346_v33 = vpop.eup %4345 }
 0x759   : > { %v1305_v39 = vsel %vm743_vm1, %v4346_v33, 0.0 }
 0x75a   : > { %1306 = vadd.xlane.f32.xlu1 %v1305_v39 }
 0x7cd   : > { %v1307_v37 = vpop.xlane.xlu1 %1306 }
 0x7ce   : > { %4347 = vrcp.f32 %v1307_v37  ;;  %v5122_v37 = vld [vmem:[%s6172_s11 + $0x10] sm:$0xff] }
 0x7cf   : > { %1428 = vmatpush.msrb.mxu3 %v5122_v37 }
 0x7d4   : > { %v4348_v39 = vpop.eup %4347 }
 0x7d5   : > { %v1309_v2 = vmul.f32 %v4348_v39, %v4346_v33  ;;  %v5128_v39 = vld [vmem:[%s6172_s11 + $0x8] sm:$0xff] }
 0x7d6   : > { %1429 = vmatpush.msrb.mxu3 %v5128_v39 }
 0x7d7   : > { %4057 = vmatmul.msk.f32.vlgmr.msrb.gmra.mxu1 %vm743_vm1, %v1309_v2  ;;  %v5133_v2 = vld [vmem:[%s6172_s11] sm:$0xff] }
 0x7d8   : > { %1430 = vmatpush.msrb.mxu3 %v5133_v2 }
 0x7da   : > { %1572 = vmatpush.msra.mxu3 %v4720_v15 }
 0x7dc   : > { %1573 = vmatpush.msra.mxu3 %v4725_v16  ;;  %v5160_v16 = vld [vmem:[%s6170_s9] ss:$0 sm:$0xff] }
 0x7de   : > { %1574 = vmatpush.msra.mxu3 %v4731_v17 }
 0x7e0   : > { %1575 = vmatpush.msra.mxu3 %v4739_v21 }
 0x854   : > { %v1330_v45 = vpop.f32.mrf.mxu1 }
 0x855   : > { %4059 = vmatmul.msk.f32.vlgmr.msrb.gmra.mxu2 %vm743_vm1, %v1330_v45  ;;  %v5138_v45 = vld [vmem:[%s4692_s27 + $0x8] sm:$0xff] }
 0x856   : > { %1653 = vmatpush.msrb.mxu2 %v4757_v24  ;;  %4063 = vmatmul.msk.f32.vlgmr.msra.gmra.mxu1 %vm663_vm0, %v5138_v45 }
 0x858   : > { %1654 = vmatpush.msrb.mxu2 %v4764_v25  ;;  %v4481_v25 = vmov 32.0  }
 0x859   : > { %4349 = vrcp.f32 %v4481_v25 }
 0x85a   : > { %1655 = vmatpush.msrb.mxu2 %v4782_v28 }
 0x85c   : > { %1656 = vmatpush.msrb.mxu2 %v4787_v29 }
 0x85d   : > { %4064 = vmatmul.msk.f32.vlgmr.msra.gmra.mxu2 %vm663_vm0, %v5138_v45 }
 0x85f   : > { %v4350_v28 = vpop.eup %4349 }
 0x860   : > { %v1371_v29 = vmul.f32 32.0, %v4350_v28  ;;  %vm1375_vm2 = vweird.f32 %v4350_v28 }
 0x862   : > { %v1372_v50 = vsub.f32 1.0, %v1371_v29  ;;  %v5165_v29 = vld [vmem:[%s6171_s10] ss:$0 sm:$0xff] }
 0x864   : > { %v1373_v31 = vmul.f32 %v4350_v28, %v1372_v50 }
 0x865   : > { %4069 = vmatmul.msk.f32.vlgmr.msrb.gmra.mxu2 %vm663_vm0, %v5138_v45 }
 0x866   : > { %v1374_v33 = vadd.f32 %v4350_v28, %v1373_v31 }
 0x868   : > { %v5109_v61 = vsel %vm1375_vm2, %v4350_v28, %v1374_v33 }
 0x8d3   : > { %v1537_v33 = vpop.f32.mrf.mxu1 }
 0x8d8   : > { %v1355_v4 = vpop.f32.mrf.mxu2 }
 0x8d9   : > { %v1358_v5 = vadd.f32 %v1355_v4, %v1181_v1 }
 0x8db   : > { %v1363_v6 = vadd.f32 %v5104_v3, %v1358_v5 }
 0x8dd   : > { %v1364_v7 = vadd.f32 %v1363_v6, %v4695_v8 }
 0x8df   : > { %v1367_v24 = vsel %vm663_vm0, %v1364_v7, 0.0 }
 0x8e0   : > { %1368 = vadd.xlane.f32.xlu2 %v1367_v24 }
 0x953   : > { %v1369_v36 = vpop.xlane.xlu2 %1368 }
 0x954   : > { %v1377_v32 = vmul.f32 %v5109_v61, %v1369_v36 }
 0x956   : > { %v1378_v46 = vsub.f32 %v1364_v7, %v1377_v32 }
 0x958   : > { %v1379_v62 = vmul.f32 %v1378_v46, %v1378_v46 }
 0x95a   : > { %v1380_v8 = vsel %vm663_vm0, %v1379_v62, 0.0 }
 0x95b   : > { %1381 = vadd.xlane.f32.xlu0 %v1380_v8 }
 0x9ce   : > { %v1382_v1 = vpop.xlane.xlu0 %1381 }
 0x9cf   : > { %v1383_v4 = vmul.f32 %v1382_v1, %v5109_v61 }
 0x9d1   : > { %v1384_v5 = vadd.f32 1e-05, %v1383_v4 }
 0x9d3   : > { %4351 = vrsqrt.f32 %v1384_v5  ;;  %vm1391_vm4 = vweird.f32 %v1384_v5 }
 0x9d9   : > { %v4352_v15 = vpop.eup %4351 }
 0x9da   : > { %v1386_v6 = vmul.f32 %v4352_v15, %v1384_v5  ;;  %vm1392_vm3 = vweird.f32 %v4352_v15 }
 0x9db   : > { %vm1393_vm5 = vmor %vm1391_vm4, %vm1392_vm3 }
 0x9dc   : > { %v1387_v7 = vmul.f32 %v4352_v15, %v1386_v6 }
 0x9de   : > { %v1388_v24 = vmul.f32 0.5, %v1387_v7 }
 0x9e0   : > { %v1389_v25 = vsub.f32 1.5, %v1388_v24 }
 0x9e2   : > { %v1390_v28 = vmul.f32 %v4352_v15, %v1389_v25 }
 0x9e4   : > { %v1394_v17 = vsel %vm1393_vm5, %v4352_v15, %v1390_v28 }
 0x9e5   : > { %v1395_v21 = vmul.f32 %v1394_v17, %v1378_v46 }
 0x9e7   : > { %v1399_v50 = vmul.f32 %v5160_v16, %v1395_v21 }
 0x9e9   : > { %v5169_v31 = vadd.f32 %v5165_v29, %v1399_v50 }
 0x9eb   : > { %6269 = vst [vmem:[#allocation25_spill] sm:$0xff] %v5169_v31  ;;  %4060 = vmatmul.msk.f32.vlgmr.msrb.gmra.mxu3 %vm663_vm0, %v5169_v31 }
 0x9ec   : > { %1673 = vmatpush.msrb.mxu3 %v4747_v22  ;;  %v5189_v22 = vld [vmem:[%s6174_s13 + $0x10] sm:$0xff] }
 0x9ed   : > { %1460 = vmatpush.msrb.mxu0 %v5189_v22 }
 0x9ee   : > { %1674 = vmatpush.msrb.mxu3 %v4752_v23  ;;  %v5195_v23 = vld [vmem:[%s6174_s13 + $0x8] sm:$0xff] }
 0x9ef   : > { %1461 = vmatpush.msrb.mxu0 %v5195_v23 }
 0x9f0   : > { %1675 = vmatpush.msrb.mxu3 %v4769_v26  ;;  %v5201_v26 = vld [vmem:[%s6174_s13] sm:$0xff] }
 0x9f1   : > { %1462 = vmatpush.msrb.mxu0 %v5201_v26 }
 0x9f2   : > { %1676 = vmatpush.msrb.mxu3 %v4777_v27  ;;  %v1557_v27 = vpop.f32.mrf.mxu2 }
 0x9f3   : > { %4065 = vmatmul.msk.f32.vlgmr.msra.gmra.mxu3 %vm663_vm0, %v5138_v45 }
 0x9f4   : > { %1780 = vmatpush.msra.mxu3 %v4915_v34  ;;  %v1558_v34 = vadd.f32 %v4706_v9, %v1557_v27  ;;  %v1538_v9 = vadd.f32 %v4711_v10, %v1537_v33  ;;  %v6271_v27 = vld [vmem:[#allocation12_spill] sm:$0xff] }
 0x9f6   : > { %4066 = vmatpush.xpose.msk.msra.mxu0 %vm743_vm1, %v1558_v34 }
 0x9fa   : > { %v1658_v7 = vpop.f32.mrf.mxu2 }
 0x9fb   : > { %4070 = vmatmul.msk.f32.vlgmr.msrb.gmra.mxu3 %vm663_vm0, %v5138_v45  ;;  %v1659_v24 = vadd.f32 %v4840_v48, %v1658_v7 }
 0x9fc   : > { %1860 = vmatpush.msrb.mxu3 %v4936_v49  ;;  %v5209_v49 = vld [vmem:[%s6173_s12] ss:$0 sm:$0xff] }
 0x9fe   : > { %1861 = vmatpush.msrb.mxu3 %v4945_v56 }
 0xa00   : > { %1862 = vmatpush.msrb.mxu3 %v4951_v57 }
 0xa02   : > { %1863 = vmatpush.msrb.mxu3 %v4956_v58 }
 0xa6e   : > { %v1432_v56 = vpop.f32.mrf.mxu3 }
 0xa6f   : > { %v1433_v57 = vadd.f32 %v5209_v49, %v1432_v56 }
 0xa71   : > { %v1435_v58 = vmax.f32 %v1433_v57, 0.0  ;;  %v6273_v57 = vld [vmem:[#allocation15_spill] sm:$0xff] }
 0xa73   : > { %4061 = vmatmul.msk.f32.vlgmr.msrb.gmra.mxu0 %vm663_vm0, %v1435_v58 }
 0xa74   : > { %1693 = vmatpush.msrb.mxu0 %v4813_v41 }
 0xa76   : > { %1694 = vmatpush.msrb.mxu0 %v4818_v42  ;;  %v1577_v8 = vpop.f32.mrf.mxu3 }
 0xa78   : > { %1695 = vmatpush.msrb.mxu0 %v4824_v43 }
 0xa7a   : > { %1696 = vmatpush.msrb.mxu0 %v4830_v44 }
 0xa7b   : > { %4067 = vmatmul.msk.f32.vlgmr.msra.gmra.mxu0 %vm743_vm1, %v1538_v9 }
 0xa7c   : > { %1803 = vmatpush.msra.mxu0 %v4847_v51  ;;  %v1578_v51 = vadd.f32 %v4800_v35, %v1577_v8  ;;  %v6278_v8 = vld [vmem:[#allocation21_spill] sm:$0xff] }
 0xa7e   : > { %1636 = vmatpush.msrb.mxu1 %v1578_v51  ;;  %v1678_v1 = vpop.f32.mrf.mxu3  ;;  %v6279_v51 = vld [vmem:[#allocation22_spill] sm:$0xff] }
 0xa7f   : > { %v1679_v4 = vadd.f32 %v4806_v38, %v1678_v1  ;;  %v6280_v1 = vld [vmem:[#allocation23_spill] sm:$0xff] }
 0xa81   : > { %4072 = vmatpush.xpose.msk.msra.mxu1 %vm743_vm1, %v1679_v4  ;;  %v6281_v4 = vld [vmem:[#allocation24_spill] sm:$0xff] }
 0xa83   : > { %4071 = vmatmul.msk.f32.vlgmr.msrb.gmra.mxu0 %vm663_vm0, %v5138_v45 }
 0xaf0   : > { %v5222_v36 = vpop.f32.mrf.mxu0 }
 0xaf1   : > { %6270 = vst [vmem:[#allocation26_spill] sm:$0xff] %v5222_v36 }
 0xaf8   : > { %v1603_v32 = vpop.f32.mrf.mxu0 }
 0xaf9   : > { %v1606_v46 = vmul.f32 0.35355338, %v1603_v32 }
 0xafb   : > { %v1607_v41 = vsel %vm743_vm1, %v1606_v46, -inf }
 0xafc   : > { %1608 = vmax.xlane.f32.xlu1 %v1607_v41 }
 0xb00   : > { %v1698_v35 = vpop.f32.mrf.mxu0 }
 0xb01   : > { %v1699_v38 = vadd.f32 %v4853_v52, %v1698_v35 }
 0xb03   : > { %1757 = vmatpush.msra.mxu2 %v1699_v38 }
 0xb05   : > { %1840 = vmatpush.msrb.mxu2 %v4874_v13 }
 0xb07   : > { %1841 = vmatpush.msrb.mxu2 %v4884_v18 }
 0xb09   : > { %1842 = vmatpush.msrb.mxu2 %v4896_v20 }
 0xb0b   : > { %1843 = vmatpush.msrb.mxu2 %v4903_v30 }
 0xb6f   : > { %v1609_v42 = vpop.xlane.xlu1 %1608 }
 0xb70   : > { %v1610_v10 = vsub.f32 %v1606_v46, %v1609_v42 }
 0xb72   : > { %v1611_v62 = vmul.f32 1.442695, %v1610_v10 }
 0xb74   : > { %4353 = vpow2.f32 %v1611_v62 }
 0xb7a   : > { %v4354_v43 = vpop.eup %4353 }
 0xb7b   : > { %v1613_v44 = vsel %vm743_vm1, %v4354_v43, 0.0 }
 0xb7c   : > { %1614 = vadd.xlane.f32.xlu2 %v1613_v44 }
 0xbef   : > { %v1615_v5 = vpop.xlane.xlu2 %1614 }
 0xbf0   : > { %4355 = vrcp.f32 %v1615_v5 }
 0xbf6   : > { %v4356_v15 = vpop.eup %4355 }
 0xbf7   : > { %v1617_v6 = vmul.f32 %v4356_v15, %v4354_v43 }
 0xbf9   : > { %4068 = vmatmul.msk.f32.vlgmr.msrb.gmra.mxu1 %vm743_vm1, %v1617_v6 }
 0xbfa   : > { %1820 = vmatpush.msrb.mxu1 %v4862_v11 }
 0xbfc   : > { %1821 = vmatpush.msrb.mxu1 %v4868_v12 }
 0xbfe   : > { %1822 = vmatpush.msrb.mxu1 %v4879_v14 }
 0xc00   : > { %1823 = vmatpush.msrb.mxu1 %v4890_v19 }
 0xc01   : > { %4073 = vmatmul.msk.f32.vlgmr.msra.gmra.mxu1 %vm743_vm1, %v1659_v24  ;;  %v6282_v24 = vld [vmem:[#allocation19_spill] sm:$0xff] }
 0xc09   : > { %4077 = vmatmul.msk.f32.vlgmr.msrb.gmra.mxu1 %vm663_vm0, %v5138_v45 }
 0xc76   : > { %v1638_v48 = vpop.f32.mrf.mxu1 }
 0xc77   : > { %4076 = vmatmul.msk.f32.vlgmr.msra.gmra.mxu0 %vm743_vm1, %v1638_v48 }
 0xc7e   : > { %v1724_v11 = vpop.f32.mrf.mxu1 }
 0xc7f   : > { %v1727_v12 = vmul.f32 0.35355338, %v1724_v11 }
 0xc81   : > { %v1728_v14 = vsel %vm743_vm1, %v1727_v12, -inf }
 0xc82   : > { %1729 = vmax.xlane.f32.xlu0 %v1728_v14 }
 0xc86   : > { %v1825_v21 = vpop.f32.mrf.mxu1 }
 0xcf5   : > { %v1730_v19 = vpop.xlane.xlu0 %1729 }
 0xcf6   : > { %v1731_v25 = vsub.f32 %v1727_v12, %v1730_v19 }
 0xcf8   : > { %v1732_v52 = vmul.f32 1.442695, %v1731_v25 }
 0xcfa   : > { %4357 = vpow2.f32 %v1732_v52 }
 0xd00   : > { %v4358_v28 = vpop.eup %4357 }
 0xd01   : > { %v1734_v13 = vsel %vm743_vm1, %v4358_v28, 0.0 }
 0xd02   : > { %1735 = vadd.xlane.f32.xlu1 %v1734_v13 }
 0xd75   : > { %v1736_v18 = vpop.xlane.xlu1 %1735 }
 0xd76   : > { %4359 = vrcp.f32 %v1736_v18 }
 0xd7c   : > { %v4360_v20 = vpop.eup %4359 }
 0xd7d   : > { %v1738_v30 = vmul.f32 %v4360_v20, %v4358_v28 }
 0xd7f   : > { %4074 = vmatmul.msk.f32.vlgmr.msra.gmra.mxu2 %vm743_vm1, %v1738_v30 }
 0xd80   : > { %1947 = vmatpush.msra.mxu2 %v5008_v55  ;;  %v6272_v55 = vld [vmem:[#allocation13_spill] sm:$0xff] }
 0xd81   : > { %v1826_v56 = vadd.f32 %v6272_v55, %v1825_v21 }
 0xd87   : > { %4078 = vmatmul.msk.f32.vlgmr.msrb.gmra.mxu2 %vm663_vm0, %v5138_v45 }
 0xe02   : > { %v1759_v17 = vpop.f32.mrf.mxu2 }
 0xe03   : > { %4075 = vmatmul.msk.f32.vlgmr.msra.gmra.mxu3 %vm743_vm1, %v1759_v17 }
 0xe04   : > { %1965 = vmatpush.msra.mxu3 %v4997_v53  ;;  %v6274_v53 = vld [vmem:[#allocation16_spill] sm:$0xff] }
 0xe06   : > { %1966 = vmatpush.msra.mxu3 %v5002_v54  ;;  %v6275_v54 = vld [vmem:[#allocation17_spill] sm:$0xff] }
 0xe08   : > { %1967 = vmatpush.msra.mxu3 %v5014_v59  ;;  %v6276_v59 = vld [vmem:[#allocation18_spill] sm:$0xff] }
 0xe0a   : > { %v1845_v50 = vpop.f32.mrf.mxu2  ;;  %1968 = vmatpush.msra.mxu3 %v5023_v60  ;;  %v1805_v60 = vpop.f32.mrf.mxu0 }
 0xe0b   : > { %v1846_v34 = vadd.f32 %v6271_v27, %v1845_v50  ;;  %4079 = vmatmul.msk.f32.vlgmr.msrb.gmra.mxu3 %vm663_vm0, %v5138_v45 }
 0xe0d   : > { %4080 = vmatpush.xpose.msk.msrb.mxu0 %vm743_vm1, %v1846_v34 }
 0xe10   : > { %4081 = vmatmul.msk.f32.vlgmr.msrb.gmra.mxu0 %vm743_vm1, %v1826_v56 }
 0xe11   : > { %1985 = vmatpush.msra.mxu0 %v6273_v57 }
 0xe13   : > { %1986 = vmatpush.msra.mxu0 %v6274_v53  ;;  %4084 = vmatmul.msk.f32.vlgmr.msra.gmra.mxu3 %vm663_vm0, %v5138_v45 }
 0xe15   : > { %1987 = vmatpush.msra.mxu0 %v6275_v54  ;;  %v5306_v54 = vld [vmem:[%s6248_s29 + $0x98] sm:$0xff] }
 0xe17   : > { %1988 = vmatpush.msra.mxu0 %v6276_v59  ;;  %v5324_v59 = vld [vmem:[%s6248_s29 + $0x88] sm:$0xff] }
 0xe18   : > { %4085 = vmatmul.msk.f32.vlgmr.msra.gmra.mxu0 %vm663_vm0, %v5138_v45 }
 0xe19   : > { %2092 = vmatpush.msrb.mxu0 %v5082_v40  ;;  %v6277_v40 = vld [vmem:[#allocation14_spill] sm:$0xff] }
 0xe86   : > { %v1782_v62 = vpop.f32.mrf.mxu3 }
 0xe8d   : > { %v1891_v58 = vpop.f32.mrf.mxu0 }
 0xe8e   : > { %v1894_v33 = vmul.f32 0.35355338, %v1891_v58  ;;  %v1865_v43 = vpop.f32.mrf.mxu3  ;;  %v5334_v58 = vld [vmem:[%s6248_s29 + $0x80] sm:$0xff] }
 0xe8f   : > { %v1866_v44 = vadd.f32 %v6277_v40, %v1865_v43 }
 0xe90   : > { %v1895_v9 = vsel %vm743_vm1, %v1894_v33, -inf }
 0xe91   : > { %1896 = vmax.xlane.f32.xlu2 %v1895_v9  ;;  %1924 = vmatpush.msra.mxu1 %v1866_v44  ;;  %v5343_v9 = vld [vmem:[%s6246_s24 + $0x88] sm:$0xff] }
 0xe93   : > { %2005 = vmatpush.msrb.mxu1 %v6278_v8 }
 0xe95   : > { %2006 = vmatpush.msrb.mxu1 %v6279_v51  ;;  %v1990_v7 = vpop.f32.mrf.mxu0 }
 0xe96   : > { %v1991_v35 = vadd.f32 %v6282_v24, %v1990_v7  ;;  %v1970_v48 = vpop.f32.mrf.mxu3 }
 0xe97   : > { %2007 = vmatpush.msrb.mxu1 %v6280_v1 }
 0xe98   : > { %4087 = vmatpush.xpose.msk.msrb.mxu2 %vm743_vm1, %v1991_v35 }
 0xe99   : > { %2008 = vmatpush.msrb.mxu1 %v6281_v4 }
 0xf04   : > { %v1897_v32 = vpop.xlane.xlu2 %1896 }
 0xf05   : > { %v1898_v46 = vsub.f32 %v1894_v33, %v1897_v32  ;;  %v5338_v33 = vld [vmem:[%s4692_s27 + $0x10] sm:$0xff] }
 0xf07   : > { %v1899_v41 = vmul.f32 1.442695, %v1898_v46  ;;  %v5350_v46 = vld [vmem:[%s6246_s24 + $0x80] sm:$0xff] }
 0xf09   : > { %4361 = vpow2.f32 %v1899_v41 }
 0xf0f   : > { %v4362_v42 = vpop.eup %4361 }
 0xf10   : > { %v1901_v10 = vsel %vm743_vm1, %v4362_v42, 0.0 }
 0xf11   : > { %1902 = vadd.xlane.f32.xlu0 %v1901_v10 }
 0xf84   : > { %v1903_v5 = vpop.xlane.xlu0 %1902 }
 0xf85   : > { %4363 = vrcp.f32 %v1903_v5 }
 0xf8b   : > { %v4364_v15 = vpop.eup %4363 }
 0xf8c   : > { %v1905_v6 = vmul.f32 %v4364_v15, %v4362_v42  ;;  %v5368_v15 = vld [vmem:[%s6250_s4 + $0x4] ss:$0 sm:$0xff] }
 0xf8e   : > { %4082 = vmatmul.msk.f32.vlgmr.msra.gmra.mxu1 %vm743_vm1, %v1905_v6 }
 0xf8f   : > { %2139 = vmatpush.msra.mxu1 %v5116_v63  ;;  %v6283_v63 = vld [vmem:[#allocation20_spill] sm:$0xff] }
 0xf91   : > { %2140 = vmatpush.msra.mxu1 %v5122_v37  ;;  %v1971_v37 = vadd.f32 %v6283_v63, %v1970_v48  ;;  %v5384_v63 = vld [vmem:[%s6252_s0 + $0x98] sm:$0xff] }
 0xf93   : > { %2141 = vmatpush.msra.mxu1 %v5128_v39  ;;  %v1806_v39 = vadd.f32 %v1805_v60, %v1782_v62  ;;  %v5329_v60 = vld [vmem:[%s6246_s24 + $0x90] sm:$0xff] }
 0xf95   : > { %2142 = vmatpush.msra.mxu1 %v5133_v2 }
 0xf96   : > { %4086 = vmatmul.msk.f32.vlgmr.msrb.gmra.mxu1 %vm663_vm0, %v5138_v45 }
 0xf97   : > { %2291 = vmatpush.msrb.mxu1 %v5384_v63 }
0x100b   : > { %v1926_v38 = vpop.f32.mrf.mxu1 }
0x100c   : > { %4083 = vmatmul.msk.f32.vlgmr.msra.gmra.mxu2 %vm743_vm1, %v1926_v38 }
0x100d   : > { %2163 = vmatpush.msra.mxu2 %v5143_v0 }
0x100f   : > { %2164 = vmatpush.msra.mxu2 %v5189_v22 }
0x1011   : > { %2165 = vmatpush.msra.mxu2 %v5195_v23 }
0x1013   : > { %2166 = vmatpush.msra.mxu2 %v5201_v26  ;;  %v2010_v23 = vpop.f32.mrf.mxu1 }
0x1014   : > { %4088 = vmatmul.msk.f32.vlgmr.msrb.gmra.mxu2 %vm743_vm1, %v1971_v37  ;;  %v2011_v26 = vadd.f32 %v5076_v47, %v2010_v23  ;;  %v5448_v23 = vld [vmem:[%s6248_s29 + $0xa8] sm:$0xff] }
0x1016   : > { %2069 = vmatpush.msrb.mxu3 %v2011_v26  ;;  %v5453_v26 = vld [vmem:[%s6248_s29 + $0xa0] sm:$0xff] }
0x1018   : > { %2231 = vmatpush.msra.mxu3 %v5306_v54 }
0x108f   : > { %v1949_v2 = vpop.f32.mrf.mxu2 }
0x1090   : > { %v1952_v11 = vadd.f32 %v1949_v2, %v1806_v39 }
0x1097   : > { %v2036_v12 = vpop.f32.mrf.mxu2 }
0x1098   : > { %v2039_v14 = vmul.f32 0.35355338, %v2036_v12  ;;  %v5399_v12 = vld [vmem:[%s6252_s0 + $0x88] sm:$0xff] }
0x109a   : > { %v2040_v19 = vsel %vm743_vm1, %v2039_v14, -inf }
0x109b   : > { %2041 = vmax.xlane.f32.xlu1 %v2040_v19  ;;  %v5410_v19 = vld [vmem:[%s6246_s24 + $0xb8] sm:$0xff] }
0x110e   : > { %v2042_v25 = vpop.xlane.xlu1 %2041 }
0x110f   : > { %v2043_v0 = vsub.f32 %v2039_v14, %v2042_v25  ;;  %v5405_v14 = vld [vmem:[%s6252_s0 + $0x80] sm:$0xff]  ;;  %v5416_v25 = vld [vmem:[%s6248_s29 + $0xb8] sm:$0xff] }
0x1111   : > { %v2044_v52 = vmul.f32 1.442695, %v2043_v0  ;;  %v5421_v0 = vld [vmem:[%s6248_s29 + $0xb0] sm:$0xff] }
0x1113   : > { %4365 = vpow2.f32 %v2044_v52  ;;  %v5428_v52 = vld [vmem:[%s6246_s24 + $0xb0] sm:$0xff] }
0x1119   : > { %v4366_v22 = vpop.eup %4365 }
0x111a   : > { %v2046_v28 = vsel %vm743_vm1, %v4366_v22, 0.0 }
0x111b   : > { %2047 = vadd.xlane.f32.xlu2 %v2046_v28  ;;  %v5443_v28 = vld [vmem:[%s6246_s24 + $0xa0] sm:$0xff] }
0x118e   : > { %v2048_v13 = vpop.xlane.xlu2 %2047 }
0x118f   : > { %4367 = vrcp.f32 %v2048_v13 }
0x1195   : > { %v4368_v18 = vpop.eup %4367 }
0x1196   : > { %v2050_v20 = vmul.f32 %v4368_v18, %v4366_v22  ;;  %v5435_v22 = vld [vmem:[%s6246_s24 + $0xa8] sm:$0xff] }
0x1198   : > { %4089 = vmatmul.msk.f32.vlgmr.msrb.gmra.mxu3 %vm743_vm1, %v2050_v20 }
0x121b   : > { %v2071_v30 = vpop.f32.mrf.mxu3 }
0x121c   : > { %4090 = vmatmul.msk.f32.vlgmr.msrb.gmra.mxu0 %vm743_vm1, %v2071_v30 }
0x1299   : > { %v2094_v17 = vpop.f32.mrf.mxu0 }
0x129a   : > { %v2097_v21 = vadd.f32 %v2094_v17, %v1952_v11  ;;  %v5393_v11 = vld [vmem:[%s6252_s0 + $0x90] sm:$0xff] }
0x129b   : > { %2292 = vmatpush.msrb.mxu1 %v5393_v11 }
0x129c   : > { %v2098_v50 = vadd.f32 %v5104_v3, %v2097_v21  ;;  %v5311_v3 = vld [vmem:[%s6248_s29 + $0x90] sm:$0xff]  ;;  %v5466_v21 = vld [vmem:[%s6253_s6 + $0x4] ss:$0 sm:$0xff] }
0x129d   : > { %2232 = vmatpush.msra.mxu3 %v5311_v3  ;;  %2293 = vmatpush.msrb.mxu1 %v5399_v12 }
0x129e   : > { %v2099_v27 = vadd.f32 %v5138_v45, %v2098_v50  ;;  %v5318_v45 = vld [vmem:[%s6246_s24 + $0x98] sm:$0xff] }
0x129f   : > { %2261 = vmatpush.msra.mxu0 %v5318_v45  ;;  %2233 = vmatpush.msra.mxu3 %v5324_v59 }
0x12a0   : > { %v2100_v34 = vsel %vm663_vm0, %v2099_v27, 0.0  ;;  %2294 = vmatpush.msrb.mxu1 %v5405_v14 }
0x12a1   : > { %2101 = vadd.xlane.f32.xlu0 %v2100_v34  ;;  %2262 = vmatpush.msra.mxu0 %v5329_v60  ;;  %v5472_v34 = vld [vmem:[%s6250_s4 + $0x5] ss:$0 sm:$0xff] }
0x12a2   : > { %2234 = vmatpush.msra.mxu3 %v5334_v58 }
0x12a3   : > { %4099 = vmatmul.msk.f32.vlgmr.msra.gmra.mxu3 %vm663_vm0, %v5338_v33  ;;  %2263 = vmatpush.msra.mxu0 %v5343_v9 }
0x12a5   : > { %2264 = vmatpush.msra.mxu0 %v5350_v46 }
0x12a6   : > { %4105 = vmatmul.msk.f32.vlgmr.msra.gmra.mxu0 %vm663_vm0, %v5338_v33 }
0x12a7   : > { %2384 = vmatpush.msrb.mxu0 %v5416_v25 }
0x12a9   : > { %2385 = vmatpush.msrb.mxu0 %v5421_v0 }
0x12ab   : > { %2386 = vmatpush.msrb.mxu0 %v5448_v23 }
0x12ad   : > { %2387 = vmatpush.msrb.mxu0 %v5453_v26 }
0x12ae   : > { %4121 = vmatmul.msk.f32.vlgmr.msrb.gmra.mxu0 %vm663_vm0, %v5338_v33 }
0x1314   : > { %v2102_v47 = vpop.xlane.xlu0 %2101 }
0x1315   : > { %v2103_v55 = vmul.f32 %v2102_v47, %v5109_v61 }
0x1317   : > { %v2104_v56 = vsub.f32 %v2099_v27, %v2103_v55 }
0x1319   : > { %v2105_v57 = vmul.f32 %v2104_v56, %v2104_v56 }
0x131b   : > { %v2106_v53 = vsel %vm663_vm0, %v2105_v57, 0.0  ;;  %v5484_v57 = vld [vmem:[%s6252_s0 + $0xb0] sm:$0xff] }
0x131c   : > { %2107 = vadd.xlane.f32.xlu1 %v2106_v53  ;;  %v5490_v53 = vld [vmem:[%s6252_s0 + $0xa8] sm:$0xff] }
0x1323   : > { %v2266_v6 = vpop.f32.mrf.mxu0 }
0x1324   : > { %v2267_v7 = vadd.f32 %v5368_v15, %v2266_v6 }
0x1326   : > { %4112 = vmatpush.xpose.msk.msrb.mxu2 %vm743_vm1, %v2267_v7  ;;  %v2236_v38 = vpop.f32.mrf.mxu3 }
0x138f   : > { %v2108_v32 = vpop.xlane.xlu1 %2107 }
0x1390   : > { %v2109_v41 = vmul.f32 %v2108_v32, %v5109_v61  ;;  %v5496_v32 = vld [vmem:[%s6252_s0 + $0xa0] sm:$0xff] }
0x1392   : > { %v2110_v42 = vadd.f32 1e-05, %v2109_v41 }
0x1394   : > { %4369 = vrsqrt.f32 %v2110_v42  ;;  %vm2117_vm7 = vweird.f32 %v2110_v42 }
0x139a   : > { %v4370_v10 = vpop.eup %4369 }
0x139b   : > { %v2112_v62 = vmul.f32 %v4370_v10, %v2110_v42  ;;  %vm2118_vm6 = vweird.f32 %v4370_v10 }
0x139c   : > { %vm2119_vm8 = vmor %vm2117_vm7, %vm2118_vm6 }
0x139d   : > { %v2113_v43 = vmul.f32 %v4370_v10, %v2112_v62  ;;  %v5506_v62 = vld [vmem:[%s6251_s22 + $0x5] ss:$0 sm:$0xff] }
0x139f   : > { %v2114_v40 = vmul.f32 0.5, %v2113_v43  ;;  %v2389_v43 = vpop.f32.mrf.mxu0 }
0x13a1   : > { %v2115_v44 = vsub.f32 1.5, %v2114_v40  ;;  %v2390_v40 = vadd.f32 %v5506_v62, %v2389_v43  ;;  %v5593_v43 = vld [vmem:[%s6251_s22 + $0x6] ss:$0 sm:$0xff] }
0x13a2   : > { %6287 = vst [vmem:[#allocation16_spill] sm:$0xff] %v5593_v43 }
0x13a3   : > { %v2116_v8 = vmul.f32 %v4370_v10, %v2115_v44  ;;  %v5513_v44 = vld [vmem:[%s6254_s7 + $0x20] sm:$0xff] }
0x13a5   : > { %v2120_v51 = vsel %vm2119_vm8, %v4370_v10, %v2116_v8  ;;  %v5519_v8 = vld [vmem:[%s6253_s6 + $0x5] ss:$0 sm:$0xff] }
0x13a6   : > { %v2121_v1 = vmul.f32 %v2120_v51, %v2104_v56  ;;  %v5479_v56 = vld [vmem:[%s6252_s0 + $0xb8] sm:$0xff] }
0x13a8   : > { %v2122_v4 = vmul.f32 %v5160_v16, %v2121_v1 }
0x13aa   : > { %v5361_v5 = vadd.f32 %v5165_v29, %v2122_v4  ;;  %v5377_v29 = vld [vmem:[%s6251_s22 + $0x4] ss:$0 sm:$0xff] }
0x13ab   : > { %v2237_v48 = vadd.f32 %v5377_v29, %v2236_v38 }
0x13ac   : > { %6284 = vst [vmem:[#allocation12_spill] sm:$0xff] %v5361_v5  ;;  %4091 = vmatmul.msk.f32.vlgmr.msra.gmra.mxu1 %vm663_vm0, %v5361_v5  ;;  %v5687_v5 = vld [vmem:[%s6248_s29 + $0xe0] sm:$0xff] }
0x13ad   : > { %2414 = vmatpush.msra.mxu1 %v5410_v19  ;;  %6293 = vst [vmem:[#allocation23_spill] sm:$0xff] %v5687_v5 }
0x13af   : > { %2415 = vmatpush.msra.mxu1 %v5428_v52 }
0x13b1   : > { %2416 = vmatpush.msra.mxu1 %v5435_v22 }
0x13b3   : > { %2417 = vmatpush.msra.mxu1 %v5443_v28 }
0x13b4   : > { %4111 = vmatmul.msk.f32.vlgmr.msrb.gmra.mxu1 %vm663_vm0, %v5338_v33 }
0x13bc   : > { %4127 = vmatmul.msk.f32.vlgmr.msra.gmra.mxu1 %vm663_vm0, %v5338_v33 }
0x1429   : > { %v2144_v24 = vpop.f32.mrf.mxu1 }
0x142a   : > { %v2145_v35 = vadd.f32 %v5209_v49, %v2144_v24 }
0x142c   : > { %v2147_v16 = vmax.f32 %v2145_v35, 0.0 }
0x142e   : > { %4092 = vmatmul.msk.f32.vlgmr.msra.gmra.mxu2 %vm663_vm0, %v2147_v16 }
0x142f   : > { %2444 = vmatpush.msra.mxu2 %v5479_v56 }
0x1431   : > { %v2296_v50 = vpop.f32.mrf.mxu1  ;;  %2445 = vmatpush.msra.mxu2 %v5484_v57 }
0x1432   : > { %v2297_v27 = vadd.f32 %v5466_v21, %v2296_v50  ;;  %v5569_v50 = vld [vmem:[%s6246_s24 + $0xc0] sm:$0xff] }
0x1433   : > { %2446 = vmatpush.msra.mxu2 %v5490_v53 }
0x1434   : > { %2355 = vmatpush.msrb.mxu3 %v2297_v27 }
0x1435   : > { %2447 = vmatpush.msra.mxu2 %v5496_v32 }
0x1436   : > { %4113 = vmatmul.msk.f32.vlgmr.msrb.gmra.mxu2 %vm743_vm1, %v2237_v48 }
0x1437   : > { %2556 = vmatpush.msrb.mxu2 %v5513_v44 }
0x1439   : > { %v2419_v47 = vpop.f32.mrf.mxu1 }
0x143a   : > { %v2420_v55 = vadd.f32 %v5472_v34, %v2419_v47 }
0x143c   : > { %4134 = vmatpush.xpose.msk.msra.mxu3 %vm743_vm1, %v2420_v55 }
0x143e   : > { %4133 = vmatmul.msk.f32.vlgmr.msra.gmra.mxu2 %vm663_vm0, %v5338_v33 }
0x14b1   : > { %v5387_v49 = vpop.f32.mrf.mxu2 }
0x14b2   : > { %6285 = vst [vmem:[#allocation13_spill] sm:$0xff] %v5387_v49 }
0x14b9   : > { %v2322_v37 = vpop.f32.mrf.mxu2 }
0x14ba   : > { %v2325_v39 = vmul.f32 0.35355338, %v2322_v37 }
0x14bc   : > { %v2326_v2 = vsel %vm743_vm1, %v2325_v39, -inf }
0x14bd   : > { %2327 = vmax.xlane.f32.xlu2 %v2326_v2  ;;  %v5534_v2 = vld [vmem:[%s6248_s29 + $0xd0] sm:$0xff] }
0x14c1   : > { %v2449_v51 = vpop.f32.mrf.mxu2 }
0x14c2   : > { %v2450_v1 = vadd.f32 %v5519_v8, %v2449_v51 }
0x14c4   : > { %2508 = vmatpush.msra.mxu0 %v2450_v1 }
0x1530   : > { %v2328_v13 = vpop.xlane.xlu2 %2327 }
0x1531   : > { %v2329_v18 = vsub.f32 %v2325_v39, %v2328_v13  ;;  %v5528_v39 = vld [vmem:[%s6248_s29 + $0xd8] sm:$0xff] }
0x1532   : > { %v5540_v13 = vld [vmem:[%s6246_s24 + $0xd8] sm:$0xff] }
0x1533   : > { %v2330_v20 = vmul.f32 1.442695, %v2329_v18  ;;  %v5545_v18 = vld [vmem:[%s6248_s29 + $0xc8] sm:$0xff]  ;;  %2613 = vmatpush.msrb.mxu0 %v5540_v13 }
0x1535   : > { %4371 = vpow2.f32 %v2330_v20  ;;  %v5550_v20 = vld [vmem:[%s6246_s24 + $0xd0] sm:$0xff] }
0x1536   : > { %2614 = vmatpush.msrb.mxu0 %v5550_v20 }
0x153b   : > { %v4372_v30 = vpop.eup %4371 }
0x153c   : > { %v2332_v17 = vsel %vm743_vm1, %v4372_v30, 0.0 }
0x153d   : > { %2333 = vadd.xlane.f32.xlu0 %v2332_v17  ;;  %v5562_v17 = vld [vmem:[%s6246_s24 + $0xc8] sm:$0xff] }
0x153e   : > { %2615 = vmatpush.msrb.mxu0 %v5562_v17 }
0x1540   : > { %2616 = vmatpush.msrb.mxu0 %v5569_v50 }
0x15b0   : > { %v2334_v41 = vpop.xlane.xlu0 %2333 }
0x15b1   : > { %4373 = vrcp.f32 %v2334_v41  ;;  %v5581_v41 = vld [vmem:[%s6254_s7 + $0x28] sm:$0xff] }
0x15b2   : > { %2533 = vmatpush.msrb.mxu1 %v5581_v41 }
0x15b7   : > { %v4374_v42 = vpop.eup %4373 }
0x15b8   : > { %v2336_v10 = vmul.f32 %v4374_v42, %v4372_v30  ;;  %v5556_v30 = vld [vmem:[%s6248_s29 + $0xc0] sm:$0xff] }
0x15ba   : > { %4114 = vmatmul.msk.f32.vlgmr.msrb.gmra.mxu3 %vm743_vm1, %v2336_v10  ;;  %v5588_v10 = vld [vmem:[%s6250_s4 + $0x6] ss:$0 sm:$0xff] }
0x15bb   : > { %2583 = vmatpush.msrb.mxu3 %v5528_v39  ;;  %6286 = vst [vmem:[#allocation15_spill] sm:$0xff] %v5588_v10 }
0x15bd   : > { %2584 = vmatpush.msrb.mxu3 %v5534_v2 }
0x15bf   : > { %2585 = vmatpush.msrb.mxu3 %v5545_v18 }
0x15c1   : > { %2586 = vmatpush.msrb.mxu3 %v5556_v30 }
0x15c2   : > { %4135 = vmatmul.msk.f32.vlgmr.msra.gmra.mxu3 %vm743_vm1, %v2390_v40 }
0x15ca   : > { %4145 = vmatmul.msk.f32.vlgmr.msrb.gmra.mxu3 %vm663_vm0, %v5338_v33 }
0x163d   : > { %v2357_v4 = vpop.f32.mrf.mxu3 }
0x163e   : > { %4139 = vmatmul.msk.f32.vlgmr.msrb.gmra.mxu2 %vm743_vm1, %v2357_v4 }
0x1645   : > { %v2475_v6 = vpop.f32.mrf.mxu3 }
0x1646   : > { %v2478_v7 = vmul.f32 0.35355338, %v2475_v6  ;;  %v5602_v6 = vld [vmem:[%s6252_s0 + $0xd8] sm:$0xff] }
0x1647   : > { %2643 = vmatpush.msra.mxu1 %v5602_v6 }
0x1648   : > { %v2479_v24 = vsel %vm743_vm1, %v2478_v7, -inf }
0x1649   : > { %2480 = vmax.xlane.f32.xlu1 %v2479_v24 }
0x164d   : > { %v2588_v40 = vpop.f32.mrf.mxu3 }
0x164e   : > { %v2589_v4 = vadd.f32 %v5593_v43, %v2588_v40 }
0x16bc   : > { %v2481_v35 = vpop.xlane.xlu1 %2480 }
0x16bd   : > { %v2482_v16 = vsub.f32 %v2478_v7, %v2481_v35 }
0x16bf   : > { %v2483_v38 = vmul.f32 1.442695, %v2482_v16 }
0x16c1   : > { %4375 = vpow2.f32 %v2483_v38  ;;  %v5605_v7 = vpop.f32.mrf.mxu2  ;;  %v5611_v38 = vld [vmem:[%s6252_s0 + $0xd0] sm:$0xff] }
0x16c2   : > { %2644 = vmatpush.msra.mxu1 %v5611_v38 }
0x16c7   : > { %v4376_v48 = vpop.eup %4375 }
0x16c8   : > { %v2485_v37 = vsel %vm743_vm1, %v4376_v48, 0.0 }
0x16c9   : > { %2486 = vadd.xlane.f32.xlu2 %v2485_v37  ;;  %v5622_v37 = vld [vmem:[%s6252_s0 + $0xc0] sm:$0xff] }
0x173c   : > { %v2487_v27 = vpop.xlane.xlu2 %2486 }
0x173d   : > { %4377 = vrcp.f32 %v2487_v27 }
0x1743   : > { %v4378_v47 = vpop.eup %4377 }
0x1744   : > { %v2489_v55 = vmul.f32 %v4378_v47, %v4376_v48  ;;  %v5617_v48 = vld [vmem:[%s6252_s0 + $0xc8] sm:$0xff] }
0x1745   : > { %2645 = vmatpush.msra.mxu1 %v5617_v48 }
0x1746   : > { %4136 = vmatmul.msk.f32.vlgmr.msra.gmra.mxu0 %vm743_vm1, %v2489_v55 }
0x1747   : > { %2646 = vmatpush.msra.mxu1 %v5622_v37 }
0x174e   : > { %4151 = vmatmul.msk.f32.vlgmr.msrb.gmra.mxu0 %vm663_vm0, %v5338_v33 }
0x17c3   : > { %v2510_v42 = vpop.f32.mrf.mxu0 }
0x17c4   : > { %4138 = vmatmul.msk.f32.vlgmr.msrb.gmra.mxu1 %vm743_vm1, %v2510_v42 }
0x17cb   : > { %v2618_v51 = vpop.f32.mrf.mxu0 }
0x17cc   : > { %v2619_v1 = vadd.f32 %v5588_v10, %v2618_v51  ;;  %4157 = vmatmul.msk.f32.vlgmr.msra.gmra.mxu1 %vm663_vm0, %v5338_v33 }
0x17ce   : > { %4158 = vmatpush.xpose.msk.msra.mxu2 %vm743_vm1, %v2619_v1  ;;  %v5632_v1 = vld [vmem:[%s6253_s6 + $0x6] ss:$0 sm:$0xff] }
0x17cf   : > { %6288 = vst [vmem:[#allocation17_spill] sm:$0xff] %v5632_v1 }
0x17d1   : > { %4159 = vmatmul.msk.f32.vlgmr.msra.gmra.mxu2 %vm743_vm1, %v2589_v4  ;;  %v5637_v4 = vld [vmem:[%s6246_s24 + $0xf8] sm:$0xff] }
0x17d2   : > { %6289 = vst [vmem:[#allocation18_spill] sm:$0xff] %v5637_v4  ;;  %2790 = vmatpush.msrb.mxu2 %v5637_v4 }
0x1841   : > { %v2535_v51 = vpop.f32.mrf.mxu1 }
0x1854   : > { %v2674_v24 = vpop.f32.mrf.mxu2 }
0x1855   : > { %v2677_v35 = vmul.f32 0.35355338, %v2674_v24  ;;  %v2648_v24 = vpop.f32.mrf.mxu1 }
0x1857   : > { %v2678_v16 = vsel %vm743_vm1, %v2677_v35, -inf }
0x1858   : > { %2679 = vmax.xlane.f32.xlu0 %v2678_v16  ;;  %v5644_v16 = vld [vmem:[%s6246_s24 + $0xf0] sm:$0xff] }
0x1859   : > { %6290 = vst [vmem:[#allocation14_spill] sm:$0xff] %v5644_v16  ;;  %2791 = vmatpush.msrb.mxu2 %v5644_v16 }
0x18cb   : > { %v2680_v27 = vpop.xlane.xlu0 %2679 }
0x18cc   : > { %v2681_v47 = vsub.f32 %v2677_v35, %v2680_v27  ;;  %v2649_v35 = vadd.f32 %v5632_v1, %v2648_v24  ;;  %v5650_v27 = vld [vmem:[%s6246_s24 + $0xe8] sm:$0xff]  ;;  %v5672_v24 = vld [vmem:[%s6254_s7 + $0x30] sm:$0xff]  ;;  %v5697_v1 = vld [vmem:[%s6250_s4 + $0x7] ss:$0 sm:$0xff]  ;;  %s648_s4 = scalar_lea.vmem [#allocation2], %s647_s30 }
0x18cd   : > { %6291 = vst [vmem:[#allocation21_spill] sm:$0xff] %v5650_v27  ;;  %2792 = vmatpush.msrb.mxu2 %v5650_v27  ;;  %2732 = vmatpush.msra.mxu0 %v5672_v24 }
0x18ce   : > { %v2682_v55 = vmul.f32 1.442695, %v2681_v47  ;;  %2707 = vmatpush.msra.mxu3 %v2649_v35  ;;  %v5656_v47 = vld [vmem:[%s6246_s24 + $0xe0] sm:$0xff]  ;;  %v5678_v35 = vld [vmem:[%s6248_s29 + $0xe8] sm:$0xff]  ;;  %6294 = vst [vmem:[#allocation24_spill] sm:$0xff] %v5697_v1 }
0x18cf   : > { %6292 = vst [vmem:[#allocation22_spill] sm:$0xff] %v5656_v47  ;;  %2793 = vmatpush.msrb.mxu2 %v5656_v47 }
0x18d0   : > { %4379 = vpow2.f32 %v2682_v55  ;;  %v5661_v55 = vld [vmem:[%s6248_s29 + $0xf8] sm:$0xff]  ;;  %4174 = vmatmul.msk.f32.vlgmr.msrb.gmra.mxu2 %vm663_vm0, %v5338_v33 }
0x18d1   : > { %2760 = vmatpush.msrb.mxu1 %v5661_v55 }
0x18d6   : > { %v4380_v42 = vpop.eup %4379 }
0x18d7   : > { %v2684_v40 = vsel %vm743_vm1, %v4380_v42, 0.0 }
0x18d8   : > { %2685 = vadd.xlane.f32.xlu1 %v2684_v40  ;;  %v5666_v40 = vld [vmem:[%s6248_s29 + $0xf0] sm:$0xff] }
0x18d9   : > { %2761 = vmatpush.msrb.mxu1 %v5666_v40 }
0x18db   : > { %2762 = vmatpush.msrb.mxu1 %v5678_v35 }
0x18dd   : > { %2763 = vmatpush.msrb.mxu1 %v5687_v5 }
0x18de   : > { %4168 = vmatmul.msk.f32.vlgmr.msrb.gmra.mxu1 %vm663_vm0, %v5338_v33 }
0x194b   : > { %v2686_v49 = vpop.xlane.xlu1 %2685 }
0x194c   : > { %4381 = vrcp.f32 %v2686_v49  ;;  %v5705_v49 = vld [vmem:[%s6251_s22 + $0x7] ss:$0 sm:$0xff] }
0x194d   : > { %6295 = vst [vmem:[#allocation19_spill] sm:$0xff] %v5705_v49 }
0x1952   : > { %v4382_v31 = vpop.eup %4381 }
0x1953   : > { %v2688_v36 = vmul.f32 %v4382_v31, %v4380_v42  ;;  %v2795_v47 = vpop.f32.mrf.mxu2  ;;  %v5712_v42 = vld [vmem:[%s6252_s0 + $0xf8] sm:$0xff] }
0x1954   : > { %v2796_v27 = vadd.f32 %v5697_v1, %v2795_v47  ;;  %6296 = vst [vmem:[#allocation20_spill] sm:$0xff] %v5712_v42  ;;  %2820 = vmatpush.msrb.mxu3 %v5712_v42  ;;  %v5729_v47 = vld [vmem:[%s6252_s0 + $0xe0] sm:$0xff] }
0x1955   : > { %4160 = vmatmul.msk.f32.vlgmr.msra.gmra.mxu3 %vm743_vm1, %v2688_v36  ;;  %6299 = vst [vmem:[#allocation29_spill] sm:$0xff] %v5729_v47 }
0x1956   : > { %4181 = vmatpush.xpose.msk.msrb.mxu0 %vm743_vm1, %v2796_v27  ;;  %v5717_v27 = vld [vmem:[%s6252_s0 + $0xf0] sm:$0xff] }
0x1957   : > { %6297 = vst [vmem:[#allocation27_spill] sm:$0xff] %v5717_v27  ;;  %2821 = vmatpush.msrb.mxu3 %v5717_v27 }
0x195b   : > { %v2765_v31 = vpop.f32.mrf.mxu1 }
0x195c   : > { %v2766_v36 = vadd.f32 %v5705_v49, %v2765_v31  ;;  %v2559_v31 = vadd.f32 %v5605_v7, %v2535_v51 }
0x19d8   : > { %v2709_v16 = vpop.f32.mrf.mxu3 }
0x19d9   : > { %4162 = vmatmul.msk.f32.vlgmr.msra.gmra.mxu0 %vm743_vm1, %v2709_v16  ;;  %v5723_v16 = vld [vmem:[%s6252_s0 + $0xe8] sm:$0xff] }
0x19da   : > { %6298 = vst [vmem:[#allocation28_spill] sm:$0xff] %v5723_v16  ;;  %2822 = vmatpush.msrb.mxu3 %v5723_v16 }
0x19dc   : > { %2823 = vmatpush.msrb.mxu3 %v5729_v47  ;;  %v5741_v47 = vld [vmem:[%s6253_s6 + $0x7] ss:$0 sm:$0xff]  ;;  %s3911_s6 = scalar_lea.sflag [#allocation3], %s647_s30 }
0x19dd   : > { %4180 = vmatmul.msk.f32.vlgmr.msrb.gmra.mxu3 %vm663_vm0, %v5338_v33 }
0x19e1   : > { %4182 = vmatmul.msk.f32.vlgmr.msrb.gmra.mxu0 %vm743_vm1, %v2766_v36 }
0x1a56   : > { %v2734_v36 = vpop.f32.mrf.mxu0 }
0x1a57   : > { %v2737_v49 = vadd.f32 %v2734_v36, %v2559_v31 }
0x1a5e   : > { %v2851_v1 = vpop.f32.mrf.mxu0 }
0x1a5f   : > { %v2854_v42 = vmul.f32 0.35355338, %v2851_v1  ;;  %v5747_v1 = vld [vmem:[%s6254_s7 + $0x38] sm:$0xff]  ;;  %s4431_s7 = sshra.s32 %s3924_s26, 4  ;;  %s4432_s7 = int_to_ptr.hbm [resolvable:$true] %s4431_s7 }
0x1a60   : > { %v2825_v7 = vpop.f32.mrf.mxu3  ;;  %2909 = vmatpush.msra.mxu2 %v5747_v1  ;;  %p4438_p0 = scmp.lt.s32.totalorder %s4432_s7, %s6182_s21 }
0x1a61   : > { %v2855_v27 = vsel %vm743_vm1, %v2854_v42, -inf  ;;  %v2826_v51 = vadd.f32 %v5741_v47, %v2825_v7 }
0x1a62   : > { %2856 = vmax.xlane.f32.xlu2 %v2855_v27  ;;  %3103 = vmatpush.msrb.mxu2 %v5318_v45  ;;  %v5799_v27 = vld [vmem:[%s4692_s27 + $0x18] sm:$0xff]  ;;  %s3921_s27 = sshll.u32 %s648_s4, 4  ;;  %s3922_s27 = int_to_ptr.vmem [resolvable:$true] %s3921_s27 }
0x1a63   : > { %2884 = vmatpush.msra.mxu1 %v2826_v51 }
0x1a64   : > { %3104 = vmatpush.msrb.mxu2 %v5329_v60 }
0x1a65   : > { %3083 = vmatpush.msrb.mxu1 %v5306_v54 }
0x1a66   : > { %3105 = vmatpush.msrb.mxu2 %v5343_v9 }
0x1a67   : > { %3084 = vmatpush.msrb.mxu1 %v5311_v3  ;;  %v5767_v3 = vld [vmem:[%s6268_s8 + $0x1] ss:$0 sm:$0xff]  ;;  %s4433_s8 = scalar_lea.hbm %s4432_s7, 1 }
0x1a68   : > { %3106 = vmatpush.msrb.mxu2 %v5350_v46  ;;  %p4434_p11 = scmp.ne.s32.totalorder %s4432_s7, %s4433_s8  ;;  %p4439_p1 = scmp.lt.s32.totalorder %s4437_s5, %s4433_s8 }
0x1a69   : > { %3085 = vmatpush.msrb.mxu1 %v5324_v59 }
0x1a6a   : > { %p4435_p12 = pnand %p4434_p11, %p4631_p5  ;;  %p4440_p2 = por %p4439_p1, %p4438_p0 }
0x1a6b   : > { %3086 = vmatpush.msrb.mxu1 %v5334_v58 }
0x1a6c   : > { %p4436_p13 = pneg %p4435_p12 }
0x1a6e   : > { %p4441_p3 = pnand %p4440_p2, %p4436_p13 }
0x1ad5   : > { %v2857_v4 = vpop.xlane.xlu2 %2856 }
0x1ad6   : > { %v2858_v43 = vsub.f32 %v2854_v42, %v2857_v4  ;;  %v5794_v42 = vld [vmem:[%s6172_s11 + $0x20] sm:$0xff] }
0x1ad8   : > { %v2859_v10 = vmul.f32 1.442695, %v2858_v43 }
0x1ada   : > { %4383 = vpow2.f32 %v2859_v10 }
0x1ae0   : > { %v4384_v5 = vpop.eup %4383 }
0x1ae1   : > { %v2861_v16 = vsel %vm743_vm1, %v4384_v5, 0.0 }
0x1ae2   : > { %2862 = vadd.xlane.f32.xlu0 %v2861_v16  ;;  %v5804_v16 = vld [vmem:[%s6174_s13 + $0x38] sm:$0xff] }
0x1ae3   : > { %3015 = vmatpush.msra.mxu0 %v5804_v16 }
0x1b55   : > { %v2863_v10 = vpop.xlane.xlu0 %2862 }
0x1b56   : > { %4385 = vrcp.f32 %v2863_v10 }
0x1b5c   : > { %v4386_v43 = vpop.eup %4385 }
0x1b5d   : > { %v2865_v54 = vmul.f32 %v4386_v43, %v4384_v5 }
0x1b5f   : > { %4183 = vmatmul.msk.f32.vlgmr.msra.gmra.mxu1 %vm743_vm1, %v2865_v54 }
0x1b67   : > { %4204 = vmatmul.msk.f32.vlgmr.msrb.gmra.mxu1 %vm663_vm0, %v5799_v27 }
0x1bdc   : > { %v2886_v4 = vpop.f32.mrf.mxu1 }
0x1bdd   : > { %4185 = vmatmul.msk.f32.vlgmr.msra.gmra.mxu2 %vm743_vm1, %v2886_v4 }
0x1bde   : > { %3204 = vmatpush.msra.mxu2 %v5416_v25 }
0x1be0   : > { %3205 = vmatpush.msra.mxu2 %v5421_v0 }
0x1be2   : > { %3206 = vmatpush.msra.mxu2 %v5448_v23 }
0x1be4   : > { %3207 = vmatpush.msra.mxu2 %v5453_v26  ;;  %v5777_v26 = vld [vmem:[%s6172_s11 + $0x38] sm:$0xff] }
0x1be5   : > { %2981 = vmatpush.msra.mxu3 %v5777_v26  ;;  %4205 = vmatmul.msk.f32.vlgmr.msrb.gmra.mxu2 %vm663_vm0, %v5799_v27 }
0x1bed   : > { %4210 = vmatmul.msk.f32.vlgmr.msra.gmra.mxu2 %vm663_vm0, %v5799_v27 }
0x1c60   : > { %v2911_v45 = vpop.f32.mrf.mxu2 }
0x1c61   : > { %v2914_v59 = vadd.f32 %v2911_v45, %v2737_v49  ;;  %v5789_v49 = vld [vmem:[%s6172_s11 + $0x28] sm:$0xff]  ;;  %v5826_v45 = vld [vmem:[%s6171_s10 + $0x1] ss:$0 sm:$0xff] }
0x1c63   : > { %v2920_v60 = vadd.f32 %v5767_v3, %v2914_v59 }
0x1c65   : > { %v2921_v58 = vadd.f32 %v5338_v33, %v2920_v60  ;;  %v5783_v33 = vld [vmem:[%s6172_s11 + $0x30] sm:$0xff] }
0x1c66   : > { %2982 = vmatpush.msra.mxu3 %v5783_v33 }
0x1c67   : > { %v2926_v9 = vsel %vm663_vm0, %v2921_v58, 0.0 }
0x1c68   : > { %2927 = vadd.xlane.f32.xlu1 %v2926_v9  ;;  %2983 = vmatpush.msra.mxu3 %v5789_v49 }
0x1c6a   : > { %2984 = vmatpush.msra.mxu3 %v5794_v42 }
0x1c6c   : > { %3123 = vmatpush.msrb.mxu3 %v5384_v63 }
0x1c6e   : > { %3124 = vmatpush.msrb.mxu3 %v5393_v11  ;;  %v5821_v11 = vld [vmem:[%s6170_s9 + $0x1] ss:$0 sm:$0xff] }
0x1c70   : > { %3125 = vmatpush.msrb.mxu3 %v5399_v12 }
0x1c72   : > { %3126 = vmatpush.msrb.mxu3 %v5405_v14 }
0x1cdb   : > { %v2928_v46 = vpop.xlane.xlu1 %2927 }
0x1cdc   : > { %v2929_v5 = vmul.f32 %v2928_v46, %v5109_v61 }
0x1cde   : > { %v2930_v25 = vsub.f32 %v2921_v58, %v2929_v5  ;;  %v3088_v58 = vpop.f32.mrf.mxu1 }
0x1ce0   : > { %v2931_v0 = vmul.f32 %v2930_v25, %v2930_v25 }
0x1ce2   : > { %v2932_v23 = vsel %vm663_vm0, %v2931_v0, 0.0 }
0x1ce3   : > { %2933 = vadd.xlane.f32.xlu2 %v2932_v23 }
0x1d56   : > { %v2934_v31 = vpop.xlane.xlu2 %2933 }
0x1d57   : > { %v2935_v36 = vmul.f32 %v2934_v31, %v5109_v61 }
0x1d59   : > { %v2936_v7 = vadd.f32 1e-05, %v2935_v36 }
0x1d5b   : > { %4387 = vrsqrt.f32 %v2936_v7  ;;  %vm2943_vm10 = vweird.f32 %v2936_v7 }
0x1d61   : > { %v4388_v63 = vpop.eup %4387 }
0x1d62   : > { %v2938_v51 = vmul.f32 %v4388_v63, %v2936_v7  ;;  %vm2944_vm9 = vweird.f32 %v4388_v63 }
0x1d63   : > { %vm2945_vm11 = vmor %vm2943_vm10, %vm2944_vm9 }
0x1d64   : > { %v2939_v10 = vmul.f32 %v4388_v63, %v2938_v51 }
0x1d66   : > { %v2940_v43 = vmul.f32 0.5, %v2939_v10 }
0x1d68   : > { %v2941_v54 = vsub.f32 1.5, %v2940_v43 }
0x1d6a   : > { %v2942_v4 = vmul.f32 %v4388_v63, %v2941_v54 }
0x1d6c   : > { %v2946_v12 = vsel %vm2945_vm11, %v4388_v63, %v2942_v4 }
0x1d6d   : > { %v2947_v14 = vmul.f32 %v2946_v12, %v2930_v25 }
0x1d6f   : > { %v2951_v59 = vmul.f32 %v5821_v11, %v2947_v14 }
0x1d71   : > { %v5830_v60 = vadd.f32 %v5826_v45, %v2951_v59  ;;  %v6300_v59 = vld [vmem:[#allocation23_spill] sm:$0xff] }
0x1d73   : > { %4194 = vmatmul.msk.f32.vlgmr.msra.gmra.mxu3 %vm663_vm0, %v5830_v60 }
0x1d74   : > { %3224 = vmatpush.msra.mxu3 %v5410_v19  ;;  %v5850_v19 = vld [vmem:[%s6174_s13 + $0x30] sm:$0xff] }
0x1d75   : > { %3016 = vmatpush.msra.mxu0 %v5850_v19 }
0x1d76   : > { %3225 = vmatpush.msra.mxu3 %v5428_v52  ;;  %v5856_v52 = vld [vmem:[%s6174_s13 + $0x28] sm:$0xff] }
0x1d77   : > { %3017 = vmatpush.msra.mxu0 %v5856_v52 }
0x1d78   : > { %3226 = vmatpush.msra.mxu3 %v5435_v22  ;;  %v5862_v22 = vld [vmem:[%s6174_s13 + $0x20] sm:$0xff] }
0x1d79   : > { %3018 = vmatpush.msra.mxu0 %v5862_v22 }
0x1d7a   : > { %3227 = vmatpush.msra.mxu3 %v5443_v28  ;;  %v3108_v28 = vpop.f32.mrf.mxu2 }
0x1d7b   : > { %4206 = vmatmul.msk.f32.vlgmr.msrb.gmra.mxu3 %vm663_vm0, %v5799_v27 }
0x1d7c   : > { %3331 = vmatpush.msrb.mxu3 %v5581_v41  ;;  %v3109_v41 = vadd.f32 %v5368_v15, %v3108_v28  ;;  %v3089_v15 = vadd.f32 %v5377_v29, %v3088_v58  ;;  %v6301_v28 = vld [vmem:[#allocation15_spill] sm:$0xff] }
0x1d7e   : > { %4207 = vmatpush.xpose.msk.msrb.mxu0 %vm743_vm1, %v3109_v41 }
0x1d82   : > { %v3209_v51 = vpop.f32.mrf.mxu2 }
0x1d83   : > { %4211 = vmatmul.msk.f32.vlgmr.msra.gmra.mxu3 %vm663_vm0, %v5799_v27  ;;  %v3210_v10 = vadd.f32 %v5506_v62, %v3209_v51 }
0x1d84   : > { %3411 = vmatpush.msra.mxu3 %v5602_v6  ;;  %v5870_v6 = vld [vmem:[%s6173_s12 + $0x1] ss:$0 sm:$0xff] }
0x1d86   : > { %3412 = vmatpush.msra.mxu3 %v5611_v38 }
0x1d88   : > { %3413 = vmatpush.msra.mxu3 %v5617_v48 }
0x1d8a   : > { %3414 = vmatpush.msra.mxu3 %v5622_v37 }
0x1df6   : > { %v2986_v38 = vpop.f32.mrf.mxu3 }
0x1df7   : > { %v2987_v48 = vadd.f32 %v5870_v6, %v2986_v38 }
0x1df9   : > { %v2989_v37 = vmax.f32 %v2987_v48, 0.0  ;;  %v6303_v48 = vld [vmem:[#allocation18_spill] sm:$0xff] }
0x1dfb   : > { %4200 = vmatmul.msk.f32.vlgmr.msra.gmra.mxu0 %vm663_vm0, %v2989_v37 }
0x1dfc   : > { %3244 = vmatpush.msra.mxu0 %v5479_v56 }
0x1dfe   : > { %3245 = vmatpush.msra.mxu0 %v5484_v57  ;;  %v3128_v0 = vpop.f32.mrf.mxu3 }
0x1e00   : > { %3246 = vmatpush.msra.mxu0 %v5490_v53 }
0x1e02   : > { %3247 = vmatpush.msra.mxu0 %v5496_v32 }
0x1e03   : > { %4208 = vmatmul.msk.f32.vlgmr.msrb.gmra.mxu0 %vm743_vm1, %v3089_v15 }
0x1e04   : > { %3354 = vmatpush.msrb.mxu0 %v5513_v44  ;;  %v3129_v44 = vadd.f32 %v5466_v21, %v3128_v0 }
0x1e06   : > { %3187 = vmatpush.msra.mxu1 %v3129_v44  ;;  %v3229_v23 = vpop.f32.mrf.mxu3  ;;  %v6308_v44 = vld [vmem:[#allocation20_spill] sm:$0xff] }
0x1e07   : > { %v3230_v31 = vadd.f32 %v5472_v34, %v3229_v23  ;;  %v6309_v23 = vld [vmem:[#allocation27_spill] sm:$0xff] }
0x1e09   : > { %4213 = vmatpush.xpose.msk.msrb.mxu1 %vm743_vm1, %v3230_v31  ;;  %v6310_v31 = vld [vmem:[#allocation28_spill] sm:$0xff] }
0x1e0b   : > { %4212 = vmatmul.msk.f32.vlgmr.msra.gmra.mxu0 %vm663_vm0, %v5799_v27 }
0x1e78   : > { %v5883_v9 = vpop.f32.mrf.mxu0 }
0x1e80   : > { %v3154_v46 = vpop.f32.mrf.mxu0 }
0x1e81   : > { %v3157_v5 = vmul.f32 0.35355338, %v3154_v46 }
0x1e83   : > { %v3158_v56 = vsel %vm743_vm1, %v3157_v5, -inf }
0x1e84   : > { %3159 = vmax.xlane.f32.xlu0 %v3158_v56 }
0x1e88   : > { %v3249_v21 = vpop.f32.mrf.mxu0 }
0x1e89   : > { %v3250_v34 = vadd.f32 %v5519_v8, %v3249_v21  ;;  %v6312_v21 = vld [vmem:[#allocation24_spill] sm:$0xff] }
0x1e8b   : > { %3308 = vmatpush.msrb.mxu2 %v3250_v34 }
0x1e8d   : > { %3391 = vmatpush.msra.mxu2 %v5540_v13 }
0x1e8f   : > { %3392 = vmatpush.msra.mxu2 %v5550_v20 }
0x1e91   : > { %3393 = vmatpush.msra.mxu2 %v5562_v17 }
0x1e93   : > { %3394 = vmatpush.msra.mxu2 %v5569_v50 }
0x1ef7   : > { %v3160_v57 = vpop.xlane.xlu0 %3159 }
0x1ef8   : > { %v3161_v29 = vsub.f32 %v3157_v5, %v3160_v57 }
0x1efa   : > { %v3162_v25 = vmul.f32 1.442695, %v3161_v29 }
0x1efc   : > { %4389 = vpow2.f32 %v3162_v25 }
0x1f02   : > { %v4390_v53 = vpop.eup %4389 }
0x1f03   : > { %v3164_v32 = vsel %vm743_vm1, %v4390_v53, 0.0 }
0x1f04   : > { %3165 = vadd.xlane.f32.xlu1 %v3164_v32 }
0x1f77   : > { %v3166_v36 = vpop.xlane.xlu1 %3165 }
0x1f78   : > { %4391 = vrcp.f32 %v3166_v36  ;;  %v6311_v36 = vld [vmem:[#allocation29_spill] sm:$0xff] }
0x1f7e   : > { %v4392_v7 = vpop.eup %4391 }
0x1f7f   : > { %v3168_v63 = vmul.f32 %v4392_v7, %v4390_v53 }
0x1f81   : > { %4209 = vmatmul.msk.f32.vlgmr.msra.gmra.mxu1 %vm743_vm1, %v3168_v63 }
0x1f82   : > { %3371 = vmatpush.msra.mxu1 %v5528_v39 }
0x1f84   : > { %3372 = vmatpush.msra.mxu1 %v5534_v2 }
0x1f86   : > { %3373 = vmatpush.msra.mxu1 %v5545_v18 }
0x1f88   : > { %3374 = vmatpush.msra.mxu1 %v5556_v30 }
0x1f89   : > { %4214 = vmatmul.msk.f32.vlgmr.msrb.gmra.mxu1 %vm743_vm1, %v3210_v10 }
0x1f91   : > { %4218 = vmatmul.msk.f32.vlgmr.msra.gmra.mxu1 %vm663_vm0, %v5799_v27 }
0x1ffe   : > { %v3189_v62 = vpop.f32.mrf.mxu1 }
0x1fff   : > { %4217 = vmatmul.msk.f32.vlgmr.msrb.gmra.mxu0 %vm743_vm1, %v3189_v62 }
0x2006   : > { %v3275_v39 = vpop.f32.mrf.mxu1 }
0x2007   : > { %v3278_v2 = vmul.f32 0.35355338, %v3275_v39 }
0x2009   : > { %v3279_v18 = vsel %vm743_vm1, %v3278_v2, -inf }
0x200a   : > { %3280 = vmax.xlane.f32.xlu2 %v3279_v18 }
0x200e   : > { %v3376_v12 = vpop.f32.mrf.mxu1 }
0x207c   : > { %v3356_v37 = vpop.f32.mrf.mxu0 }
0x207d   : > { %v3281_v30 = vpop.xlane.xlu2 %3280 }
0x207e   : > { %v3282_v43 = vsub.f32 %v3278_v2, %v3281_v30 }
0x2080   : > { %v3283_v8 = vmul.f32 1.442695, %v3282_v43 }
0x2082   : > { %4393 = vpow2.f32 %v3283_v8 }
0x2088   : > { %v4394_v54 = vpop.eup %4393 }
0x2089   : > { %v3285_v13 = vsel %vm743_vm1, %v4394_v54, 0.0 }
0x208a   : > { %3286 = vadd.xlane.f32.xlu0 %v3285_v13 }
0x20fd   : > { %v3287_v20 = vpop.xlane.xlu0 %3286 }
0x20fe   : > { %4395 = vrcp.f32 %v3287_v20 }
0x2104   : > { %v4396_v17 = vpop.eup %4395 }
0x2105   : > { %v3289_v50 = vmul.f32 %v4396_v17, %v4394_v54  ;;  %v6315_v17 = vld [vmem:[#allocation25_spill] sm:$0xff] }
0x2107   : > { %4215 = vmatmul.msk.f32.vlgmr.msrb.gmra.mxu2 %vm743_vm1, %v3289_v50 }
0x2108   : > { %3498 = vmatpush.msrb.mxu2 %v5672_v24  ;;  %v6302_v24 = vld [vmem:[#allocation16_spill] sm:$0xff] }
0x2109   : > { %v3377_v38 = vadd.f32 %v6302_v24, %v3376_v12 }
0x210f   : > { %4219 = vmatmul.msk.f32.vlgmr.msra.gmra.mxu2 %vm663_vm0, %v5799_v27 }
0x218a   : > { %v3310_v4 = vpop.f32.mrf.mxu2 }
0x218b   : > { %4216 = vmatmul.msk.f32.vlgmr.msrb.gmra.mxu3 %vm743_vm1, %v3310_v4 }
0x218c   : > { %3516 = vmatpush.msrb.mxu3 %v5661_v55  ;;  %v6304_v55 = vld [vmem:[#allocation14_spill] sm:$0xff] }
0x218e   : > { %3517 = vmatpush.msrb.mxu3 %v5666_v40  ;;  %v6305_v40 = vld [vmem:[#allocation21_spill] sm:$0xff] }
0x2190   : > { %3518 = vmatpush.msrb.mxu3 %v5678_v35  ;;  %v6306_v35 = vld [vmem:[#allocation22_spill] sm:$0xff] }
0x2192   : > { %v3396_v14 = vpop.f32.mrf.mxu2  ;;  %3519 = vmatpush.msrb.mxu3 %v6300_v59 }
0x2193   : > { %v3397_v41 = vadd.f32 %v6301_v28, %v3396_v14  ;;  %4220 = vmatmul.msk.f32.vlgmr.msra.gmra.mxu3 %vm663_vm0, %v5799_v27 }
0x2195   : > { %4221 = vmatpush.xpose.msk.msra.mxu0 %vm743_vm1, %v3397_v41 }
0x2198   : > { %4222 = vmatmul.msk.f32.vlgmr.msra.gmra.mxu0 %vm743_vm1, %v3377_v38 }
0x2199   : > { %3536 = vmatpush.msrb.mxu0 %v6303_v48 }
0x219b   : > { %3537 = vmatpush.msrb.mxu0 %v6304_v55  ;;  %4225 = vmatmul.msk.f32.vlgmr.msrb.gmra.mxu3 %vm663_vm0, %v5799_v27 }
0x219d   : > { %3538 = vmatpush.msrb.mxu0 %v6305_v40 }
0x219f   : > { %3539 = vmatpush.msrb.mxu0 %v6306_v35  ;;  %v6316_v35 = vld [vmem:[#allocation13_spill] sm:$0xff] }
0x21a0   : > { %4226 = vmatmul.msk.f32.vlgmr.msrb.gmra.mxu0 %vm663_vm0, %v5799_v27 }
0x21a1   : > { %3643 = vmatpush.msra.mxu0 %v5747_v1  ;;  %v6307_v1 = vld [vmem:[#allocation17_spill] sm:$0xff] }
0x220e   : > { %v3333_v53 = vpop.f32.mrf.mxu3 }
0x2215   : > { %v3442_v58 = vpop.f32.mrf.mxu0 }
0x2216   : > { %v3445_v15 = vmul.f32 0.35355338, %v3442_v58  ;;  %v3416_v32 = vpop.f32.mrf.mxu3 }
0x2217   : > { %v3417_v0 = vadd.f32 %v6307_v1, %v3416_v32 }
0x2218   : > { %v3446_v46 = vsel %vm743_vm1, %v3445_v15, -inf }
0x2219   : > { %3447 = vmax.xlane.f32.xlu1 %v3446_v46  ;;  %3475 = vmatpush.msrb.mxu1 %v3417_v0  ;;  %v6317_v46 = vld [vmem:[#allocation12_spill] sm:$0xff] }
0x221b   : > { %3556 = vmatpush.msra.mxu1 %v6308_v44 }
0x221d   : > { %3557 = vmatpush.msra.mxu1 %v6309_v23  ;;  %v3541_v10 = vpop.f32.mrf.mxu0 }
0x221e   : > { %v3542_v34 = vadd.f32 %v6312_v21, %v3541_v10  ;;  %v3521_v39 = vpop.f32.mrf.mxu3 }
0x221f   : > { %3558 = vmatpush.msra.mxu1 %v6310_v31 }
0x2220   : > { %4228 = vmatpush.xpose.msk.msra.mxu2 %vm743_vm1, %v3542_v34  ;;  %v3758_v34 = vld [vmem:[%s6178_s17 + $0x18] sm:$0xff] }
0x2221   : > { %3559 = vmatpush.msra.mxu1 %v6311_v36  ;;  %3803 = vmatpush.msrb.mxu0 %v3758_v34 }
0x228c   : > { %v3448_v5 = vpop.xlane.xlu1 %3447 }
0x228d   : > { %v3449_v56 = vsub.f32 %v3445_v15, %v3448_v5 }
0x228f   : > { %v3450_v57 = vmul.f32 1.442695, %v3449_v56 }
0x2291   : > { %4397 = vpow2.f32 %v3450_v57 }
0x2297   : > { %v4398_v29 = vpop.eup %4397 }
0x2298   : > { %v3452_v25 = vsel %vm743_vm1, %v4398_v29, 0.0 }
0x2299   : > { %3453 = vadd.xlane.f32.xlu2 %v3452_v25 }
0x230c   : > { %v3454_v7 = vpop.xlane.xlu2 %3453 }
0x230d   : > { %4399 = vrcp.f32 %v3454_v7 }
0x2313   : > { %v4400_v63 = vpop.eup %4399 }
0x2314   : > { %v3456_v51 = vmul.f32 %v4400_v63, %v4398_v29 }
0x2316   : > { %4223 = vmatmul.msk.f32.vlgmr.msrb.gmra.mxu1 %vm743_vm1, %v3456_v51 }
0x2317   : > { %3690 = vmatpush.msrb.mxu1 %v5777_v26  ;;  %v6313_v26 = vld [vmem:[#allocation19_spill] sm:$0xff] }
0x2319   : > { %3691 = vmatpush.msrb.mxu1 %v5783_v33  ;;  %v3522_v33 = vadd.f32 %v6313_v26, %v3521_v39  ;;  %v3755_v26 = vld [vmem:[%s6178_s17] sm:$0xff] }
0x231b   : > { %3692 = vmatpush.msrb.mxu1 %v5789_v49  ;;  %v3357_v49 = vadd.f32 %v3356_v37, %v3333_v53  ;;  %v5977_v53 = vld [vmem:[%s6175_s14 + $0x1] ss:$0 sm:$0xff] }
0x231c   : > { %v3021_v0 = vadd.f32 %v5977_v53, %v5883_v9 }
0x231d   : > { %3693 = vmatpush.msrb.mxu1 %v5794_v42 }
0x231e   : > { %4227 = vmatmul.msk.f32.vlgmr.msra.gmra.mxu1 %vm663_vm0, %v5799_v27  ;;  %v5988_v36 = vadd.f32 %v3021_v0, %v5830_v60  ;;  %v3757_v60 = vld [vmem:[%s6178_s17 + $0x10] sm:$0xff] }
0x231f   : > { %3804 = vmatpush.msrb.mxu0 %v3757_v60 }
0x2320   : > { %v3028_v63 = vsel %vm663_vm0, %v5988_v36, 0.0 }
0x2393   : > { %v3477_v62 = vpop.f32.mrf.mxu1 }
0x2394   : > { %4224 = vmatmul.msk.f32.vlgmr.msrb.gmra.mxu2 %vm743_vm1, %v3477_v62  ;;  %v3756_v62 = vld [vmem:[%s6178_s17 + $0x8] sm:$0xff] }
0x2395   : > { %3714 = vmatpush.msrb.mxu2 %v5804_v16  ;;  %3805 = vmatpush.msrb.mxu0 %v3756_v62 }
0x2397   : > { %3715 = vmatpush.msrb.mxu2 %v5850_v19  ;;  %v4311_v19 = vld [vmem:[%s6175_s14] ss:$0 sm:$0xff]  ;;  %3806 = vmatpush.msrb.mxu0 %v3755_v26 }
0x2398   : > { %v2169_v37 = vadd.f32 %v4311_v19, %v6316_v35 }
0x2399   : > { %3716 = vmatpush.msrb.mxu2 %v5856_v52 }
0x239a   : > { %v2171_v5 = vadd.f32 %v2169_v37, %v6317_v46 }
0x239b   : > { %3717 = vmatpush.msrb.mxu2 %v5862_v22  ;;  %v6314_v22 = vld [vmem:[#allocation26_spill] sm:$0xff]  ;;  %v3561_v12 = vpop.f32.mrf.mxu1 }
0x239c   : > { %4229 = vmatmul.msk.f32.vlgmr.msra.gmra.mxu2 %vm743_vm1, %v3522_v33  ;;  %v1465_v13 = vadd.f32 %v4311_v19, %v6314_v22  ;;  %v3562_v14 = vadd.f32 %v5741_v47, %v3561_v12  ;;  %v2172_v57 = vsel %vm663_vm0, %v2171_v5, 0.0  ;;  %v4330_v19 = vld [vmem:[%s6177_s16] ss:$0 sm:$0xff] }
0x239e   : > { %v1467_v50 = vadd.f32 %v1465_v13, %v6315_v17  ;;  %3620 = vmatpush.msra.mxu3 %v3562_v14 }
0x23a0   : > { %v1470_v4 = vsel %vm663_vm0, %v1467_v50, 0.0 }
0x2417   : > { %v3500_v42 = vpop.f32.mrf.mxu2 }
0x2418   : > { %v3503_v2 = vadd.f32 %v3500_v42, %v3357_v49 }
0x241f   : > { %v3587_v18 = vpop.f32.mrf.mxu2 }
0x2420   : > { %v3590_v30 = vmul.f32 0.35355338, %v3587_v18 }
0x2422   : > { %v3591_v43 = vsel %vm743_vm1, %v3590_v30, -inf }
0x2423   : > { %3592 = vmax.xlane.f32.xlu0 %v3591_v43 }
0x2496   : > { %v3593_v8 = vpop.xlane.xlu0 %3592 }
0x2497   : > { %v3594_v16 = vsub.f32 %v3590_v30, %v3593_v8 }
0x2499   : > { %v3595_v54 = vmul.f32 1.442695, %v3594_v16  ;;  %v6013_v16 = vld [vmem:[%s6176_s15] ss:$0 sm:$0xff] }
0x249b   : > { %4401 = vpow2.f32 %v3595_v54 }
0x24a1   : > { %v4402_v52 = vpop.eup %4401 }
0x24a2   : > { %v3597_v20 = vsel %vm743_vm1, %v4402_v52, 0.0 }
0x24a3   : > { %3598 = vadd.xlane.f32.xlu1 %v3597_v20 }
0x24ab   : > { %1471 = vadd.xlane.f32.xlu1 %v1470_v4 }
0x2516   : > { %v3599_v59 = vpop.xlane.xlu1 %3598 }
0x2517   : > { %4403 = vrcp.f32 %v3599_v59 }
0x251d   : > { %v4404_v28 = vpop.eup %4403 }
0x251e   : > { %v3601_v41 = vmul.f32 %v4404_v28, %v4402_v52  ;;  %v1472_v58 = vpop.xlane.xlu1 %1471 }
0x251f   : > { %v1473_v15 = vmul.f32 %v1472_v58, %v5109_v61 }
0x2520   : > { %4230 = vmatmul.msk.f32.vlgmr.msra.gmra.mxu3 %vm743_vm1, %v3601_v41 }
0x2521   : > { %v1474_v56 = vsub.f32 %v1467_v50, %v1473_v15 }
0x2523   : > { %v1475_v29 = vmul.f32 %v1474_v56, %v1474_v56 }
0x2525   : > { %v1476_v25 = vsel %vm663_vm0, %v1475_v29, 0.0 }
0x25a3   : > { %v3622_v24 = vpop.f32.mrf.mxu3 }
0x25a4   : > { %4231 = vmatmul.msk.f32.vlgmr.msra.gmra.mxu0 %vm743_vm1, %v3622_v24 }
0x2621   : > { %v3645_v38 = vpop.f32.mrf.mxu0 }
0x2622   : > { %v3648_v48 = vadd.f32 %v3645_v38, %v3503_v2  ;;  %v4482_v2 = vmov 8.0  }
0x2624   : > { %v3649_v55 = vadd.f32 %v5767_v3, %v3648_v48 }
0x2626   : > { %v3650_v40 = vadd.f32 %v5799_v27, %v3649_v55 }
0x2628   : > { %v3651_v47 = vsel %vm663_vm0, %v3650_v40, 0.0 }
0x2629   : > { %3652 = vadd.xlane.f32.xlu2 %v3651_v47 }
0x2631   : > { %2173 = vadd.xlane.f32.xlu2 %v2172_v57 }
0x2639   : > { %1477 = vadd.xlane.f32.xlu2 %v1476_v25 }
0x269c   : > { %v3653_v3 = vpop.xlane.xlu2 %3652 }
0x269d   : > { %v3654_v27 = vmul.f32 %v3653_v3, %v5109_v61 }
0x269f   : > { %v5979_v32 = vsub.f32 %v3650_v40, %v3654_v27 }
0x26a1   : > { %v3656_v1 = vmul.f32 %v5979_v32, %v5979_v32 }
0x26a3   : > { %v3657_v44 = vsel %vm663_vm0, %v3656_v1, 0.0  ;;  %v4237_v1 = vld [vmem:[%s6178_s17 + $0x38] sm:$0xff] }
0x26a4   : > { %3658 = vadd.xlane.f32.xlu0 %v3657_v44  ;;  %v2174_v23 = vpop.xlane.xlu2 %2173  ;;  %3780 = vmatpush.msrb.mxu3 %v4237_v1  ;;  %v4236_v44 = vld [vmem:[%s6178_s17 + $0x30] sm:$0xff] }
0x26a5   : > { %v2175_v31 = vmul.f32 %v2174_v23, %v5109_v61  ;;  %v4235_v23 = vld [vmem:[%s6178_s17 + $0x28] sm:$0xff] }
0x26a6   : > { %3781 = vmatpush.msrb.mxu3 %v4236_v44 }
0x26a7   : > { %v5990_v7 = vsub.f32 %v2171_v5, %v2175_v31 }
0x26a8   : > { %3782 = vmatpush.msrb.mxu3 %v4235_v23 }
0x26a9   : > { %v2177_v9 = vmul.f32 %v5990_v7, %v5990_v7 }
0x26ab   : > { %v2178_v39 = vsel %vm663_vm0, %v2177_v9, 0.0 }
0x26ac   : > { %3029 = vadd.xlane.f32.xlu0 %v3028_v63  ;;  %v1478_v51 = vpop.xlane.xlu2 %1477  ;;  %v4234_v63 = vld [vmem:[%s6178_s17 + $0x20] sm:$0xff] }
0x26ad   : > { %v1479_v10 = vmul.f32 %v1478_v51, %v5109_v61  ;;  %3783 = vmatpush.msrb.mxu3 %v4234_v63 }
0x26af   : > { %v1480_v21 = vadd.f32 1e-05, %v1479_v10 }
0x26b1   : > { %4405 = vrsqrt.f32 %v1480_v21  ;;  %vm1487_vm13 = vweird.f32 %v1480_v21 }
0x26b2   : > { %4407 = vrcp.f32 %v4482_v2 }
0x26b4   : > { %2179 = vadd.xlane.f32.xlu0 %v2178_v39 }
0x26b7   : > { %v4406_v33 = vpop.eup %4405 }
0x26b8   : > { %v1482_v49 = vmul.f32 %v4406_v33, %v1480_v21  ;;  %vm1488_vm12 = vweird.f32 %v4406_v33  ;;  %v4408_v43 = vpop.eup %4407 }
0x26b9   : > { %vm1489_vm14 = vmor %vm1487_vm13, %vm1488_vm12  ;;  %v1508_v22 = vmul.f32 8.0, %v4408_v43  ;;  %vm1512_vm15 = vweird.f32 %v4408_v43  ;;  %vm3884_vm13 = vcmask 523264  }
0x26ba   : > { %v1483_v42 = vmul.f32 %v4406_v33, %v1482_v49 }
0x26bb   : > { %v1509_v17 = vsub.f32 1.0, %v1508_v22 }
0x26bc   : > { %v1484_v18 = vmul.f32 0.5, %v1483_v42 }
0x26bd   : > { %v1510_v12 = vmul.f32 %v4408_v43, %v1509_v17 }
0x26be   : > { %v1485_v30 = vsub.f32 1.5, %v1484_v18 }
0x26bf   : > { %v1511_v28 = vadd.f32 %v4408_v43, %v1510_v12 }
0x26c0   : > { %v1486_v8 = vmul.f32 %v4406_v33, %v1485_v30 }
0x26c1   : > { %v6020_v38 = vsel %vm1512_vm15, %v4408_v43, %v1511_v28 }
0x26c2   : > { %v1490_v54 = vsel %vm1489_vm14, %v4406_v33, %v1486_v8  ;;  %vm3908_vm14 = vcmask 32768  }
0x26c3   : > { %v1491_v52 = vmul.f32 %v1490_v54, %v1474_v56 }
0x26c5   : > { %v1495_v13 = vmul.f32 %v6013_v16, %v1491_v52 }
0x26c7   : > { %v1499_v20 = vadd.f32 %v4330_v19, %v1495_v13 }
0x26c9   : > { %v1500_v50 = vsel %vm663_vm0, %v1499_v20, 0.0 }
0x26ca   : > { %v1501_v4 = vrot.slane %v1500_v50, 4 }
0x26cc   : > { %v1502_v14 = vadd.f32 %v1501_v4, %v1500_v50 }
0x26ce   : > { %v1503_v59 = vrot.slane %v1502_v14, 2 }
0x26d0   : > { %v1504_v41 = vadd.f32 %v1503_v59, %v1502_v14 }
0x26d2   : > { %v1505_v24 = vrot.slane %v1504_v41, 1 }
0x26d4   : > { %v1506_v48 = vadd.f32 %v1505_v24, %v1504_v41  ;;  %v4243_v24 = vld [vmem:[%s6178_s17 + $0x58] sm:$0xff] }
0x26d5   : > { %3831 = vmatpush.msra.mxu1 %v4243_v24  ;;  %v3870_v24 = vld [vmem:[%s6179_s18] sm:$0x1] }
0x26d6   : > { %v1514_v55 = vmul.f32 %v6020_v38, %v1506_v48  ;;  %v4242_v48 = vld [vmem:[%s6178_s17 + $0x50] sm:$0xff] }
0x26d7   : > { %3832 = vmatpush.msra.mxu1 %v4242_v48 }
0x26d8   : > { %4239 = vmatmul.msk.f32.vlgmr.msrb.gmra.mxu0 %vm663_vm0, %v1514_v55 }
0x2717   : > { %v3659_v40 = vpop.xlane.xlu0 %3658 }
0x2718   : > { %v3660_v35 = vmul.f32 %v3659_v40, %v5109_v61  ;;  %v4240_v40 = vld [vmem:[%s6178_s17 + $0x40] sm:$0xff] }
0x271a   : > { %v3661_v37 = vadd.f32 1e-05, %v3660_v35 }
0x271c   : > { %4409 = vrsqrt.f32 %v3661_v37  ;;  %vm3668_vm2 = vweird.f32 %v3661_v37 }
0x271f   : > { %v3030_v47 = vpop.xlane.xlu0 %3029 }
0x2722   : > { %v4410_v58 = vpop.eup %4409 }
0x2723   : > { %v3663_v15 = vmul.f32 %v4410_v58, %v3661_v37  ;;  %vm3669_vm1 = vweird.f32 %v4410_v58 }
0x2724   : > { %vm3670_vm3 = vmor %vm3668_vm2, %vm3669_vm1 }
0x2725   : > { %v3664_v46 = vmul.f32 %v4410_v58, %v3663_v15 }
0x2727   : > { %v3665_v5 = vmul.f32 0.5, %v3664_v46  ;;  %v2180_v56 = vpop.xlane.xlu0 %2179 }
0x2728   : > { %v2181_v57 = vmul.f32 %v2180_v56, %v5109_v61 }
0x2729   : > { %v3666_v29 = vsub.f32 1.5, %v3665_v5  ;;  %v4331_v5 = vld [vmem:[%s6176_s15 + $0x1] ss:$0 sm:$0xff] }
0x272a   : > { %v2182_v25 = vadd.f32 1e-05, %v2181_v57  ;;  %v4332_v57 = vld [vmem:[%s6177_s16 + $0x1] ss:$0 sm:$0xff] }
0x272b   : > { %v3667_v3 = vmul.f32 %v4410_v58, %v3666_v29 }
0x272c   : > { %4411 = vrsqrt.f32 %v2182_v25  ;;  %vm2189_vm5 = vweird.f32 %v2182_v25 }
0x272d   : > { %v3671_v27 = vsel %vm3670_vm3, %v4410_v58, %v3667_v3 }
0x272e   : > { %v3672_v0 = vmul.f32 %v3671_v27, %v5979_v32 }
0x2730   : > { %v3673_v31 = vmul.f32 %v5821_v11, %v3672_v0 }
0x2732   : > { %v4412_v51 = vpop.eup %4411  ;;  %v3674_v10 = vadd.f32 %v5826_v45, %v3673_v31 }
0x2733   : > { %v2184_v32 = vmul.f32 %v4412_v51, %v2182_v25  ;;  %vm2190_vm4 = vweird.f32 %v4412_v51 }
0x2734   : > { %4232 = vmatmul.msk.f32.vlgmr.msrb.gmra.mxu1 %vm663_vm0, %v3674_v10  ;;  %vm2191_vm6 = vmor %vm2189_vm5, %vm2190_vm4 }
0x2735   : > { %v2185_v21 = vmul.f32 %v4412_v51, %v2184_v32 }
0x2737   : > { %v2186_v9 = vmul.f32 0.5, %v2185_v21 }
0x2739   : > { %v2187_v34 = vsub.f32 1.5, %v2186_v9  ;;  %v4248_v9 = vld [vmem:[%s6178_s17 + $0x78] sm:$0xff] }
0x273a   : > { %3861 = vmatpush.msra.mxu2 %v4248_v9 }
0x273b   : > { %v2188_v60 = vmul.f32 %v4412_v51, %v2187_v34  ;;  %v4247_v34 = vld [vmem:[%s6178_s17 + $0x70] sm:$0xff] }
0x273c   : > { %3862 = vmatpush.msra.mxu2 %v4247_v34 }
0x273d   : > { %v2192_v11 = vsel %vm2191_vm6, %v4412_v51, %v2188_v60  ;;  %v4246_v60 = vld [vmem:[%s6178_s17 + $0x68] sm:$0xff] }
0x273e   : > { %v2193_v62 = vmul.f32 %v2192_v11, %v5990_v7  ;;  %3863 = vmatpush.msra.mxu2 %v4246_v60 }
0x2740   : > { %v2194_v39 = vmul.f32 %v6013_v16, %v2193_v62 }
0x2742   : > { %v2195_v26 = vadd.f32 %v4330_v19, %v2194_v39  ;;  %v3031_v19 = vmul.f32 %v3030_v47, %v5109_v61 }
0x2744   : > { %v2196_v45 = vsel %vm663_vm0, %v2195_v26, 0.0  ;;  %v3032_v20 = vsub.f32 %v5988_v36, %v3031_v19 }
0x2745   : > { %v2197_v33 = vrot.slane %v2196_v45, 4 }
0x2746   : > { %v3033_v50 = vmul.f32 %v3032_v20, %v3032_v20 }
0x2747   : > { %v2198_v49 = vadd.f32 %v2197_v33, %v2196_v45 }
0x2748   : > { %v3034_v4 = vsel %vm663_vm0, %v3033_v50, 0.0 }
0x2749   : > { %v2199_v42 = vrot.slane %v2198_v49, 2 }
0x274b   : > { %v2200_v2 = vadd.f32 %v2199_v42, %v2198_v49 }
0x274d   : > { %v2201_v18 = vrot.slane %v2200_v2, 1 }
0x274f   : > { %v2202_v30 = vadd.f32 %v2201_v18, %v2200_v2  ;;  %v3882_v2 = vld [vmem:[%s6180_s19 + $0x38] sm:$0xff]  ;;  %v3881_v18 = vld [vmem:[%s6180_s19 + $0x30] sm:$0xff] }
0x2750   : > { %3896 = vmatpush.msra.mxu3 %v3882_v2 }
0x2751   : > { %v2203_v43 = vmul.f32 %v2202_v30, %v6020_v38 }
0x2752   : > { %3897 = vmatpush.msra.mxu3 %v3881_v18 }
0x2753   : > { %v3759_v8 = vsub.f32 %v1514_v55, %v2203_v43  ;;  %v4241_v55 = vld [vmem:[%s6178_s17 + $0x48] sm:$0xff] }
0x2754   : > { %3833 = vmatpush.msra.mxu1 %v4241_v55  ;;  %v3880_v43 = vld [vmem:[%s6180_s19 + $0x28] sm:$0xff] }
0x2755   : > { %4238 = vmatmul.msk.f32.vlgmr.msrb.gmra.mxu3 %vm663_vm0, %v3759_v8 }
0x2756   : > { %3834 = vmatpush.msra.mxu1 %v4240_v40  ;;  %3898 = vmatpush.msra.mxu3 %v3880_v43 }
0x27b1   : > { %v3695_v54 = vpop.f32.mrf.mxu1 }
0x27b2   : > { %v3696_v52 = vadd.f32 %v5870_v6, %v3695_v54  ;;  %v3879_v54 = vld [vmem:[%s6180_s19 + $0x20] sm:$0xff] }
0x27b3   : > { %3899 = vmatpush.msra.mxu3 %v3879_v54 }
0x27b4   : > { %v3698_v7 = vmax.f32 %v3696_v52, 0.0 }
0x27b6   : > { %4233 = vmatmul.msk.f32.vlgmr.msrb.gmra.mxu2 %vm663_vm0, %v3698_v7 }
0x2839   : > { %v3719_v16 = vpop.f32.mrf.mxu2 }
0x283a   : > { %v3720_v22 = vadd.f32 %v5977_v53, %v3719_v16 }
0x283c   : > { %v3722_v13 = vadd.f32 %v3720_v22, %v3674_v10 }
0x283e   : > { %v3723_v17 = vsel %vm663_vm0, %v3722_v13, 0.0 }
0x283f   : > { %3724 = vadd.xlane.f32.xlu1 %v3723_v17 }
0x2847   : > { %3035 = vadd.xlane.f32.xlu1 %v3034_v4  ;;  %v3878_v4 = vld [vmem:[%s6180_s19 + $0x18] sm:$0xff] }
0x2848   : > { %3900 = vmatpush.msra.mxu3 %v3878_v4 }
0x28b2   : > { %v3725_v12 = vpop.xlane.xlu1 %3724 }
0x28b3   : > { %v3726_v6 = vmul.f32 %v3725_v12, %v5109_v61  ;;  %v3877_v12 = vld [vmem:[%s6180_s19 + $0x10] sm:$0xff] }
0x28b4   : > { %3901 = vmatpush.msra.mxu3 %v3877_v12 }
0x28b5   : > { %v6055_v14 = vsub.f32 %v3722_v13, %v3726_v6  ;;  %v3876_v6 = vld [vmem:[%s6180_s19 + $0x8] sm:$0xff] }
0x28b6   : > { %3902 = vmatpush.msra.mxu3 %v3876_v6 }
0x28b7   : > { %v3728_v59 = vmul.f32 %v6055_v14, %v6055_v14 }
0x28b9   : > { %v3729_v53 = vsel %vm663_vm0, %v3728_v59, 0.0  ;;  %v3808_v59 = vpop.f32.mrf.mxu0 }
0x28ba   : > { %3730 = vadd.xlane.f32.xlu2 %v3729_v53  ;;  %v3036_v28 = vpop.xlane.xlu1 %3035 }
0x28bb   : > { %v3037_v36 = vmul.f32 %v3036_v28, %v5109_v61 }
0x28bd   : > { %v3038_v41 = vadd.f32 1e-05, %v3037_v36 }
0x28bf   : > { %4413 = vrsqrt.f32 %v3038_v41  ;;  %vm3045_vm8 = vweird.f32 %v3038_v41 }
0x28c5   : > { %v4414_v35 = vpop.eup %4413 }
0x28c6   : > { %v3040_v37 = vmul.f32 %v4414_v35, %v3038_v41  ;;  %vm3046_vm7 = vweird.f32 %v4414_v35 }
0x28c7   : > { %vm3047_vm9 = vmor %vm3045_vm8, %vm3046_vm7 }
0x28c8   : > { %v3041_v47 = vmul.f32 %v4414_v35, %v3040_v37  ;;  %v3883_v37 = vld [vmem:[%s6318_s28] sm:$0x1] }
0x28ca   : > { %v3042_v58 = vmul.f32 0.5, %v3041_v47 }
0x28cc   : > { %v3043_v15 = vsub.f32 1.5, %v3042_v58 }
0x28ce   : > { %v3044_v46 = vmul.f32 %v4414_v35, %v3043_v15 }
0x28d0   : > { %v3048_v56 = vsel %vm3047_vm9, %v4414_v35, %v3044_v46 }
0x28d1   : > { %v3049_v29 = vmul.f32 %v3048_v56, %v3032_v20 }
0x28d3   : > { %v3053_v25 = vmul.f32 %v4331_v5, %v3049_v29 }
0x28d5   : > { %v3057_v3 = vadd.f32 %v4332_v57, %v3053_v25 }
0x28d7   : > { %v3058_v27 = vsel %vm663_vm0, %v3057_v3, 0.0 }
0x28d8   : > { %v3059_v1 = vrot.slane %v3058_v27, 4 }
0x28da   : > { %v3060_v0 = vadd.f32 %v3059_v1, %v3058_v27 }
0x28dc   : > { %v3061_v44 = vrot.slane %v3060_v0, 2 }
0x28de   : > { %v3062_v23 = vadd.f32 %v3061_v44, %v3060_v0 }
0x28e0   : > { %v3063_v31 = vrot.slane %v3062_v23, 1 }
0x28e2   : > { %v3064_v63 = vadd.f32 %v3063_v31, %v3062_v23 }
0x28e4   : > { %v3065_v51 = vmul.f32 %v3064_v63, %v6020_v38 }
0x28e6   : > { %4244 = vmatmul.msk.f32.vlgmr.msra.gmra.mxu1 %vm663_vm0, %v3065_v51 }
0x292d   : > { %v3731_v10 = vpop.xlane.xlu2 %3730 }
0x292e   : > { %v3732_v32 = vmul.f32 %v3731_v10, %v5109_v61  ;;  %v4245_v61 = vld [vmem:[%s6178_s17 + $0x60] sm:$0xff] }
0x292f   : > { %3864 = vmatpush.msra.mxu2 %v4245_v61 }
0x2930   : > { %v3733_v21 = vadd.f32 1e-05, %v3732_v32 }
0x2932   : > { %4415 = vrsqrt.f32 %v3733_v21  ;;  %vm3740_vm11 = vweird.f32 %v3733_v21 }
0x2938   : > { %v4416_v11 = vpop.eup %4415 }
0x2939   : > { %v3735_v62 = vmul.f32 %v4416_v11, %v3733_v21  ;;  %vm3741_vm10 = vweird.f32 %v4416_v11 }
0x293a   : > { %vm3742_vm12 = vmor %vm3740_vm11, %vm3741_vm10 }
0x293b   : > { %v3736_v39 = vmul.f32 %v4416_v11, %v3735_v62 }
0x293d   : > { %v3737_v26 = vmul.f32 0.5, %v3736_v39 }
0x293f   : > { %v3738_v45 = vsub.f32 1.5, %v3737_v26 }
0x2941   : > { %v3739_v33 = vmul.f32 %v4416_v11, %v3738_v45 }
0x2943   : > { %v3743_v49 = vsel %vm3742_vm12, %v4416_v11, %v3739_v33 }
0x2944   : > { %v3744_v42 = vmul.f32 %v3743_v49, %v6055_v14  ;;  %v3785_v14 = vpop.f32.mrf.mxu3 }
0x2945   : > { %v3809_v28 = vadd.f32 %v3808_v59, %v3785_v14 }
0x2946   : > { %v3745_v30 = vmul.f32 %v4331_v5, %v3744_v42 }
0x2948   : > { %v3746_v8 = vadd.f32 %v4332_v57, %v3745_v30 }
0x294a   : > { %v3747_v52 = vsel %vm663_vm0, %v3746_v8, 0.0 }
0x294b   : > { %v3748_v7 = vrot.slane %v3747_v52, 4 }
0x294d   : > { %v3749_v16 = vadd.f32 %v3748_v7, %v3747_v52 }
0x294f   : > { %v3750_v19 = vrot.slane %v3749_v16, 2 }
0x2951   : > { %v3751_v22 = vadd.f32 %v3750_v19, %v3749_v16 }
0x2953   : > { %v3752_v13 = vrot.slane %v3751_v22, 1 }
0x2955   : > { %v3753_v20 = vadd.f32 %v3752_v13, %v3751_v22 }
0x2957   : > { %v3754_v17 = vmul.f32 %v3753_v20, %v6020_v38  ;;  %v3875_v38 = vld [vmem:[%s6180_s19] sm:$0xff] }
0x2958   : > { %3903 = vmatpush.msra.mxu3 %v3875_v38 }
0x2959   : > { %v3840_v50 = vsub.f32 %v3065_v51, %v3754_v17 }
0x295b   : > { %4249 = vmatmul.msk.f32.vlgmr.msra.gmra.mxu2 %vm663_vm0, %v3840_v50 }
0x2963   : > { %v3836_v53 = vpop.f32.mrf.mxu1 }
0x2964   : > { %v3839_v36 = vadd.f32 %v3836_v53, %v3809_v28 }
0x29de   : > { %v3866_v41 = vpop.f32.mrf.mxu2 }
0x29df   : > { %v3869_v48 = vadd.f32 %v3866_v41, %v3839_v36 }
0x29e1   : > { %v3871_v55 = vadd.f32 %v3870_v24, %v3869_v48 }
0x29e3   : > { %vm3872_vm0 = vcmp.gt.f32.partialorder %v3871_v55, 0.0  ;;  %v3873_v40 = vmul.f32 0.01, %v3871_v55 }
0x29e5   : > { %v3874_v35 = vsel %vm3872_vm0, %v3871_v55, %v3873_v40 }
0x29e6   : > { %4250 = vmatmul.msk.f32.vlgmr.msra.gmra.mxu3 %vm3884_vm13, %v3874_v35 }
0x2a69   : > { %v3905_v47 = vpop.f32.mrf.mxu3 }
0x2a6a   : > { %v3906_v58 = vadd.f32 %v3905_v47, %v3883_v37 }
0x2a6c   : > { %3909 = vst.msk [vmem:[%s648_s4] sm:$0x1] %vm3908_vm14, %v3906_v58 }
0x2a6d   : > { %4444 = shalt.err (!%p4441_p3)
}
0x2a6e   : > { %4254 = dma.vmem_to_hbm [thread:$0]  (%p4631_p5), %s3922_s27, 16, %s3924_s26, %s3911_s6  }
0x2a6f PF: > { %s6320_s4 = sld [smem:[#allocation7_spill]] }
0x2a70   : > { %s6321_s30 = sld [smem:[#allocation5_spill]] }
0x2a75   : > { %p4260_p4 = scmp.ge.s32.totalorder %s6320_s4, 2 }
0x2a76   : > { %s3935_s28 = sand.u32 1, %s6321_s30  }
0x2a77   : > { %p4257_p7 = pnand %p4260_p4, %p4635_p6  ;;  %s3936_s3 = scalar_lea.sflag [#allocation3], %s3935_s28 }
0x2a79   : > { %p4258_p8 = pneg %p4257_p7 }
0x2a7b   : > { %4462 = dma.done.wait (%p4258_p8), %s3936_s3, 16  }
0x2a7c   : > { %4464 = vsyncadd (%p4258_p8), %s3936_s3, 4294967280  ;;  %s6323_s27 = sld [smem:[#allocation8_spill]]  ;;  %s6326_s2 = smov %s4471_s25 }
0x2a7d   : > { %s6324_s7 = sld [smem:[#allocation6_spill]] }
0x2a7e   : > { %s6325_s26 = sld [smem:[#allocation9_spill]] }
0x2a82   : > { %p31_p9 = scmp.ge.s32.totalorder %s6323_s27, 4  }
0x2a83   : > { %s6327_s25 = smov %s6324_s7 }
0x2a84   :  { %33 = sbr.rel (!%p31_p9) target bundleno = 14 (0xe), region = 203 }
0x2a89   :  { %3941 = vsyncpa [#allocation3], 1 }
0x2a8a   :  { %3943 = vsyncpa [#allocation3 + $0x1], 1 }

</bundles_post_ra>
